<compile_context>
chip_gen: v7x
topology: tpu7x:2x2x1
jax: 0.10.0
libtpu: 0.0.40
codegen_flags: <defaults>
</compile_context>

<pallas_src>
import math
from functools import partial

import jax
import jax.numpy as jnp
from jax.experimental import pallas as pl
from jax.experimental.pallas import tpu as pltpu


# ----------------------------- in-kernel helpers -----------------------------

def _layer_norm(x, w, b, eps=1e-5):
    # x: (R, D) f32, w/b: (1, D) f32 -- stats kept in f32.
    mu = jnp.mean(x, axis=-1, keepdims=True)
    var = jnp.mean((x - mu) * (x - mu), axis=-1, keepdims=True)
    return (x - mu) * jax.lax.rsqrt(var + eps) * w + b


def _gelu_tanh(x):
    # tanh-approximate GELU (tanh goes to the EUP). Max |err| vs exact erf-GELU ~3e-3;
    # the pure-JAX reference uses exact erf GELU so the test bounds this approximation.
    c = math.sqrt(2.0 / math.pi)
    return 0.5 * x * (1.0 + jnp.tanh(c * (x + 0.044715 * x * x * x)))


# --------------------------------- kernel ------------------------------------

def _resblock_kernel(n_head, has_mask, x_ref, *refs):
    if has_mask:
        mask_ref, refs = refs[0], refs[1:]
    (ln1_w, ln1_b, w_qkv, b_qkv, w_out, b_out,
     ln2_w, ln2_b, w_fc, b_fc, w_proj, b_proj,
     o_ref, attn_buf) = refs

    B, L, D = x_ref.shape
    H = n_head
    Dh = D // H

    x = x_ref[...].reshape(B * L, D)                                  # (B*L, D) f32

    # --- x = x + attn(ln_1(x)) ---   (ln_attn is Identity in the module)
    h = _layer_norm(x, ln1_w[...], ln1_b[...]).astype(jnp.bfloat16)
    # Single (B*L, D) @ (D, 3D) QKV projection; 1/sqrt(Dh) is pre-folded into Q cols/bias.
    qkv = jnp.dot(h, w_qkv[...], preferred_element_type=jnp.float32) + b_qkv[...]

    # Per-head attention, batched over the B sequences of this grid step.
    # TODO(synk): heads stay a static Python loop because per-head Q/K/V live in static
    #             lane slices of `qkv`; dynamic lane slicing inside a fori_loop would be
    #             needed to make the head index dynamic.
    for hd in range(H):
        q_h = qkv[:, hd * Dh:(hd + 1) * Dh].reshape(B, L, Dh).astype(jnp.bfloat16)
        k_h = qkv[:, D + hd * Dh:D + (hd + 1) * Dh].reshape(B, L, Dh).astype(jnp.bfloat16)
        v_h = qkv[:, 2 * D + hd * Dh:2 * D + (hd + 1) * Dh].reshape(B, L, Dh).astype(jnp.bfloat16)

        s = jnp.einsum("bqd,bkd->bqk", q_h, k_h,
                       preferred_element_type=jnp.float32)            # (B, L, L)
        if has_mask:
            s = s + mask_ref[...]                                      # additive (L, L) mask
        s = s - jnp.max(s, axis=-1, keepdims=True)
        p = jnp.exp(s)
        p = p * pl.reciprocal(jnp.sum(p, axis=-1, keepdims=True), approx=True)
        o_h = jnp.einsum("bqk,bkd->bqd", p.astype(jnp.bfloat16), v_h,
                         preferred_element_type=jnp.float32)           # (B, L, Dh)
        # Fused head-concat: drop this head's output into its lane slice of the scratch.
        attn_buf[:, hd * Dh:(hd + 1) * Dh] = o_h.reshape(B * L, Dh).astype(jnp.bfloat16)

    # Single full-K (K = D) output projection instead of H rank-Dh matmuls.
    attn = jnp.dot(attn_buf[...], w_out[...],
                   preferred_element_type=jnp.float32) + b_out[...]
    x = x + attn

    # --- x = x + mlp(ln_2(x)) ---
    h2 = _layer_norm(x, ln2_w[...], ln2_b[...]).astype(jnp.bfloat16)
    fc = jnp.dot(h2, w_fc[...], preferred_element_type=jnp.float32) + b_fc[...]
    g = _gelu_tanh(fc).astype(jnp.bfloat16)
    proj = jnp.dot(g, w_proj[...], preferred_element_type=jnp.float32) + b_proj[...]

    o_ref[...] = (x + proj).reshape(B, L, D)


# ------------------------------- host wrappers --------------------------------

def _default_vmem_limit():
    # ~80% of physical VMEM: ~102 MiB on v5e/v6e (128 MiB), ~51 MiB on v7x (64 MiB).
    try:
        return int(pltpu.get_tpu_info().vmem_capacity_bytes * 0.8)
    except Exception:
        return None


def prepare_params(params, n_head):
    """One-time host-side prep (do this once per model, NOT per forward call):
    transpose weights to (K, N) bf16, fold the 1/sqrt(head_dim) attention scale into the
    Q columns/bias of the in-projection, and lay out 1-D params as (1, dim) f32 rows."""
    D = params["ln1_w"].shape[0]
    Dh = D // n_head
    scale = 1.0 / math.sqrt(Dh)

    w_qkv_t = jnp.asarray(params["w_qkv"], jnp.float32).T            # (D, 3D)
    w_qkv_t = w_qkv_t.at[:, :D].multiply(scale)                      # scale Q columns
    b_qkv = jnp.asarray(params["b_qkv"], jnp.float32).at[:D].multiply(scale)

    vec = lambda p: jnp.asarray(p, jnp.float32).reshape(1, -1)
    wt = lambda p: jnp.asarray(p, jnp.float32).T.astype(jnp.bfloat16)

    return {
        "ln1_w": vec(params["ln1_w"]), "ln1_b": vec(params["ln1_b"]),
        "w_qkv": w_qkv_t.astype(jnp.bfloat16), "b_qkv": b_qkv.reshape(1, -1),
        "w_out": wt(params["w_out"]), "b_out": vec(params["b_out"]),
        "ln2_w": vec(params["ln2_w"]), "ln2_b": vec(params["ln2_b"]),
        "w_fc": wt(params["w_fc"]), "b_fc": vec(params["b_fc"]),
        "w_proj": wt(params["w_proj"]), "b_proj": vec(params["b_proj"]),
    }


def residual_attention_block_nld(x_nld, prepared, n_head, attn_mask=None, *,
                                 seq_block=None, vmem_limit_bytes=None):
    """Fused block on x in (batch, seq, d_model) layout (preferred across layers)."""
    N, L, D = x_nld.shape
    mlp_width = prepared["w_fc"].shape[1]
    has_mask = attn_mask is not None

    if has_mask:
        attn_mask = jnp.asarray(attn_mask)
        if attn_mask.dtype == jnp.bool_:
            attn_mask = jnp.where(attn_mask, jnp.float32(-1e30), jnp.float32(0.0))
        attn_mask = attn_mask.astype(jnp.float32).reshape(L, L)

    # Sequences per grid step: push the matmul M-dim (seq_block*L) toward >= 256 rows.
    if seq_block is None:
        seq_block = max(1, min(N, -(-256 // L)))
    n_pad = (-N) % seq_block
    xp = jnp.pad(x_nld, ((0, n_pad), (0, 0), (0, 0))) if n_pad else x_nld
    Np = N + n_pad
    grid = (Np // seq_block,)
    # TODO(synk): on v7x (2 TensorCores) prefer a seq_block that yields an even step count.

    if vmem_limit_bytes is None:
        vmem_limit_bytes = _default_vmem_limit()

    kernel = partial(_resblock_kernel, n_head, has_mask)
    out_shape = jax.ShapeDtypeStruct((Np, L, D), jnp.float32)

    def make_call(single_buffer_weights):
        if single_buffer_weights:
            # Whole-array VMEM residency: fetched once per call, not double-buffered.
            def wspec(shape):
                return pl.BlockSpec(memory_space=pltpu.MemorySpace.VMEM)
        else:
            def wspec(shape):
                return pl.BlockSpec(shape, lambda b, _r=len(shape): (0,) * _r)

        in_specs = [pl.BlockSpec((seq_block, L, D), lambda b: (b, 0, 0))]
        if has_mask:
            in_specs.append(wspec((L, L)))
        in_specs += [
            wspec((1, D)), wspec((1, D)),                         # ln_1 w, b
            wspec((D, 3 * D)), wspec((1, 3 * D)),                 # in_proj W^T, b (Q pre-scaled)
            wspec((D, D)), wspec((1, D)),                         # out_proj W^T, b
            wspec((1, D)), wspec((1, D)),                         # ln_2 w, b
            wspec((D, mlp_width)), wspec((1, mlp_width)),         # c_fc W^T, b
            wspec((mlp_width, D)), wspec((1, D)),                 # c_proj W^T, b
        ]
        return pl.pallas_call(
            kernel,
            out_shape=out_shape,
            grid_spec=pltpu.PrefetchScalarGridSpec(
                num_scalar_prefetch=0,
                grid=grid,
                in_specs=in_specs,
                out_specs=pl.BlockSpec((seq_block, L, D), lambda b: (b, 0, 0)),
                scratch_shapes=[pltpu.VMEM((seq_block * L, D), jnp.bfloat16)],
            ),
            compiler_params=pltpu.CompilerParams(
                dimension_semantics=("parallel",),
                vmem_limit_bytes=vmem_limit_bytes),
        )

    args = [xp]
    if has_mask:
        args.append(attn_mask)
    args += [prepared["ln1_w"], prepared["ln1_b"],
             prepared["w_qkv"], prepared["b_qkv"],
             prepared["w_out"], prepared["b_out"],
             prepared["ln2_w"], prepared["ln2_b"],
             prepared["w_fc"], prepared["b_fc"],
             prepared["w_proj"], prepared["b_proj"]]

    try:
        out = make_call(True)(*args)
    except Exception:
        # Fallback: full-array blocked specs (double-buffered weights).
        out = make_call(False)(*args)

    return out[:N] if n_pad else out


def residual_attention_block(x_lnd, prepared, n_head, attn_mask=None, **kwargs):
    """Module-parity entry: x in (seq, batch, d_model), like nn.MultiheadAttention.
    For stacked layers prefer residual_attention_block_nld and keep the stream in
    (batch, seq, d_model) so the two relayouts below are paid once per model."""
    x = jnp.transpose(x_lnd, (1, 0, 2))
    y = residual_attention_block_nld(x, prepared, n_head, attn_mask, **kwargs)
    return jnp.transpose(y, (1, 0, 2))


# ------------------------------ pure-JAX reference -----------------------------

def _reference(x_lnd, params, n_head, attn_mask=None):
    L, N, D = x_lnd.shape
    Dh = D // n_head

    def ln(t, w, b, eps=1e-5):
        mu = t.mean(-1, keepdims=True)
        var = ((t - mu) ** 2).mean(-1, keepdims=True)
        return (t - mu) / jnp.sqrt(var + eps) * w + b

    x = x_lnd
    h = ln(x, params["ln1_w"], params["ln1_b"])
    qkv = h @ params["w_qkv"].T + params["b_qkv"]                 # (L, N, 3D)
    q, k, v = jnp.split(qkv, 3, axis=-1)

    def heads(t):                                                 # (L,N,D) -> (N,H,L,Dh)
        return t.reshape(L, N, n_head, Dh).transpose(1, 2, 0, 3)

    qh, kh, vh = heads(q) / math.sqrt(Dh), heads(k), heads(v)
    s = jnp.einsum("nhqd,nhkd->nhqk", qh, kh)
    if attn_mask is not None:
        s = s + attn_mask
    p = jax.nn.softmax(s, axis=-1)
    o = jnp.einsum("nhqk,nhkd->nhqd", p, vh)
    o = o.transpose(2, 0, 1, 3).reshape(L, N, D)
    x = x + o @ params["w_out"].T + params["b_out"]

    h2 = ln(x, params["ln2_w"], params["ln2_b"])
    fc = h2 @ params["w_fc"].T + params["b_fc"]
    g = jax.nn.gelu(fc, approximate=False)                        # exact erf GELU (nn.GELU)
    return x + g @ params["w_proj"].T + params["b_proj"]


# ------------------------------- param init -----------------------------------

def init_params(key, d_model, mlp_ratio=4.0):
    mlp_width = int(d_model * mlp_ratio)
    ks = jax.random.split(key, 4)
    s = 0.02
    return {
        "ln1_w": jnp.ones((d_model,), jnp.float32),
        "ln1_b": jnp.zeros((d_model,), jnp.float32),
        "w_qkv": s * jax.random.normal(ks[0], (3 * d_model, d_model), jnp.float32),
        "b_qkv": jnp.zeros((3 * d_model,), jnp.float32),
        "w_out": s * jax.random.normal(ks[1], (d_model, d_model), jnp.float32),
        "b_out": jnp.zeros((d_model,), jnp.float32),
        "ln2_w": jnp.ones((d_model,), jnp.float32),
        "ln2_b": jnp.zeros((d_model,), jnp.float32),
        "w_fc": s * jax.random.normal(ks[2], (mlp_width, d_model), jnp.float32),
        "b_fc": jnp.zeros((mlp_width,), jnp.float32),
        "w_proj": s * jax.random.normal(ks[3], (d_model, mlp_width), jnp.float32),
        "b_proj": jnp.zeros((d_model,), jnp.float32),
    }


if __name__ == "__main__":
    # Small shapes consistent with the module: seq=8, batch=2, d_model=64, 4 heads.
    L, N, D, H = 8, 2, 64, 4
    key = jax.random.PRNGKey(0)
    k_x, k_p = jax.random.split(key)
    x = jax.random.normal(k_x, (L, N, D), jnp.float32)
    params = init_params(k_p, D)
    prepared = prepare_params(params, H)     # one-time host prep (transpose/cast/scale)

    # 1) no mask (module default)
    y = residual_attention_block(x, prepared, n_head=H)
    jax.block_until_ready(y)
    assert y.shape == (L, N, D) and y.dtype == jnp.float32
    err = float(jnp.max(jnp.abs(y - _reference(x, params, H))))
    assert err < 2e-2, f"max abs error vs reference (no mask): {err}"

    # 2) causal additive attn_mask
    idx = jnp.arange(L)
    mask = jnp.where(idx[None, :] <= idx[:, None], 0.0, -1e9).astype(jnp.float32)
    ym = residual_attention_block(x, prepared, n_head=H, attn_mask=mask)
    jax.block_until_ready(ym)
    errm = float(jnp.max(jnp.abs(ym - _reference(x, params, H, mask))))
    assert errm < 2e-2, f"max abs error vs reference (masked): {errm}"

    print("KERNEL_OK")
</pallas_src>

<mosaic_0001>
module attributes {stable_mosaic.version = 11 : i64} {
  func.func @_resblock_kernel(%arg0: i32, %arg1: memref<2x8x64xf32, #tpu.memory_space<vmem>>, %arg2: memref<1x64xf32, #tpu.memory_space<vmem>>, %arg3: memref<1x64xf32, #tpu.memory_space<vmem>>, %arg4: memref<64x192xbf16, #tpu.memory_space<vmem>>, %arg5: memref<1x192xf32, #tpu.memory_space<vmem>>, %arg6: memref<64x64xbf16, #tpu.memory_space<vmem>>, %arg7: memref<1x64xf32, #tpu.memory_space<vmem>>, %arg8: memref<1x64xf32, #tpu.memory_space<vmem>>, %arg9: memref<1x64xf32, #tpu.memory_space<vmem>>, %arg10: memref<64x256xbf16, #tpu.memory_space<vmem>>, %arg11: memref<1x256xf32, #tpu.memory_space<vmem>>, %arg12: memref<256x64xbf16, #tpu.memory_space<vmem>>, %arg13: memref<1x64xf32, #tpu.memory_space<vmem>>, %arg14: memref<2x8x64xf32, #tpu.memory_space<vmem>>, %arg15: memref<16x64xbf16, #tpu.memory_space<vmem>>) attributes {dimension_semantics = [#tpu.dimension_semantics<parallel>], iteration_bounds = array<i64: 1>, scalar_prefetch = 0 : i64, scratch_operands = 1 : i64, tpu.core_type = #tpu.core_type<tc>, window_params = [{transform_indices = @transform_0, window_bounds = array<i64: 2, 8, 64>}, {pipeline_mode = #tpu.pipeline_mode<synchronous>, transform_indices = @transform_1, window_bounds = array<i64: 1, 64>}, {pipeline_mode = #tpu.pipeline_mode<synchronous>, transform_indices = @transform_2, window_bounds = array<i64: 1, 64>}, {pipeline_mode = #tpu.pipeline_mode<synchronous>, transform_indices = @transform_3, window_bounds = array<i64: 64, 192>}, {pipeline_mode = #tpu.pipeline_mode<synchronous>, transform_indices = @transform_4, window_bounds = array<i64: 1, 192>}, {pipeline_mode = #tpu.pipeline_mode<synchronous>, transform_indices = @transform_5, window_bounds = array<i64: 64, 64>}, {pipeline_mode = #tpu.pipeline_mode<synchronous>, transform_indices = @transform_6, window_bounds = array<i64: 1, 64>}, {pipeline_mode = #tpu.pipeline_mode<synchronous>, transform_indices = @transform_7, window_bounds = array<i64: 1, 64>}, {pipeline_mode = #tpu.pipeline_mode<synchronous>, transform_indices = @transform_8, window_bounds = array<i64: 1, 64>}, {pipeline_mode = #tpu.pipeline_mode<synchronous>, transform_indices = @transform_9, window_bounds = array<i64: 64, 256>}, {pipeline_mode = #tpu.pipeline_mode<synchronous>, transform_indices = @transform_10, window_bounds = array<i64: 1, 256>}, {pipeline_mode = #tpu.pipeline_mode<synchronous>, transform_indices = @transform_11, window_bounds = array<i64: 256, 64>}, {pipeline_mode = #tpu.pipeline_mode<synchronous>, transform_indices = @transform_12, window_bounds = array<i64: 1, 64>}, {transform_indices = @transform_13, window_bounds = array<i64: 2, 8, 64>}]} {
    %c0 = arith.constant 0 : index
    %c0_0 = arith.constant 0 : index
    %c0_1 = arith.constant 0 : index
    %0 = vector.load %arg1[%c0, %c0_0, %c0_1] : memref<2x8x64xf32, #tpu.memory_space<vmem>>, vector<2x8x64xf32>
    %1 = vector.shape_cast %0 : vector<2x8x64xf32> to vector<16x64xf32>
    %c0_2 = arith.constant 0 : index
    %c0_3 = arith.constant 0 : index
    %2 = vector.load %arg2[%c0_2, %c0_3] : memref<1x64xf32, #tpu.memory_space<vmem>>, vector<1x64xf32>
    %c0_4 = arith.constant 0 : index
    %c0_5 = arith.constant 0 : index
    %3 = vector.load %arg3[%c0_4, %c0_5] : memref<1x64xf32, #tpu.memory_space<vmem>>, vector<1x64xf32>
    %cst = arith.constant dense<0.000000e+00> : vector<16xf32>
    %4 = vector.multi_reduction <add>, %1, %cst [1] : vector<16x64xf32> to vector<16xf32>
    %5 = vector.shape_cast %4 : vector<16xf32> to vector<16x1xf32>
    %cst_6 = arith.constant 6.400000e+01 : f32
    %6 = vector.broadcast %cst_6 : f32 to vector<16x1xf32>
    %7 = arith.divf %5, %6 : vector<16x1xf32>
    %8 = vector.broadcast %7 : vector<16x1xf32> to vector<16x64xf32>
    %9 = arith.subf %1, %8 : vector<16x64xf32>
    %10 = vector.broadcast %7 : vector<16x1xf32> to vector<16x64xf32>
    %11 = arith.subf %1, %10 : vector<16x64xf32>
    %12 = arith.mulf %9, %11 : vector<16x64xf32>
    %cst_7 = arith.constant dense<0.000000e+00> : vector<16xf32>
    %13 = vector.multi_reduction <add>, %12, %cst_7 [1] : vector<16x64xf32> to vector<16xf32>
    %14 = vector.shape_cast %13 : vector<16xf32> to vector<16x1xf32>
    %cst_8 = arith.constant 6.400000e+01 : f32
    %15 = vector.broadcast %cst_8 : f32 to vector<16x1xf32>
    %16 = arith.divf %14, %15 : vector<16x1xf32>
    %17 = vector.broadcast %7 : vector<16x1xf32> to vector<16x64xf32>
    %18 = arith.subf %1, %17 : vector<16x64xf32>
    %cst_9 = arith.constant 9.99999974E-6 : f32
    %19 = vector.broadcast %cst_9 : f32 to vector<16x1xf32>
    %20 = arith.addf %16, %19 : vector<16x1xf32>
    %21 = math.rsqrt %20 : vector<16x1xf32>
    %22 = vector.broadcast %21 : vector<16x1xf32> to vector<16x64xf32>
    %23 = arith.mulf %18, %22 : vector<16x64xf32>
    %24 = vector.broadcast %2 : vector<1x64xf32> to vector<16x64xf32>
    %25 = arith.mulf %23, %24 : vector<16x64xf32>
    %26 = vector.broadcast %3 : vector<1x64xf32> to vector<16x64xf32>
    %27 = arith.addf %25, %26 : vector<16x64xf32>
    %28 = arith.truncf %27 : vector<16x64xf32> to vector<16x64xbf16>
    %c0_10 = arith.constant 0 : index
    %c0_11 = arith.constant 0 : index
    %29 = vector.load %arg4[%c0_10, %c0_11] : memref<64x192xbf16, #tpu.memory_space<vmem>>, vector<64x192xbf16>
    %cst_12 = arith.constant dense<0.000000e+00> : vector<16x192xf32>
    %30 = tpu.matmul %28, %29, %cst_12 {dimension_numbers = #tpu.dot_dimension_numbers<[1], [0], [0], [1], [0, 0, 1, 1], [], []>} : vector<16x64xbf16>, vector<64x192xbf16>, vector<16x192xf32> -> vector<16x192xf32>
    %c0_13 = arith.constant 0 : index
    %c0_14 = arith.constant 0 : index
    %31 = vector.load %arg5[%c0_13, %c0_14] : memref<1x192xf32, #tpu.memory_space<vmem>>, vector<1x192xf32>
    %32 = vector.broadcast %31 : vector<1x192xf32> to vector<16x192xf32>
    %33 = arith.addf %30, %32 : vector<16x192xf32>
    %34 = vector.extract_strided_slice %33 {offsets = [0, 0], sizes = [16, 16], strides = [1, 1]} : vector<16x192xf32> to vector<16x16xf32>
    %35 = vector.shape_cast %34 : vector<16x16xf32> to vector<2x8x16xf32>
    %36 = arith.truncf %35 : vector<2x8x16xf32> to vector<2x8x16xbf16>
    %37 = vector.extract_strided_slice %33 {offsets = [0, 64], sizes = [16, 16], strides = [1, 1]} : vector<16x192xf32> to vector<16x16xf32>
    %38 = vector.shape_cast %37 : vector<16x16xf32> to vector<2x8x16xf32>
    %39 = arith.truncf %38 : vector<2x8x16xf32> to vector<2x8x16xbf16>
    %40 = vector.extract_strided_slice %33 {offsets = [0, 128], sizes = [16, 16], strides = [1, 1]} : vector<16x192xf32> to vector<16x16xf32>
    %41 = vector.shape_cast %40 : vector<16x16xf32> to vector<2x8x16xf32>
    %42 = arith.truncf %41 : vector<2x8x16xf32> to vector<2x8x16xbf16>
    "tpu.trace_start"() <{level = 10 : i32, message = "bqd,bkd->bqk"}> : () -> ()
    %cst_15 = arith.constant dense<0.000000e+00> : vector<2x8x8xf32>
    %43 = tpu.matmul %36, %39, %cst_15 {dimension_numbers = #tpu.dot_dimension_numbers<[2], [2], [1], [1], [0, 0, 0, 1, 1, 1], [0], [0]>} : vector<2x8x16xbf16>, vector<2x8x16xbf16>, vector<2x8x8xf32> -> vector<2x8x8xf32>
    "tpu.trace_stop"() : () -> ()
    %cst_16 = arith.constant dense<0xFF800000> : vector<2x8xf32>
    %44 = vector.multi_reduction <maximumf>, %43, %cst_16 [2] : vector<2x8x8xf32> to vector<2x8xf32>
    %45 = vector.shape_cast %44 : vector<2x8xf32> to vector<2x8x1xf32>
    %46 = vector.broadcast %45 : vector<2x8x1xf32> to vector<2x8x8xf32>
    %47 = arith.subf %43, %46 : vector<2x8x8xf32>
    %48 = math.exp %47 : vector<2x8x8xf32>
    %cst_17 = arith.constant dense<0.000000e+00> : vector<2x8xf32>
    %49 = vector.multi_reduction <add>, %48, %cst_17 [2] : vector<2x8x8xf32> to vector<2x8xf32>
    %50 = vector.shape_cast %49 : vector<2x8xf32> to vector<2x8x1xf32>
    %51 = tpu.reciprocal %50 {approx = true} : vector<2x8x1xf32> -> vector<2x8x1xf32>
    %52 = vector.broadcast %51 : vector<2x8x1xf32> to vector<2x8x8xf32>
    %53 = arith.mulf %48, %52 : vector<2x8x8xf32>
    %54 = arith.truncf %53 : vector<2x8x8xf32> to vector<2x8x8xbf16>
    "tpu.trace_start"() <{level = 10 : i32, message = "bqk,bkd->bqd"}> : () -> ()
    %cst_18 = arith.constant dense<0.000000e+00> : vector<2x8x16xf32>
    %55 = tpu.matmul %54, %42, %cst_18 {dimension_numbers = #tpu.dot_dimension_numbers<[2], [1], [1], [2], [0, 0, 0, 1, 1, 2], [0], [0]>} : vector<2x8x8xbf16>, vector<2x8x16xbf16>, vector<2x8x16xf32> -> vector<2x8x16xf32>
    "tpu.trace_stop"() : () -> ()
    %56 = vector.shape_cast %55 : vector<2x8x16xf32> to vector<16x16xf32>
    %57 = arith.truncf %56 : vector<16x16xf32> to vector<16x16xbf16>
    %c0_19 = arith.constant 0 : index
    %c0_20 = arith.constant 0 : index
    %58 = vector.load %arg15[%c0_19, %c0_20] : memref<16x64xbf16, #tpu.memory_space<vmem>>, vector<16x16xbf16>
    tpu.vector_store %arg15[%c0_19, %c0_20], %57 {strides = array<i32>} : memref<16x64xbf16, #tpu.memory_space<vmem>>, vector<16x16xbf16>,
    %59 = vector.extract_strided_slice %33 {offsets = [0, 16], sizes = [16, 16], strides = [1, 1]} : vector<16x192xf32> to vector<16x16xf32>
    %60 = vector.shape_cast %59 : vector<16x16xf32> to vector<2x8x16xf32>
    %61 = arith.truncf %60 : vector<2x8x16xf32> to vector<2x8x16xbf16>
    %62 = vector.extract_strided_slice %33 {offsets = [0, 80], sizes = [16, 16], strides = [1, 1]} : vector<16x192xf32> to vector<16x16xf32>
    %63 = vector.shape_cast %62 : vector<16x16xf32> to vector<2x8x16xf32>
    %64 = arith.truncf %63 : vector<2x8x16xf32> to vector<2x8x16xbf16>
    %65 = vector.extract_strided_slice %33 {offsets = [0, 144], sizes = [16, 16], strides = [1, 1]} : vector<16x192xf32> to vector<16x16xf32>
    %66 = vector.shape_cast %65 : vector<16x16xf32> to vector<2x8x16xf32>
    %67 = arith.truncf %66 : vector<2x8x16xf32> to vector<2x8x16xbf16>
    "tpu.trace_start"() <{level = 10 : i32, message = "bqd,bkd->bqk"}> : () -> ()
    %cst_21 = arith.constant dense<0.000000e+00> : vector<2x8x8xf32>
    %68 = tpu.matmul %61, %64, %cst_21 {dimension_numbers = #tpu.dot_dimension_numbers<[2], [2], [1], [1], [0, 0, 0, 1, 1, 1], [0], [0]>} : vector<2x8x16xbf16>, vector<2x8x16xbf16>, vector<2x8x8xf32> -> vector<2x8x8xf32>
    "tpu.trace_stop"() : () -> ()
    %cst_22 = arith.constant dense<0xFF800000> : vector<2x8xf32>
    %69 = vector.multi_reduction <maximumf>, %68, %cst_22 [2] : vector<2x8x8xf32> to vector<2x8xf32>
    %70 = vector.shape_cast %69 : vector<2x8xf32> to vector<2x8x1xf32>
    %71 = vector.broadcast %70 : vector<2x8x1xf32> to vector<2x8x8xf32>
    %72 = arith.subf %68, %71 : vector<2x8x8xf32>
    %73 = math.exp %72 : vector<2x8x8xf32>
    %cst_23 = arith.constant dense<0.000000e+00> : vector<2x8xf32>
    %74 = vector.multi_reduction <add>, %73, %cst_23 [2] : vector<2x8x8xf32> to vector<2x8xf32>
    %75 = vector.shape_cast %74 : vector<2x8xf32> to vector<2x8x1xf32>
    %76 = tpu.reciprocal %75 {approx = true} : vector<2x8x1xf32> -> vector<2x8x1xf32>
    %77 = vector.broadcast %76 : vector<2x8x1xf32> to vector<2x8x8xf32>
    %78 = arith.mulf %73, %77 : vector<2x8x8xf32>
    %79 = arith.truncf %78 : vector<2x8x8xf32> to vector<2x8x8xbf16>
    "tpu.trace_start"() <{level = 10 : i32, message = "bqk,bkd->bqd"}> : () -> ()
    %cst_24 = arith.constant dense<0.000000e+00> : vector<2x8x16xf32>
    %80 = tpu.matmul %79, %67, %cst_24 {dimension_numbers = #tpu.dot_dimension_numbers<[2], [1], [1], [2], [0, 0, 0, 1, 1, 2], [0], [0]>} : vector<2x8x8xbf16>, vector<2x8x16xbf16>, vector<2x8x16xf32> -> vector<2x8x16xf32>
    "tpu.trace_stop"() : () -> ()
    %81 = vector.shape_cast %80 : vector<2x8x16xf32> to vector<16x16xf32>
    %82 = arith.truncf %81 : vector<16x16xf32> to vector<16x16xbf16>
    %c0_25 = arith.constant 0 : index
    %c16 = arith.constant 16 : index
    %83 = vector.load %arg15[%c0_25, %c16] : memref<16x64xbf16, #tpu.memory_space<vmem>>, vector<16x16xbf16>
    tpu.vector_store %arg15[%c0_25, %c16], %82 {strides = array<i32>} : memref<16x64xbf16, #tpu.memory_space<vmem>>, vector<16x16xbf16>,
    %84 = vector.extract_strided_slice %33 {offsets = [0, 32], sizes = [16, 16], strides = [1, 1]} : vector<16x192xf32> to vector<16x16xf32>
    %85 = vector.shape_cast %84 : vector<16x16xf32> to vector<2x8x16xf32>
    %86 = arith.truncf %85 : vector<2x8x16xf32> to vector<2x8x16xbf16>
    %87 = vector.extract_strided_slice %33 {offsets = [0, 96], sizes = [16, 16], strides = [1, 1]} : vector<16x192xf32> to vector<16x16xf32>
    %88 = vector.shape_cast %87 : vector<16x16xf32> to vector<2x8x16xf32>
    %89 = arith.truncf %88 : vector<2x8x16xf32> to vector<2x8x16xbf16>
    %90 = vector.extract_strided_slice %33 {offsets = [0, 160], sizes = [16, 16], strides = [1, 1]} : vector<16x192xf32> to vector<16x16xf32>
    %91 = vector.shape_cast %90 : vector<16x16xf32> to vector<2x8x16xf32>
    %92 = arith.truncf %91 : vector<2x8x16xf32> to vector<2x8x16xbf16>
    "tpu.trace_start"() <{level = 10 : i32, message = "bqd,bkd->bqk"}> : () -> ()
    %cst_26 = arith.constant dense<0.000000e+00> : vector<2x8x8xf32>
    %93 = tpu.matmul %86, %89, %cst_26 {dimension_numbers = #tpu.dot_dimension_numbers<[2], [2], [1], [1], [0, 0, 0, 1, 1, 1], [0], [0]>} : vector<2x8x16xbf16>, vector<2x8x16xbf16>, vector<2x8x8xf32> -> vector<2x8x8xf32>
    "tpu.trace_stop"() : () -> ()
    %cst_27 = arith.constant dense<0xFF800000> : vector<2x8xf32>
    %94 = vector.multi_reduction <maximumf>, %93, %cst_27 [2] : vector<2x8x8xf32> to vector<2x8xf32>
    %95 = vector.shape_cast %94 : vector<2x8xf32> to vector<2x8x1xf32>
    %96 = vector.broadcast %95 : vector<2x8x1xf32> to vector<2x8x8xf32>
    %97 = arith.subf %93, %96 : vector<2x8x8xf32>
    %98 = math.exp %97 : vector<2x8x8xf32>
    %cst_28 = arith.constant dense<0.000000e+00> : vector<2x8xf32>
    %99 = vector.multi_reduction <add>, %98, %cst_28 [2] : vector<2x8x8xf32> to vector<2x8xf32>
    %100 = vector.shape_cast %99 : vector<2x8xf32> to vector<2x8x1xf32>
    %101 = tpu.reciprocal %100 {approx = true} : vector<2x8x1xf32> -> vector<2x8x1xf32>
    %102 = vector.broadcast %101 : vector<2x8x1xf32> to vector<2x8x8xf32>
    %103 = arith.mulf %98, %102 : vector<2x8x8xf32>
    %104 = arith.truncf %103 : vector<2x8x8xf32> to vector<2x8x8xbf16>
    "tpu.trace_start"() <{level = 10 : i32, message = "bqk,bkd->bqd"}> : () -> ()
    %cst_29 = arith.constant dense<0.000000e+00> : vector<2x8x16xf32>
    %105 = tpu.matmul %104, %92, %cst_29 {dimension_numbers = #tpu.dot_dimension_numbers<[2], [1], [1], [2], [0, 0, 0, 1, 1, 2], [0], [0]>} : vector<2x8x8xbf16>, vector<2x8x16xbf16>, vector<2x8x16xf32> -> vector<2x8x16xf32>
    "tpu.trace_stop"() : () -> ()
    %106 = vector.shape_cast %105 : vector<2x8x16xf32> to vector<16x16xf32>
    %107 = arith.truncf %106 : vector<16x16xf32> to vector<16x16xbf16>
    %c0_30 = arith.constant 0 : index
    %c32 = arith.constant 32 : index
    %108 = vector.load %arg15[%c0_30, %c32] : memref<16x64xbf16, #tpu.memory_space<vmem>>, vector<16x16xbf16>
    tpu.vector_store %arg15[%c0_30, %c32], %107 {strides = array<i32>} : memref<16x64xbf16, #tpu.memory_space<vmem>>, vector<16x16xbf16>,
    %109 = vector.extract_strided_slice %33 {offsets = [0, 48], sizes = [16, 16], strides = [1, 1]} : vector<16x192xf32> to vector<16x16xf32>
    %110 = vector.shape_cast %109 : vector<16x16xf32> to vector<2x8x16xf32>
    %111 = arith.truncf %110 : vector<2x8x16xf32> to vector<2x8x16xbf16>
    %112 = vector.extract_strided_slice %33 {offsets = [0, 112], sizes = [16, 16], strides = [1, 1]} : vector<16x192xf32> to vector<16x16xf32>
    %113 = vector.shape_cast %112 : vector<16x16xf32> to vector<2x8x16xf32>
    %114 = arith.truncf %113 : vector<2x8x16xf32> to vector<2x8x16xbf16>
    %115 = vector.extract_strided_slice %33 {offsets = [0, 176], sizes = [16, 16], strides = [1, 1]} : vector<16x192xf32> to vector<16x16xf32>
    %116 = vector.shape_cast %115 : vector<16x16xf32> to vector<2x8x16xf32>
    %117 = arith.truncf %116 : vector<2x8x16xf32> to vector<2x8x16xbf16>
    "tpu.trace_start"() <{level = 10 : i32, message = "bqd,bkd->bqk"}> : () -> ()
    %cst_31 = arith.constant dense<0.000000e+00> : vector<2x8x8xf32>
    %118 = tpu.matmul %111, %114, %cst_31 {dimension_numbers = #tpu.dot_dimension_numbers<[2], [2], [1], [1], [0, 0, 0, 1, 1, 1], [0], [0]>} : vector<2x8x16xbf16>, vector<2x8x16xbf16>, vector<2x8x8xf32> -> vector<2x8x8xf32>
    "tpu.trace_stop"() : () -> ()
    %cst_32 = arith.constant dense<0xFF800000> : vector<2x8xf32>
    %119 = vector.multi_reduction <maximumf>, %118, %cst_32 [2] : vector<2x8x8xf32> to vector<2x8xf32>
    %120 = vector.shape_cast %119 : vector<2x8xf32> to vector<2x8x1xf32>
    %121 = vector.broadcast %120 : vector<2x8x1xf32> to vector<2x8x8xf32>
    %122 = arith.subf %118, %121 : vector<2x8x8xf32>
    %123 = math.exp %122 : vector<2x8x8xf32>
    %cst_33 = arith.constant dense<0.000000e+00> : vector<2x8xf32>
    %124 = vector.multi_reduction <add>, %123, %cst_33 [2] : vector<2x8x8xf32> to vector<2x8xf32>
    %125 = vector.shape_cast %124 : vector<2x8xf32> to vector<2x8x1xf32>
    %126 = tpu.reciprocal %125 {approx = true} : vector<2x8x1xf32> -> vector<2x8x1xf32>
    %127 = vector.broadcast %126 : vector<2x8x1xf32> to vector<2x8x8xf32>
    %128 = arith.mulf %123, %127 : vector<2x8x8xf32>
    %129 = arith.truncf %128 : vector<2x8x8xf32> to vector<2x8x8xbf16>
    "tpu.trace_start"() <{level = 10 : i32, message = "bqk,bkd->bqd"}> : () -> ()
    %cst_34 = arith.constant dense<0.000000e+00> : vector<2x8x16xf32>
    %130 = tpu.matmul %129, %117, %cst_34 {dimension_numbers = #tpu.dot_dimension_numbers<[2], [1], [1], [2], [0, 0, 0, 1, 1, 2], [0], [0]>} : vector<2x8x8xbf16>, vector<2x8x16xbf16>, vector<2x8x16xf32> -> vector<2x8x16xf32>
    "tpu.trace_stop"() : () -> ()
    %131 = vector.shape_cast %130 : vector<2x8x16xf32> to vector<16x16xf32>
    %132 = arith.truncf %131 : vector<16x16xf32> to vector<16x16xbf16>
    %c0_35 = arith.constant 0 : index
    %c48 = arith.constant 48 : index
    %133 = vector.load %arg15[%c0_35, %c48] : memref<16x64xbf16, #tpu.memory_space<vmem>>, vector<16x16xbf16>
    tpu.vector_store %arg15[%c0_35, %c48], %132 {strides = array<i32>} : memref<16x64xbf16, #tpu.memory_space<vmem>>, vector<16x16xbf16>,
    %c0_36 = arith.constant 0 : index
    %c0_37 = arith.constant 0 : index
    %134 = vector.load %arg15[%c0_36, %c0_37] : memref<16x64xbf16, #tpu.memory_space<vmem>>, vector<16x64xbf16>
    %c0_38 = arith.constant 0 : index
    %c0_39 = arith.constant 0 : index
    %135 = vector.load %arg6[%c0_38, %c0_39] : memref<64x64xbf16, #tpu.memory_space<vmem>>, vector<64x64xbf16>
    %cst_40 = arith.constant dense<0.000000e+00> : vector<16x64xf32>
    %136 = tpu.matmul %134, %135, %cst_40 {dimension_numbers = #tpu.dot_dimension_numbers<[1], [0], [0], [1], [0, 0, 1, 1], [], []>} : vector<16x64xbf16>, vector<64x64xbf16>, vector<16x64xf32> -> vector<16x64xf32>
    %c0_41 = arith.constant 0 : index
    %c0_42 = arith.constant 0 : index
    %137 = vector.load %arg7[%c0_41, %c0_42] : memref<1x64xf32, #tpu.memory_space<vmem>>, vector<1x64xf32>
    %138 = vector.broadcast %137 : vector<1x64xf32> to vector<16x64xf32>
    %139 = arith.addf %136, %138 : vector<16x64xf32>
    %140 = arith.addf %1, %139 : vector<16x64xf32>
    %c0_43 = arith.constant 0 : index
    %c0_44 = arith.constant 0 : index
    %141 = vector.load %arg8[%c0_43, %c0_44] : memref<1x64xf32, #tpu.memory_space<vmem>>, vector<1x64xf32>
    %c0_45 = arith.constant 0 : index
    %c0_46 = arith.constant 0 : index
    %142 = vector.load %arg9[%c0_45, %c0_46] : memref<1x64xf32, #tpu.memory_space<vmem>>, vector<1x64xf32>
    %cst_47 = arith.constant dense<0.000000e+00> : vector<16xf32>
    %143 = vector.multi_reduction <add>, %140, %cst_47 [1] : vector<16x64xf32> to vector<16xf32>
    %144 = vector.shape_cast %143 : vector<16xf32> to vector<16x1xf32>
    %cst_48 = arith.constant 6.400000e+01 : f32
    %145 = vector.broadcast %cst_48 : f32 to vector<16x1xf32>
    %146 = arith.divf %144, %145 : vector<16x1xf32>
    %147 = vector.broadcast %146 : vector<16x1xf32> to vector<16x64xf32>
    %148 = arith.subf %140, %147 : vector<16x64xf32>
    %149 = vector.broadcast %146 : vector<16x1xf32> to vector<16x64xf32>
    %150 = arith.subf %140, %149 : vector<16x64xf32>
    %151 = arith.mulf %148, %150 : vector<16x64xf32>
    %cst_49 = arith.constant dense<0.000000e+00> : vector<16xf32>
    %152 = vector.multi_reduction <add>, %151, %cst_49 [1] : vector<16x64xf32> to vector<16xf32>
    %153 = vector.shape_cast %152 : vector<16xf32> to vector<16x1xf32>
    %cst_50 = arith.constant 6.400000e+01 : f32
    %154 = vector.broadcast %cst_50 : f32 to vector<16x1xf32>
    %155 = arith.divf %153, %154 : vector<16x1xf32>
    %156 = vector.broadcast %146 : vector<16x1xf32> to vector<16x64xf32>
    %157 = arith.subf %140, %156 : vector<16x64xf32>
    %cst_51 = arith.constant 9.99999974E-6 : f32
    %158 = vector.broadcast %cst_51 : f32 to vector<16x1xf32>
    %159 = arith.addf %155, %158 : vector<16x1xf32>
    %160 = math.rsqrt %159 : vector<16x1xf32>
    %161 = vector.broadcast %160 : vector<16x1xf32> to vector<16x64xf32>
    %162 = arith.mulf %157, %161 : vector<16x64xf32>
    %163 = vector.broadcast %141 : vector<1x64xf32> to vector<16x64xf32>
    %164 = arith.mulf %162, %163 : vector<16x64xf32>
    %165 = vector.broadcast %142 : vector<1x64xf32> to vector<16x64xf32>
    %166 = arith.addf %164, %165 : vector<16x64xf32>
    %167 = arith.truncf %166 : vector<16x64xf32> to vector<16x64xbf16>
    %c0_52 = arith.constant 0 : index
    %c0_53 = arith.constant 0 : index
    %168 = vector.load %arg10[%c0_52, %c0_53] : memref<64x256xbf16, #tpu.memory_space<vmem>>, vector<64x256xbf16>
    %cst_54 = arith.constant dense<0.000000e+00> : vector<16x256xf32>
    %169 = tpu.matmul %167, %168, %cst_54 {dimension_numbers = #tpu.dot_dimension_numbers<[1], [0], [0], [1], [0, 0, 1, 1], [], []>} : vector<16x64xbf16>, vector<64x256xbf16>, vector<16x256xf32> -> vector<16x256xf32>
    %c0_55 = arith.constant 0 : index
    %c0_56 = arith.constant 0 : index
    %170 = vector.load %arg11[%c0_55, %c0_56] : memref<1x256xf32, #tpu.memory_space<vmem>>, vector<1x256xf32>
    %171 = vector.broadcast %170 : vector<1x256xf32> to vector<16x256xf32>
    %172 = arith.addf %169, %171 : vector<16x256xf32>
    %cst_57 = arith.constant 5.000000e-01 : f32
    %173 = vector.broadcast %cst_57 : f32 to vector<16x256xf32>
    %174 = arith.mulf %173, %172 : vector<16x256xf32>
    %cst_58 = arith.constant 4.471500e-02 : f32
    %175 = vector.broadcast %cst_58 : f32 to vector<16x256xf32>
    %176 = arith.mulf %175, %172 : vector<16x256xf32>
    %177 = arith.mulf %176, %172 : vector<16x256xf32>
    %178 = arith.mulf %177, %172 : vector<16x256xf32>
    %179 = arith.addf %172, %178 : vector<16x256xf32>
    %cst_59 = arith.constant 0.797884583 : f32
    %180 = vector.broadcast %cst_59 : f32 to vector<16x256xf32>
    %181 = arith.mulf %180, %179 : vector<16x256xf32>
    %182 = math.tanh %181 : vector<16x256xf32>
    %cst_60 = arith.constant 1.000000e+00 : f32
    %183 = vector.broadcast %cst_60 : f32 to vector<16x256xf32>
    %184 = arith.addf %183, %182 : vector<16x256xf32>
    %185 = arith.mulf %174, %184 : vector<16x256xf32>
    %186 = arith.truncf %185 : vector<16x256xf32> to vector<16x256xbf16>
    %c0_61 = arith.constant 0 : index
    %c0_62 = arith.constant 0 : index
    %187 = vector.load %arg12[%c0_61, %c0_62] : memref<256x64xbf16, #tpu.memory_space<vmem>>, vector<256x64xbf16>
    %cst_63 = arith.constant dense<0.000000e+00> : vector<16x64xf32>
    %188 = tpu.matmul %186, %187, %cst_63 {dimension_numbers = #tpu.dot_dimension_numbers<[1], [0], [0], [1], [0, 0, 1, 1], [], []>} : vector<16x256xbf16>, vector<256x64xbf16>, vector<16x64xf32> -> vector<16x64xf32>
    %c0_64 = arith.constant 0 : index
    %c0_65 = arith.constant 0 : index
    %189 = vector.load %arg13[%c0_64, %c0_65] : memref<1x64xf32, #tpu.memory_space<vmem>>, vector<1x64xf32>
    %190 = vector.broadcast %189 : vector<1x64xf32> to vector<16x64xf32>
    %191 = arith.addf %188, %190 : vector<16x64xf32>
    %192 = arith.addf %140, %191 : vector<16x64xf32>
    %193 = vector.shape_cast %192 : vector<16x64xf32> to vector<2x8x64xf32>
    %c0_66 = arith.constant 0 : index
    %c0_67 = arith.constant 0 : index
    %c0_68 = arith.constant 0 : index
    %194 = vector.load %arg14[%c0_66, %c0_67, %c0_68] : memref<2x8x64xf32, #tpu.memory_space<vmem>>, vector<2x8x64xf32>
    tpu.vector_store %arg14[%c0_66, %c0_67, %c0_68], %193 {strides = array<i32>} : memref<2x8x64xf32, #tpu.memory_space<vmem>>, vector<2x8x64xf32>,
    return
  }
  func.func @transform_0(%arg0: i32) -> (i32, i32, i32) {
    %c0_i32 = arith.constant 0 : i32
    %c0_i32_0 = arith.constant 0 : i32
    %c0_i32_1 = arith.constant 0 : i32
    return %arg0, %c0_i32, %c0_i32_0 : i32, i32, i32
  }
  func.func @transform_1(%arg0: i32) -> (i32, i32) {
    %c0_i32 = arith.constant 0 : i32
    %c0_i32_0 = arith.constant 0 : i32
    %c0_i32_1 = arith.constant 0 : i32
    return %c0_i32, %c0_i32_0 : i32, i32
  }
  func.func @transform_2(%arg0: i32) -> (i32, i32) {
    %c0_i32 = arith.constant 0 : i32
    %c0_i32_0 = arith.constant 0 : i32
    %c0_i32_1 = arith.constant 0 : i32
    return %c0_i32, %c0_i32_0 : i32, i32
  }
  func.func @transform_3(%arg0: i32) -> (i32, i32) {
    %c0_i32 = arith.constant 0 : i32
    %c0_i32_0 = arith.constant 0 : i32
    %c0_i32_1 = arith.constant 0 : i32
    return %c0_i32, %c0_i32_0 : i32, i32
  }
  func.func @transform_4(%arg0: i32) -> (i32, i32) {
    %c0_i32 = arith.constant 0 : i32
    %c0_i32_0 = arith.constant 0 : i32
    %c0_i32_1 = arith.constant 0 : i32
    return %c0_i32, %c0_i32_0 : i32, i32
  }
  func.func @transform_5(%arg0: i32) -> (i32, i32) {
    %c0_i32 = arith.constant 0 : i32
    %c0_i32_0 = arith.constant 0 : i32
    %c0_i32_1 = arith.constant 0 : i32
    return %c0_i32, %c0_i32_0 : i32, i32
  }
  func.func @transform_6(%arg0: i32) -> (i32, i32) {
    %c0_i32 = arith.constant 0 : i32
    %c0_i32_0 = arith.constant 0 : i32
    %c0_i32_1 = arith.constant 0 : i32
    return %c0_i32, %c0_i32_0 : i32, i32
  }
  func.func @transform_7(%arg0: i32) -> (i32, i32) {
    %c0_i32 = arith.constant 0 : i32
    %c0_i32_0 = arith.constant 0 : i32
    %c0_i32_1 = arith.constant 0 : i32
    return %c0_i32, %c0_i32_0 : i32, i32
  }
  func.func @transform_8(%arg0: i32) -> (i32, i32) {
    %c0_i32 = arith.constant 0 : i32
    %c0_i32_0 = arith.constant 0 : i32
    %c0_i32_1 = arith.constant 0 : i32
    return %c0_i32, %c0_i32_0 : i32, i32
  }
  func.func @transform_9(%arg0: i32) -> (i32, i32) {
    %c0_i32 = arith.constant 0 : i32
    %c0_i32_0 = arith.constant 0 : i32
    %c0_i32_1 = arith.constant 0 : i32
    return %c0_i32, %c0_i32_0 : i32, i32
  }
  func.func @transform_10(%arg0: i32) -> (i32, i32) {
    %c0_i32 = arith.constant 0 : i32
    %c0_i32_0 = arith.constant 0 : i32
    %c0_i32_1 = arith.constant 0 : i32
    return %c0_i32, %c0_i32_0 : i32, i32
  }
  func.func @transform_11(%arg0: i32) -> (i32, i32) {
    %c0_i32 = arith.constant 0 : i32
    %c0_i32_0 = arith.constant 0 : i32
    %c0_i32_1 = arith.constant 0 : i32
    return %c0_i32, %c0_i32_0 : i32, i32
  }
  func.func @transform_12(%arg0: i32) -> (i32, i32) {
    %c0_i32 = arith.constant 0 : i32
    %c0_i32_0 = arith.constant 0 : i32
    %c0_i32_1 = arith.constant 0 : i32
    return %c0_i32, %c0_i32_0 : i32, i32
  }
  func.func @transform_13(%arg0: i32) -> (i32, i32, i32) {
    %c0_i32 = arith.constant 0 : i32
    %c0_i32_0 = arith.constant 0 : i32
    %c0_i32_1 = arith.constant 0 : i32
    return %arg0, %c0_i32, %c0_i32_0 : i32, i32, i32
  }
}

module attributes {stable_mosaic.version = 11 : i64} {
  func.func @_resblock_kernel(%arg0: i32, %arg1: memref<2x8x64xf32, #tpu.memory_space<vmem>>, %arg2: memref<1x64xf32, #tpu.memory_space<vmem>>, %arg3: memref<1x64xf32, #tpu.memory_space<vmem>>, %arg4: memref<64x192xbf16, #tpu.memory_space<vmem>>, %arg5: memref<1x192xf32, #tpu.memory_space<vmem>>, %arg6: memref<64x64xbf16, #tpu.memory_space<vmem>>, %arg7: memref<1x64xf32, #tpu.memory_space<vmem>>, %arg8: memref<1x64xf32, #tpu.memory_space<vmem>>, %arg9: memref<1x64xf32, #tpu.memory_space<vmem>>, %arg10: memref<64x256xbf16, #tpu.memory_space<vmem>>, %arg11: memref<1x256xf32, #tpu.memory_space<vmem>>, %arg12: memref<256x64xbf16, #tpu.memory_space<vmem>>, %arg13: memref<1x64xf32, #tpu.memory_space<vmem>>, %arg14: memref<2x8x64xf32, #tpu.memory_space<vmem>>, %arg15: memref<16x64xbf16, #tpu.memory_space<vmem>>) attributes {dimension_semantics = [#tpu.dimension_semantics<parallel>], iteration_bounds = array<i64: 1>, scalar_prefetch = 0 : i64, scratch_operands = 1 : i64, tpu.core_type = #tpu.core_type<tc>, window_params = [{transform_indices = @transform_0, window_bounds = array<i64: 2, 8, 64>}, {pipeline_mode = #tpu.pipeline_mode<synchronous>, transform_indices = @transform_1, window_bounds = array<i64: 1, 64>}, {pipeline_mode = #tpu.pipeline_mode<synchronous>, transform_indices = @transform_2, window_bounds = array<i64: 1, 64>}, {pipeline_mode = #tpu.pipeline_mode<synchronous>, transform_indices = @transform_3, window_bounds = array<i64: 64, 192>}, {pipeline_mode = #tpu.pipeline_mode<synchronous>, transform_indices = @transform_4, window_bounds = array<i64: 1, 192>}, {pipeline_mode = #tpu.pipeline_mode<synchronous>, transform_indices = @transform_5, window_bounds = array<i64: 64, 64>}, {pipeline_mode = #tpu.pipeline_mode<synchronous>, transform_indices = @transform_6, window_bounds = array<i64: 1, 64>}, {pipeline_mode = #tpu.pipeline_mode<synchronous>, transform_indices = @transform_7, window_bounds = array<i64: 1, 64>}, {pipeline_mode = #tpu.pipeline_mode<synchronous>, transform_indices = @transform_8, window_bounds = array<i64: 1, 64>}, {pipeline_mode = #tpu.pipeline_mode<synchronous>, transform_indices = @transform_9, window_bounds = array<i64: 64, 256>}, {pipeline_mode = #tpu.pipeline_mode<synchronous>, transform_indices = @transform_10, window_bounds = array<i64: 1, 256>}, {pipeline_mode = #tpu.pipeline_mode<synchronous>, transform_indices = @transform_11, window_bounds = array<i64: 256, 64>}, {pipeline_mode = #tpu.pipeline_mode<synchronous>, transform_indices = @transform_12, window_bounds = array<i64: 1, 64>}, {transform_indices = @transform_13, window_bounds = array<i64: 2, 8, 64>}]} {
    %c0 = arith.constant 0 : index
    %c0_0 = arith.constant 0 : index
    %c0_1 = arith.constant 0 : index
    %0 = vector.load %arg1[%c0, %c0_0, %c0_1] : memref<2x8x64xf32, #tpu.memory_space<vmem>>, vector<2x8x64xf32>
    %1 = vector.shape_cast %0 : vector<2x8x64xf32> to vector<16x64xf32>
    %c0_2 = arith.constant 0 : index
    %c0_3 = arith.constant 0 : index
    %2 = vector.load %arg2[%c0_2, %c0_3] : memref<1x64xf32, #tpu.memory_space<vmem>>, vector<1x64xf32>
    %c0_4 = arith.constant 0 : index
    %c0_5 = arith.constant 0 : index
    %3 = vector.load %arg3[%c0_4, %c0_5] : memref<1x64xf32, #tpu.memory_space<vmem>>, vector<1x64xf32>
    %cst = arith.constant dense<0.000000e+00> : vector<16xf32>
    %4 = vector.multi_reduction <add>, %1, %cst [1] : vector<16x64xf32> to vector<16xf32>
    %5 = vector.shape_cast %4 : vector<16xf32> to vector<16x1xf32>
    %cst_6 = arith.constant 6.400000e+01 : f32
    %6 = vector.broadcast %cst_6 : f32 to vector<16x1xf32>
    %7 = arith.divf %5, %6 : vector<16x1xf32>
    %8 = vector.broadcast %7 : vector<16x1xf32> to vector<16x64xf32>
    %9 = arith.subf %1, %8 : vector<16x64xf32>
    %10 = vector.broadcast %7 : vector<16x1xf32> to vector<16x64xf32>
    %11 = arith.subf %1, %10 : vector<16x64xf32>
    %12 = arith.mulf %9, %11 : vector<16x64xf32>
    %cst_7 = arith.constant dense<0.000000e+00> : vector<16xf32>
    %13 = vector.multi_reduction <add>, %12, %cst_7 [1] : vector<16x64xf32> to vector<16xf32>
    %14 = vector.shape_cast %13 : vector<16xf32> to vector<16x1xf32>
    %cst_8 = arith.constant 6.400000e+01 : f32
    %15 = vector.broadcast %cst_8 : f32 to vector<16x1xf32>
    %16 = arith.divf %14, %15 : vector<16x1xf32>
    %17 = vector.broadcast %7 : vector<16x1xf32> to vector<16x64xf32>
    %18 = arith.subf %1, %17 : vector<16x64xf32>
    %cst_9 = arith.constant 9.99999974E-6 : f32
    %19 = vector.broadcast %cst_9 : f32 to vector<16x1xf32>
    %20 = arith.addf %16, %19 : vector<16x1xf32>
    %21 = math.rsqrt %20 : vector<16x1xf32>
    %22 = vector.broadcast %21 : vector<16x1xf32> to vector<16x64xf32>
    %23 = arith.mulf %18, %22 : vector<16x64xf32>
    %24 = vector.broadcast %2 : vector<1x64xf32> to vector<16x64xf32>
    %25 = arith.mulf %23, %24 : vector<16x64xf32>
    %26 = vector.broadcast %3 : vector<1x64xf32> to vector<16x64xf32>
    %27 = arith.addf %25, %26 : vector<16x64xf32>
    %28 = arith.truncf %27 : vector<16x64xf32> to vector<16x64xbf16>
    %c0_10 = arith.constant 0 : index
    %c0_11 = arith.constant 0 : index
    %29 = vector.load %arg4[%c0_10, %c0_11] : memref<64x192xbf16, #tpu.memory_space<vmem>>, vector<64x192xbf16>
    %cst_12 = arith.constant dense<0.000000e+00> : vector<16x192xf32>
    %30 = tpu.matmul %28, %29, %cst_12 {dimension_numbers = #tpu.dot_dimension_numbers<[1], [0], [0], [1], [0, 0, 1, 1], [], []>} : vector<16x64xbf16>, vector<64x192xbf16>, vector<16x192xf32> -> vector<16x192xf32>
    %c0_13 = arith.constant 0 : index
    %c0_14 = arith.constant 0 : index
    %31 = vector.load %arg5[%c0_13, %c0_14] : memref<1x192xf32, #tpu.memory_space<vmem>>, vector<1x192xf32>
    %32 = vector.broadcast %31 : vector<1x192xf32> to vector<16x192xf32>
    %33 = arith.addf %30, %32 : vector<16x192xf32>
    %34 = vector.extract_strided_slice %33 {offsets = [0, 0], sizes = [16, 16], strides = [1, 1]} : vector<16x192xf32> to vector<16x16xf32>
    %35 = vector.shape_cast %34 : vector<16x16xf32> to vector<2x8x16xf32>
    %36 = arith.truncf %35 : vector<2x8x16xf32> to vector<2x8x16xbf16>
    %37 = vector.extract_strided_slice %33 {offsets = [0, 64], sizes = [16, 16], strides = [1, 1]} : vector<16x192xf32> to vector<16x16xf32>
    %38 = vector.shape_cast %37 : vector<16x16xf32> to vector<2x8x16xf32>
    %39 = arith.truncf %38 : vector<2x8x16xf32> to vector<2x8x16xbf16>
    %40 = vector.extract_strided_slice %33 {offsets = [0, 128], sizes = [16, 16], strides = [1, 1]} : vector<16x192xf32> to vector<16x16xf32>
    %41 = vector.shape_cast %40 : vector<16x16xf32> to vector<2x8x16xf32>
    %42 = arith.truncf %41 : vector<2x8x16xf32> to vector<2x8x16xbf16>
    "tpu.trace_start"() <{level = 10 : i32, message = "bqd,bkd->bqk"}> : () -> ()
    %cst_15 = arith.constant dense<0.000000e+00> : vector<2x8x8xf32>
    %43 = tpu.matmul %36, %39, %cst_15 {dimension_numbers = #tpu.dot_dimension_numbers<[2], [2], [1], [1], [0, 0, 0, 1, 1, 1], [0], [0]>} : vector<2x8x16xbf16>, vector<2x8x16xbf16>, vector<2x8x8xf32> -> vector<2x8x8xf32>
    "tpu.trace_stop"() : () -> ()
    %cst_16 = arith.constant dense<0xFF800000> : vector<2x8xf32>
    %44 = vector.multi_reduction <maximumf>, %43, %cst_16 [2] : vector<2x8x8xf32> to vector<2x8xf32>
    %45 = vector.shape_cast %44 : vector<2x8xf32> to vector<2x8x1xf32>
    %46 = vector.broadcast %45 : vector<2x8x1xf32> to vector<2x8x8xf32>
    %47 = arith.subf %43, %46 : vector<2x8x8xf32>
    %48 = math.exp %47 : vector<2x8x8xf32>
    %cst_17 = arith.constant dense<0.000000e+00> : vector<2x8xf32>
    %49 = vector.multi_reduction <add>, %48, %cst_17 [2] : vector<2x8x8xf32> to vector<2x8xf32>
    %50 = vector.shape_cast %49 : vector<2x8xf32> to vector<2x8x1xf32>
    %51 = tpu.reciprocal %50 {approx = true} : vector<2x8x1xf32> -> vector<2x8x1xf32>
    %52 = vector.broadcast %51 : vector<2x8x1xf32> to vector<2x8x8xf32>
    %53 = arith.mulf %48, %52 : vector<2x8x8xf32>
    %54 = arith.truncf %53 : vector<2x8x8xf32> to vector<2x8x8xbf16>
    "tpu.trace_start"() <{level = 10 : i32, message = "bqk,bkd->bqd"}> : () -> ()
    %cst_18 = arith.constant dense<0.000000e+00> : vector<2x8x16xf32>
    %55 = tpu.matmul %54, %42, %cst_18 {dimension_numbers = #tpu.dot_dimension_numbers<[2], [1], [1], [2], [0, 0, 0, 1, 1, 2], [0], [0]>} : vector<2x8x8xbf16>, vector<2x8x16xbf16>, vector<2x8x16xf32> -> vector<2x8x16xf32>
    "tpu.trace_stop"() : () -> ()
    %56 = vector.shape_cast %55 : vector<2x8x16xf32> to vector<16x16xf32>
    %57 = arith.truncf %56 : vector<16x16xf32> to vector<16x16xbf16>
    %c0_19 = arith.constant 0 : index
    %c0_20 = arith.constant 0 : index
    %58 = vector.load %arg15[%c0_19, %c0_20] : memref<16x64xbf16, #tpu.memory_space<vmem>>, vector<16x16xbf16>
    tpu.vector_store %arg15[%c0_19, %c0_20], %57 {strides = array<i32>} : memref<16x64xbf16, #tpu.memory_space<vmem>>, vector<16x16xbf16>,
    %59 = vector.extract_strided_slice %33 {offsets = [0, 16], sizes = [16, 16], strides = [1, 1]} : vector<16x192xf32> to vector<16x16xf32>
    %60 = vector.shape_cast %59 : vector<16x16xf32> to vector<2x8x16xf32>
    %61 = arith.truncf %60 : vector<2x8x16xf32> to vector<2x8x16xbf16>
    %62 = vector.extract_strided_slice %33 {offsets = [0, 80], sizes = [16, 16], strides = [1, 1]} : vector<16x192xf32> to vector<16x16xf32>
    %63 = vector.shape_cast %62 : vector<16x16xf32> to vector<2x8x16xf32>
    %64 = arith.truncf %63 : vector<2x8x16xf32> to vector<2x8x16xbf16>
    %65 = vector.extract_strided_slice %33 {offsets = [0, 144], sizes = [16, 16], strides = [1, 1]} : vector<16x192xf32> to vector<16x16xf32>
    %66 = vector.shape_cast %65 : vector<16x16xf32> to vector<2x8x16xf32>
    %67 = arith.truncf %66 : vector<2x8x16xf32> to vector<2x8x16xbf16>
    "tpu.trace_start"() <{level = 10 : i32, message = "bqd,bkd->bqk"}> : () -> ()
    %cst_21 = arith.constant dense<0.000000e+00> : vector<2x8x8xf32>
    %68 = tpu.matmul %61, %64, %cst_21 {dimension_numbers = #tpu.dot_dimension_numbers<[2], [2], [1], [1], [0, 0, 0, 1, 1, 1], [0], [0]>} : vector<2x8x16xbf16>, vector<2x8x16xbf16>, vector<2x8x8xf32> -> vector<2x8x8xf32>
    "tpu.trace_stop"() : () -> ()
    %cst_22 = arith.constant dense<0xFF800000> : vector<2x8xf32>
    %69 = vector.multi_reduction <maximumf>, %68, %cst_22 [2] : vector<2x8x8xf32> to vector<2x8xf32>
    %70 = vector.shape_cast %69 : vector<2x8xf32> to vector<2x8x1xf32>
    %71 = vector.broadcast %70 : vector<2x8x1xf32> to vector<2x8x8xf32>
    %72 = arith.subf %68, %71 : vector<2x8x8xf32>
    %73 = math.exp %72 : vector<2x8x8xf32>
    %cst_23 = arith.constant dense<0.000000e+00> : vector<2x8xf32>
    %74 = vector.multi_reduction <add>, %73, %cst_23 [2] : vector<2x8x8xf32> to vector<2x8xf32>
    %75 = vector.shape_cast %74 : vector<2x8xf32> to vector<2x8x1xf32>
    %76 = tpu.reciprocal %75 {approx = true} : vector<2x8x1xf32> -> vector<2x8x1xf32>
    %77 = vector.broadcast %76 : vector<2x8x1xf32> to vector<2x8x8xf32>
    %78 = arith.mulf %73, %77 : vector<2x8x8xf32>
    %79 = arith.truncf %78 : vector<2x8x8xf32> to vector<2x8x8xbf16>
    "tpu.trace_start"() <{level = 10 : i32, message = "bqk,bkd->bqd"}> : () -> ()
    %cst_24 = arith.constant dense<0.000000e+00> : vector<2x8x16xf32>
    %80 = tpu.matmul %79, %67, %cst_24 {dimension_numbers = #tpu.dot_dimension_numbers<[2], [1], [1], [2], [0, 0, 0, 1, 1, 2], [0], [0]>} : vector<2x8x8xbf16>, vector<2x8x16xbf16>, vector<2x8x16xf32> -> vector<2x8x16xf32>
    "tpu.trace_stop"() : () -> ()
    %81 = vector.shape_cast %80 : vector<2x8x16xf32> to vector<16x16xf32>
    %82 = arith.truncf %81 : vector<16x16xf32> to vector<16x16xbf16>
    %c0_25 = arith.constant 0 : index
    %c16 = arith.constant 16 : index
    %83 = vector.load %arg15[%c0_25, %c16] : memref<16x64xbf16, #tpu.memory_space<vmem>>, vector<16x16xbf16>
    tpu.vector_store %arg15[%c0_25, %c16], %82 {strides = array<i32>} : memref<16x64xbf16, #tpu.memory_space<vmem>>, vector<16x16xbf16>,
    %84 = vector.extract_strided_slice %33 {offsets = [0, 32], sizes = [16, 16], strides = [1, 1]} : vector<16x192xf32> to vector<16x16xf32>
    %85 = vector.shape_cast %84 : vector<16x16xf32> to vector<2x8x16xf32>
    %86 = arith.truncf %85 : vector<2x8x16xf32> to vector<2x8x16xbf16>
    %87 = vector.extract_strided_slice %33 {offsets = [0, 96], sizes = [16, 16], strides = [1, 1]} : vector<16x192xf32> to vector<16x16xf32>
    %88 = vector.shape_cast %87 : vector<16x16xf32> to vector<2x8x16xf32>
    %89 = arith.truncf %88 : vector<2x8x16xf32> to vector<2x8x16xbf16>
    %90 = vector.extract_strided_slice %33 {offsets = [0, 160], sizes = [16, 16], strides = [1, 1]} : vector<16x192xf32> to vector<16x16xf32>
    %91 = vector.shape_cast %90 : vector<16x16xf32> to vector<2x8x16xf32>
    %92 = arith.truncf %91 : vector<2x8x16xf32> to vector<2x8x16xbf16>
    "tpu.trace_start"() <{level = 10 : i32, message = "bqd,bkd->bqk"}> : () -> ()
    %cst_26 = arith.constant dense<0.000000e+00> : vector<2x8x8xf32>
    %93 = tpu.matmul %86, %89, %cst_26 {dimension_numbers = #tpu.dot_dimension_numbers<[2], [2], [1], [1], [0, 0, 0, 1, 1, 1], [0], [0]>} : vector<2x8x16xbf16>, vector<2x8x16xbf16>, vector<2x8x8xf32> -> vector<2x8x8xf32>
    "tpu.trace_stop"() : () -> ()
    %cst_27 = arith.constant dense<0xFF800000> : vector<2x8xf32>
    %94 = vector.multi_reduction <maximumf>, %93, %cst_27 [2] : vector<2x8x8xf32> to vector<2x8xf32>
    %95 = vector.shape_cast %94 : vector<2x8xf32> to vector<2x8x1xf32>
    %96 = vector.broadcast %95 : vector<2x8x1xf32> to vector<2x8x8xf32>
    %97 = arith.subf %93, %96 : vector<2x8x8xf32>
    %98 = math.exp %97 : vector<2x8x8xf32>
    %cst_28 = arith.constant dense<0.000000e+00> : vector<2x8xf32>
    %99 = vector.multi_reduction <add>, %98, %cst_28 [2] : vector<2x8x8xf32> to vector<2x8xf32>
    %100 = vector.shape_cast %99 : vector<2x8xf32> to vector<2x8x1xf32>
    %101 = tpu.reciprocal %100 {approx = true} : vector<2x8x1xf32> -> vector<2x8x1xf32>
    %102 = vector.broadcast %101 : vector<2x8x1xf32> to vector<2x8x8xf32>
    %103 = arith.mulf %98, %102 : vector<2x8x8xf32>
    %104 = arith.truncf %103 : vector<2x8x8xf32> to vector<2x8x8xbf16>
    "tpu.trace_start"() <{level = 10 : i32, message = "bqk,bkd->bqd"}> : () -> ()
    %cst_29 = arith.constant dense<0.000000e+00> : vector<2x8x16xf32>
    %105 = tpu.matmul %104, %92, %cst_29 {dimension_numbers = #tpu.dot_dimension_numbers<[2], [1], [1], [2], [0, 0, 0, 1, 1, 2], [0], [0]>} : vector<2x8x8xbf16>, vector<2x8x16xbf16>, vector<2x8x16xf32> -> vector<2x8x16xf32>
    "tpu.trace_stop"() : () -> ()
    %106 = vector.shape_cast %105 : vector<2x8x16xf32> to vector<16x16xf32>
    %107 = arith.truncf %106 : vector<16x16xf32> to vector<16x16xbf16>
    %c0_30 = arith.constant 0 : index
    %c32 = arith.constant 32 : index
    %108 = vector.load %arg15[%c0_30, %c32] : memref<16x64xbf16, #tpu.memory_space<vmem>>, vector<16x16xbf16>
    tpu.vector_store %arg15[%c0_30, %c32], %107 {strides = array<i32>} : memref<16x64xbf16, #tpu.memory_space<vmem>>, vector<16x16xbf16>,
    %109 = vector.extract_strided_slice %33 {offsets = [0, 48], sizes = [16, 16], strides = [1, 1]} : vector<16x192xf32> to vector<16x16xf32>
    %110 = vector.shape_cast %109 : vector<16x16xf32> to vector<2x8x16xf32>
    %111 = arith.truncf %110 : vector<2x8x16xf32> to vector<2x8x16xbf16>
    %112 = vector.extract_strided_slice %33 {offsets = [0, 112], sizes = [16, 16], strides = [1, 1]} : vector<16x192xf32> to vector<16x16xf32>
    %113 = vector.shape_cast %112 : vector<16x16xf32> to vector<2x8x16xf32>
    %114 = arith.truncf %113 : vector<2x8x16xf32> to vector<2x8x16xbf16>
    %115 = vector.extract_strided_slice %33 {offsets = [0, 176], sizes = [16, 16], strides = [1, 1]} : vector<16x192xf32> to vector<16x16xf32>
    %116 = vector.shape_cast %115 : vector<16x16xf32> to vector<2x8x16xf32>
    %117 = arith.truncf %116 : vector<2x8x16xf32> to vector<2x8x16xbf16>
    "tpu.trace_start"() <{level = 10 : i32, message = "bqd,bkd->bqk"}> : () -> ()
    %cst_31 = arith.constant dense<0.000000e+00> : vector<2x8x8xf32>
    %118 = tpu.matmul %111, %114, %cst_31 {dimension_numbers = #tpu.dot_dimension_numbers<[2], [2], [1], [1], [0, 0, 0, 1, 1, 1], [0], [0]>} : vector<2x8x16xbf16>, vector<2x8x16xbf16>, vector<2x8x8xf32> -> vector<2x8x8xf32>
    "tpu.trace_stop"() : () -> ()
    %cst_32 = arith.constant dense<0xFF800000> : vector<2x8xf32>
    %119 = vector.multi_reduction <maximumf>, %118, %cst_32 [2] : vector<2x8x8xf32> to vector<2x8xf32>
    %120 = vector.shape_cast %119 : vector<2x8xf32> to vector<2x8x1xf32>
    %121 = vector.broadcast %120 : vector<2x8x1xf32> to vector<2x8x8xf32>
    %122 = arith.subf %118, %121 : vector<2x8x8xf32>
    %123 = math.exp %122 : vector<2x8x8xf32>
    %cst_33 = arith.constant dense<0.000000e+00> : vector<2x8xf32>
    %124 = vector.multi_reduction <add>, %123, %cst_33 [2] : vector<2x8x8xf32> to vector<2x8xf32>
    %125 = vector.shape_cast %124 : vector<2x8xf32> to vector<2x8x1xf32>
    %126 = tpu.reciprocal %125 {approx = true} : vector<2x8x1xf32> -> vector<2x8x1xf32>
    %127 = vector.broadcast %126 : vector<2x8x1xf32> to vector<2x8x8xf32>
    %128 = arith.mulf %123, %127 : vector<2x8x8xf32>
    %129 = arith.truncf %128 : vector<2x8x8xf32> to vector<2x8x8xbf16>
    "tpu.trace_start"() <{level = 10 : i32, message = "bqk,bkd->bqd"}> : () -> ()
    %cst_34 = arith.constant dense<0.000000e+00> : vector<2x8x16xf32>
    %130 = tpu.matmul %129, %117, %cst_34 {dimension_numbers = #tpu.dot_dimension_numbers<[2], [1], [1], [2], [0, 0, 0, 1, 1, 2], [0], [0]>} : vector<2x8x8xbf16>, vector<2x8x16xbf16>, vector<2x8x16xf32> -> vector<2x8x16xf32>
    "tpu.trace_stop"() : () -> ()
    %131 = vector.shape_cast %130 : vector<2x8x16xf32> to vector<16x16xf32>
    %132 = arith.truncf %131 : vector<16x16xf32> to vector<16x16xbf16>
    %c0_35 = arith.constant 0 : index
    %c48 = arith.constant 48 : index
    %133 = vector.load %arg15[%c0_35, %c48] : memref<16x64xbf16, #tpu.memory_space<vmem>>, vector<16x16xbf16>
    tpu.vector_store %arg15[%c0_35, %c48], %132 {strides = array<i32>} : memref<16x64xbf16, #tpu.memory_space<vmem>>, vector<16x16xbf16>,
    %c0_36 = arith.constant 0 : index
    %c0_37 = arith.constant 0 : index
    %134 = vector.load %arg15[%c0_36, %c0_37] : memref<16x64xbf16, #tpu.memory_space<vmem>>, vector<16x64xbf16>
    %c0_38 = arith.constant 0 : index
    %c0_39 = arith.constant 0 : index
    %135 = vector.load %arg6[%c0_38, %c0_39] : memref<64x64xbf16, #tpu.memory_space<vmem>>, vector<64x64xbf16>
    %cst_40 = arith.constant dense<0.000000e+00> : vector<16x64xf32>
    %136 = tpu.matmul %134, %135, %cst_40 {dimension_numbers = #tpu.dot_dimension_numbers<[1], [0], [0], [1], [0, 0, 1, 1], [], []>} : vector<16x64xbf16>, vector<64x64xbf16>, vector<16x64xf32> -> vector<16x64xf32>
    %c0_41 = arith.constant 0 : index
    %c0_42 = arith.constant 0 : index
    %137 = vector.load %arg7[%c0_41, %c0_42] : memref<1x64xf32, #tpu.memory_space<vmem>>, vector<1x64xf32>
    %138 = vector.broadcast %137 : vector<1x64xf32> to vector<16x64xf32>
    %139 = arith.addf %136, %138 : vector<16x64xf32>
    %140 = arith.addf %1, %139 : vector<16x64xf32>
    %c0_43 = arith.constant 0 : index
    %c0_44 = arith.constant 0 : index
    %141 = vector.load %arg8[%c0_43, %c0_44] : memref<1x64xf32, #tpu.memory_space<vmem>>, vector<1x64xf32>
    %c0_45 = arith.constant 0 : index
    %c0_46 = arith.constant 0 : index
    %142 = vector.load %arg9[%c0_45, %c0_46] : memref<1x64xf32, #tpu.memory_space<vmem>>, vector<1x64xf32>
    %cst_47 = arith.constant dense<0.000000e+00> : vector<16xf32>
    %143 = vector.multi_reduction <add>, %140, %cst_47 [1] : vector<16x64xf32> to vector<16xf32>
    %144 = vector.shape_cast %143 : vector<16xf32> to vector<16x1xf32>
    %cst_48 = arith.constant 6.400000e+01 : f32
    %145 = vector.broadcast %cst_48 : f32 to vector<16x1xf32>
    %146 = arith.divf %144, %145 : vector<16x1xf32>
    %147 = vector.broadcast %146 : vector<16x1xf32> to vector<16x64xf32>
    %148 = arith.subf %140, %147 : vector<16x64xf32>
    %149 = vector.broadcast %146 : vector<16x1xf32> to vector<16x64xf32>
    %150 = arith.subf %140, %149 : vector<16x64xf32>
    %151 = arith.mulf %148, %150 : vector<16x64xf32>
    %cst_49 = arith.constant dense<0.000000e+00> : vector<16xf32>
    %152 = vector.multi_reduction <add>, %151, %cst_49 [1] : vector<16x64xf32> to vector<16xf32>
    %153 = vector.shape_cast %152 : vector<16xf32> to vector<16x1xf32>
    %cst_50 = arith.constant 6.400000e+01 : f32
    %154 = vector.broadcast %cst_50 : f32 to vector<16x1xf32>
    %155 = arith.divf %153, %154 : vector<16x1xf32>
    %156 = vector.broadcast %146 : vector<16x1xf32> to vector<16x64xf32>
    %157 = arith.subf %140, %156 : vector<16x64xf32>
    %cst_51 = arith.constant 9.99999974E-6 : f32
    %158 = vector.broadcast %cst_51 : f32 to vector<16x1xf32>
    %159 = arith.addf %155, %158 : vector<16x1xf32>
    %160 = math.rsqrt %159 : vector<16x1xf32>
    %161 = vector.broadcast %160 : vector<16x1xf32> to vector<16x64xf32>
    %162 = arith.mulf %157, %161 : vector<16x64xf32>
    %163 = vector.broadcast %141 : vector<1x64xf32> to vector<16x64xf32>
    %164 = arith.mulf %162, %163 : vector<16x64xf32>
    %165 = vector.broadcast %142 : vector<1x64xf32> to vector<16x64xf32>
    %166 = arith.addf %164, %165 : vector<16x64xf32>
    %167 = arith.truncf %166 : vector<16x64xf32> to vector<16x64xbf16>
    %c0_52 = arith.constant 0 : index
    %c0_53 = arith.constant 0 : index
    %168 = vector.load %arg10[%c0_52, %c0_53] : memref<64x256xbf16, #tpu.memory_space<vmem>>, vector<64x256xbf16>
    %cst_54 = arith.constant dense<0.000000e+00> : vector<16x256xf32>
    %169 = tpu.matmul %167, %168, %cst_54 {dimension_numbers = #tpu.dot_dimension_numbers<[1], [0], [0], [1], [0, 0, 1, 1], [], []>} : vector<16x64xbf16>, vector<64x256xbf16>, vector<16x256xf32> -> vector<16x256xf32>
    %c0_55 = arith.constant 0 : index
    %c0_56 = arith.constant 0 : index
    %170 = vector.load %arg11[%c0_55, %c0_56] : memref<1x256xf32, #tpu.memory_space<vmem>>, vector<1x256xf32>
    %171 = vector.broadcast %170 : vector<1x256xf32> to vector<16x256xf32>
    %172 = arith.addf %169, %171 : vector<16x256xf32>
    %cst_57 = arith.constant 5.000000e-01 : f32
    %173 = vector.broadcast %cst_57 : f32 to vector<16x256xf32>
    %174 = arith.mulf %173, %172 : vector<16x256xf32>
    %cst_58 = arith.constant 4.471500e-02 : f32
    %175 = vector.broadcast %cst_58 : f32 to vector<16x256xf32>
    %176 = arith.mulf %175, %172 : vector<16x256xf32>
    %177 = arith.mulf %176, %172 : vector<16x256xf32>
    %178 = arith.mulf %177, %172 : vector<16x256xf32>
    %179 = arith.addf %172, %178 : vector<16x256xf32>
    %cst_59 = arith.constant 0.797884583 : f32
    %180 = vector.broadcast %cst_59 : f32 to vector<16x256xf32>
    %181 = arith.mulf %180, %179 : vector<16x256xf32>
    %182 = math.tanh %181 : vector<16x256xf32>
    %cst_60 = arith.constant 1.000000e+00 : f32
    %183 = vector.broadcast %cst_60 : f32 to vector<16x256xf32>
    %184 = arith.addf %183, %182 : vector<16x256xf32>
    %185 = arith.mulf %174, %184 : vector<16x256xf32>
    %186 = arith.truncf %185 : vector<16x256xf32> to vector<16x256xbf16>
    %c0_61 = arith.constant 0 : index
    %c0_62 = arith.constant 0 : index
    %187 = vector.load %arg12[%c0_61, %c0_62] : memref<256x64xbf16, #tpu.memory_space<vmem>>, vector<256x64xbf16>
    %cst_63 = arith.constant dense<0.000000e+00> : vector<16x64xf32>
    %188 = tpu.matmul %186, %187, %cst_63 {dimension_numbers = #tpu.dot_dimension_numbers<[1], [0], [0], [1], [0, 0, 1, 1], [], []>} : vector<16x256xbf16>, vector<256x64xbf16>, vector<16x64xf32> -> vector<16x64xf32>
    %c0_64 = arith.constant 0 : index
    %c0_65 = arith.constant 0 : index
    %189 = vector.load %arg13[%c0_64, %c0_65] : memref<1x64xf32, #tpu.memory_space<vmem>>, vector<1x64xf32>
    %190 = vector.broadcast %189 : vector<1x64xf32> to vector<16x64xf32>
    %191 = arith.addf %188, %190 : vector<16x64xf32>
    %192 = arith.addf %140, %191 : vector<16x64xf32>
    %193 = vector.shape_cast %192 : vector<16x64xf32> to vector<2x8x64xf32>
    %c0_66 = arith.constant 0 : index
    %c0_67 = arith.constant 0 : index
    %c0_68 = arith.constant 0 : index
    %194 = vector.load %arg14[%c0_66, %c0_67, %c0_68] : memref<2x8x64xf32, #tpu.memory_space<vmem>>, vector<2x8x64xf32>
    tpu.vector_store %arg14[%c0_66, %c0_67, %c0_68], %193 {strides = array<i32>} : memref<2x8x64xf32, #tpu.memory_space<vmem>>, vector<2x8x64xf32>,
    return
  }
  func.func @transform_0(%arg0: i32) -> (i32, i32, i32) {
    %c0_i32 = arith.constant 0 : i32
    %c0_i32_0 = arith.constant 0 : i32
    %c0_i32_1 = arith.constant 0 : i32
    return %arg0, %c0_i32, %c0_i32_0 : i32, i32, i32
  }
  func.func @transform_1(%arg0: i32) -> (i32, i32) {
    %c0_i32 = arith.constant 0 : i32
    %c0_i32_0 = arith.constant 0 : i32
    %c0_i32_1 = arith.constant 0 : i32
    return %c0_i32, %c0_i32_0 : i32, i32
  }
  func.func @transform_2(%arg0: i32) -> (i32, i32) {
    %c0_i32 = arith.constant 0 : i32
    %c0_i32_0 = arith.constant 0 : i32
    %c0_i32_1 = arith.constant 0 : i32
    return %c0_i32, %c0_i32_0 : i32, i32
  }
  func.func @transform_3(%arg0: i32) -> (i32, i32) {
    %c0_i32 = arith.constant 0 : i32
    %c0_i32_0 = arith.constant 0 : i32
    %c0_i32_1 = arith.constant 0 : i32
    return %c0_i32, %c0_i32_0 : i32, i32
  }
  func.func @transform_4(%arg0: i32) -> (i32, i32) {
    %c0_i32 = arith.constant 0 : i32
    %c0_i32_0 = arith.constant 0 : i32
    %c0_i32_1 = arith.constant 0 : i32
    return %c0_i32, %c0_i32_0 : i32, i32
  }
  func.func @transform_5(%arg0: i32) -> (i32, i32) {
    %c0_i32 = arith.constant 0 : i32
    %c0_i32_0 = arith.constant 0 : i32
    %c0_i32_1 = arith.constant 0 : i32
    return %c0_i32, %c0_i32_0 : i32, i32
  }
  func.func @transform_6(%arg0: i32) -> (i32, i32) {
    %c0_i32 = arith.constant 0 : i32
    %c0_i32_0 = arith.constant 0 : i32
    %c0_i32_1 = arith.constant 0 : i32
    return %c0_i32, %c0_i32_0 : i32, i32
  }
  func.func @transform_7(%arg0: i32) -> (i32, i32) {
    %c0_i32 = arith.constant 0 : i32
    %c0_i32_0 = arith.constant 0 : i32
    %c0_i32_1 = arith.constant 0 : i32
    return %c0_i32, %c0_i32_0 : i32, i32
  }
  func.func @transform_8(%arg0: i32) -> (i32, i32) {
    %c0_i32 = arith.constant 0 : i32
    %c0_i32_0 = arith.constant 0 : i32
    %c0_i32_1 = arith.constant 0 : i32
    return %c0_i32, %c0_i32_0 : i32, i32
  }
  func.func @transform_9(%arg0: i32) -> (i32, i32) {
    %c0_i32 = arith.constant 0 : i32
    %c0_i32_0 = arith.constant 0 : i32
    %c0_i32_1 = arith.constant 0 : i32
    return %c0_i32, %c0_i32_0 : i32, i32
  }
  func.func @transform_10(%arg0: i32) -> (i32, i32) {
    %c0_i32 = arith.constant 0 : i32
    %c0_i32_0 = arith.constant 0 : i32
    %c0_i32_1 = arith.constant 0 : i32
    return %c0_i32, %c0_i32_0 : i32, i32
  }
  func.func @transform_11(%arg0: i32) -> (i32, i32) {
    %c0_i32 = arith.constant 0 : i32
    %c0_i32_0 = arith.constant 0 : i32
    %c0_i32_1 = arith.constant 0 : i32
    return %c0_i32, %c0_i32_0 : i32, i32
  }
  func.func @transform_12(%arg0: i32) -> (i32, i32) {
    %c0_i32 = arith.constant 0 : i32
    %c0_i32_0 = arith.constant 0 : i32
    %c0_i32_1 = arith.constant 0 : i32
    return %c0_i32, %c0_i32_0 : i32, i32
  }
  func.func @transform_13(%arg0: i32) -> (i32, i32, i32) {
    %c0_i32 = arith.constant 0 : i32
    %c0_i32_0 = arith.constant 0 : i32
    %c0_i32_1 = arith.constant 0 : i32
    return %arg0, %c0_i32, %c0_i32_0 : i32, i32, i32
  }
}

</mosaic_0001>

<bundles_post_ra>
// kernel: tpu_custom_call.1
= control target key start
LH: loop header
LB: loop body
LE: loop exit
PB: predicated region body
PF: predicated region fallthrough
CT: control target
= control target key end

     0   :  { %vm50_vm0 = vcmask 523264   ;;  %s2380_s0 = inlined_call_operand.vmem [shape: f32[2,8,64], index: 0, kind: input, shape index: {}]   ;;  %s2381_s1 = inlined_call_operand.vmem [shape: f32[1,64], index: 1, kind: input, shape index: {}]   ;;  %s2382_s2 = inlined_call_operand.vmem [shape: f32[1,64], index: 2, kind: input, shape index: {}]   ;;  %s2383_s3 = inlined_call_operand.vmem [shape: bf16[64,192], index: 3, kind: input, shape index: {}]   ;;  %s2384_s4 = inlined_call_operand.vmem [shape: f32[1,192], index: 4, kind: input, shape index: {}]   ;;  %s2385_s5 = inlined_call_operand.vmem [shape: bf16[64,64], index: 5, kind: input, shape index: {}]   ;;  %s2386_s6 = inlined_call_operand.vmem [shape: f32[1,64], index: 6, kind: input, shape index: {}]   ;;  %s2387_s7 = inlined_call_operand.vmem [shape: f32[1,64], index: 7, kind: input, shape index: {}]   ;;  %s2388_s8 = inlined_call_operand.vmem [shape: f32[1,64], index: 8, kind: input, shape index: {}]   ;;  %s2389_s9 = inlined_call_operand.vmem [shape: bf16[64,256], index: 9, kind: input, shape index: {}]   ;;  %s2390_s10 = inlined_call_operand.vmem [shape: f32[1,256], index: 10, kind: input, shape index: {}]   ;;  %s2391_s11 = inlined_call_operand.vmem [shape: bf16[256,64], index: 11, kind: input, shape index: {}]   ;;  %s2392_s12 = inlined_call_operand.vmem [shape: f32[1,64], index: 12, kind: input, shape index: {}]   ;;  %s2393_s13 = inlined_call_operand.hbm [shape: f32[2,8,64], index: 13, kind: output, shape index: {}]  }
   0x1   :  { %v2021_v0 = vld [vmem:[%s2380_s0] sm:$0xff]  ;;  %v2026_v1 = vld [vmem:[%s2380_s0 + $0x8] sm:$0xff] }
   0x2   :  { %v51_v2 = vsel %vm50_vm0, %v2021_v0, 0.0  ;;  %v54_v3 = vsel %vm50_vm0, %v2026_v1, 0.0 }
   0x3   :  { %52 = vadd.xlane.f32.xlu0 %v51_v2 }
   0x7   :  { %55 = vadd.xlane.f32.xlu0 %v54_v3 }
   0x8   :  { %18 = vsyncpa [#allocation4], 0  ;;  %v1819_v14 = vld [vmem:[%s2383_s3 + $0x4] ss:$8 sps:$4 sm:$0xff]   ;;  %v1821_v15 = vld [vmem:[%s2383_s3] ss:$8 sps:$4 sm:$0xff]   ;;  %v105_v41 = vlaneseq }
   0x9   :  { %158 = vmatprep.subr.bf16.mxu1 %v1819_v14  ;;  %v1822_v16 = vld [vmem:[%s2383_s3 + $0x14] ss:$8 sps:$4 sm:$0xff]   ;;  %v1824_v17 = vld [vmem:[%s2383_s3 + $0x10] ss:$8 sps:$4 sm:$0xff]   ;;  %v1825_v18 = vld [vmem:[%s2383_s3 + $0x24] ss:$8 sps:$4 sm:$0xff]  }
   0xa   :  { %159 = vmatpush1.bf16.msra.mxu1 %v1821_v15  ;;  %v1827_v19 = vld [vmem:[%s2383_s3 + $0x20] ss:$8 sps:$4 sm:$0xff]   ;;  %v1828_v20 = vld [vmem:[%s2383_s3 + $0x34] ss:$8 sps:$4 sm:$0xff]   ;;  %v1830_v21 = vld [vmem:[%s2383_s3 + $0x30] ss:$8 sps:$4 sm:$0xff]  }
   0xb   :  { %160 = vmatprep.subr.bf16.mxu1 %v1822_v16  ;;  %v1935_v22 = vmov 0   ;;  %v1578_v31 = vld [vmem:[%s2381_s1] ss:$0 sm:$0xff]  ;;  %v1936_v40 = vmov 0.0   ;;  %v2070_v42 = vshrl.u32 %v105_v41, 7  ;;  %vm1937_vm1 = vmmov 0  }
   0xc   :  { %190 = vmatprep.mubr.bf16.mxu1 %v1935_v22  ;;  %v1579_v35 = vld [vmem:[%s2382_s2] ss:$0 sm:$0xff]  ;;  %1710 = vmatprep.subr.bf16.mxu0 %v1936_v40  ;;  %vm332_vm2 = vcmask 1043456   ;;  %s1938_s2 = smov 64   ;;  %vm208_vm3 = vcmask 130048   ;;  %vm304_vm4 = vcmask 64512  }
   0xd   :  { %v107_v43 = vsub.s32 0, %v2070_v42  ;;  %v103_v44 = vld [vmem:[%s2384_s4] sm:$0x3]  ;;  %v111_v45 = vsub.s32 1, %v2070_v42  ;;  %1712 = vmatprep.mubr.msk.bf16.mxu0 %vm1937_vm1, %v1936_v40  ;;  %s1939_s4 = smov 48   ;;  %s1940_s30 = smov 112  }
   0xe   :  { %161 = vmatpush1.bf16.msra.mxu1 %v1824_v17  ;;  %s1941_s14 = smov 32   ;;  %s1942_s15 = smov 96   ;;  %vm651_vm5 = vcmask 261248   ;;  %vm878_vm6 = vcmask 392448   ;;  %vm1105_vm7 = vcmask 523648  }
   0xf   :  { %162 = vmatprep.subr.bf16.mxu1 %v1825_v18  ;;  %v108_v46 = vrot.slane %v103_v44, %v107_v43  ;;  %v112_v47 = vrot.slane %v103_v44, %v111_v45  ;;  %s1943_s16 = smov 16   ;;  %s1944_s17 = smov 80  }
  0x12   :  { %163 = vmatpush1.bf16.msra.mxu1 %v1827_v19 }
  0x13   :  { %164 = vmatprep.subr.bf16.mxu1 %v1828_v20 }
  0x16   :  { %165 = vmatpush1.bf16.msra.mxu1 %v1830_v21 }
  0x17   :  { %1698 = vmatprep.subr.bf16.mxu1 %v1936_v40 }
  0x90   :  { %v53_v4 = vpop.xlane.xlu0 %52 }
  0x91   :  { %v58_v5 = vmul.f32 0.015625, %v53_v4 }
  0x93   :  { %v60_v6 = vsub.f32 %v2021_v0, %v58_v5 }
  0x94   :  { %v56_v7 = vpop.xlane.xlu0 %55 }
  0x95   :  { %v59_v8 = vmul.f32 0.015625, %v56_v7  ;;  %v62_v9 = vmul.f32 %v60_v6, %v60_v6 }
  0x97   :  { %v61_v10 = vsub.f32 %v2026_v1, %v59_v8  ;;  %v64_v11 = vsel %vm50_vm0, %v62_v9, 0.0 }
  0x98   :  { %65 = vadd.xlane.f32.xlu1 %v64_v11 }
  0x99   :  { %v63_v12 = vmul.f32 %v61_v10, %v61_v10 }
  0x9b   :  { %v67_v13 = vsel %vm50_vm0, %v63_v12, 0.0 }
  0x9c   :  { %68 = vadd.xlane.f32.xlu1 %v67_v13 }
 0x125   :  { %v66_v23 = vpop.xlane.xlu1 %65 }
 0x126   :  { %v70_v24 = vmul.f32 0.015625, %v66_v23 }
 0x128   :  { %v72_v25 = vadd.f32 1e-05, %v70_v24 }
 0x129   :  { %v69_v26 = vpop.xlane.xlu1 %68 }
 0x12a   :  { %1863 = vrsqrt.f32 %v72_v25  ;;  %v71_v27 = vmul.f32 0.015625, %v69_v26 }
 0x12c   :  { %v73_v28 = vadd.f32 1e-05, %v71_v27 }
 0x12e   :  { %1865 = vrsqrt.f32 %v73_v28 }
 0x134   :  { %v1864_v29 = vpop.eup %1863 }
 0x135   :  { %v76_v30 = vmul.f32 %v1864_v29, %v60_v6 }
 0x137   :  { %v84_v34 = vmul.f32 %v1578_v31, %v76_v30 }
 0x138   :  { %v1866_v32 = vpop.eup %1865 }
 0x139   :  { %v77_v33 = vmul.f32 %v1866_v32, %v61_v10  ;;  %v92_v37 = vadd.f32 %v1579_v35, %v84_v34 }
 0x13b   :  { %v85_v36 = vmul.f32 %v1578_v31, %v77_v33 }
 0x13d   :  { %v93_v38 = vadd.f32 %v1579_v35, %v85_v36 }
 0x13f   :  { %v94_v39 = vpack.c.bf16 %v93_v38, %v92_v37 }
 0x141   :  { %1588 = vmatmul.mubr.msk.bf16.vlgmr.msra.gmra.mrb[0].mxu1 %vm50_vm0, %v94_v39 }
 0x142   :  { %1700 = vmatprep.mubr.msk.bf16.mxu1 %vm1937_vm1, %v1936_v40 }
 0x214   :  { %v192_v48 = vpop.f32.mrb[0].mxu1 }
 0x215   :  { %v193_v49 = vadd.f32 %v192_v48, %v108_v46  ;;  %v194_v50 = vpop.f32.mrb[1].mxu1 }
 0x216   :  { %v195_v51 = vadd.f32 %v194_v50, %v112_v47  ;;  %v196_v52 = vpop.f32.mrb[2].mxu1 }
 0x217   :  { %v2085_v53 = vpack.c.bf16 %v193_v49, %v193_v49  ;;  %v197_v54 = vadd.f32 %v196_v52, %v108_v46  ;;  %v198_v55 = vpop.f32.mrb[3].mxu1 }
 0x218   :  { %v2087_v56 = vpack.c.bf16 %v195_v51, %v195_v51  ;;  %v199_v57 = vadd.f32 %v198_v55, %v112_v47 }
 0x219   :  { %v2089_v58 = vpack.c.bf16 %v197_v54, %v197_v54  ;;  %206 = vrot.lane.b32.xlu0 %v2085_v53, %s1938_s2 }
 0x21a   :  { %v334_v59 = vsel %vm332_vm2, %v2087_v56, 0  ;;  %v2104_v2 = vpack.c.bf16 %v199_v57, %v199_v57 }
 0x21b   :  { %256 = vrot.lane.b32.xlu1 %v2089_v58, %s1938_s2  ;;  %1711 = vmatpush3.bf16.msra.mxu0 %v334_v59 }
 0x21c   :  { %1722 = vmatprep.subr.bf16.mxu0 %v1936_v40  ;;  %v380_v3 = vsel %vm332_vm2, %v2104_v2, 0 }
 0x28b   :  { %v207_v60 = vpop.permute.xlu0 %206 }
 0x28c   :  { %v213_v61 = vsel %vm208_vm3, %v207_v60, 0 }
 0x28d   :  { %1699 = vmatpush3.bf16.xpose.msra.mxu1 %v213_v61  ;;  %v257_v62 = vpop.permute.xlu1 %256 }
 0x28e   :  { %1704 = vmatprep.subr.bf16.mxu1 %v1936_v40  ;;  %v262_v63 = vsel %vm208_vm3, %v257_v62, 0 }
 0x294   :  { %1701 = vmatmul.mubr.msk.bf16.vlgmr.msra.gmra.mrb[4].mxu1 %vm208_vm3, %v2085_v53 }
 0x295   :  { %1705 = vmatpush3.bf16.xpose.msra.mxu1 %v262_v63  ;;  %1706 = vmatprep.mubr.msk.bf16.mxu1 %vm1937_vm1, %v1936_v40 }
 0x296   :  { %1716 = vmatprep.subr.bf16.mxu1 %v1936_v40 }
 0x29c   :  { %1707 = vmatmul.mubr.msk.bf16.vlgmr.msra.gmra.mrb[8].mxu1 %vm208_vm3, %v2089_v58 }
 0x29d   :  { %1717 = vmatpush3.bf16.msra.mxu1 %v380_v3  ;;  %1718 = vmatprep.mubr.msk.bf16.mxu1 %vm1937_vm1, %v1936_v40 }
 0x29e   :  { %1728 = vmatprep.subr.bf16.mxu1 %v1936_v40 }
 0x367   :  { %v249_v4 = vpop.f32.mrb[4].mxu1 }
 0x368   :  { %v1702_v5 = vpop.f32.mrb[5].mxu1  ;;  %v305_v6 = vsel %vm304_vm4, %v249_v4, -inf }
 0x369   :  { %306 = vmax.xlane.f32.xlu1 %v305_v6  ;;  %v252_v7 = vpop.f32.mrb[6].mxu1 }
 0x36a   :  { %v1703_v8 = vpop.f32.mrb[7].mxu1 }
 0x36f   :  { %v298_v9 = vpop.f32.mrb[8].mxu1 }
 0x370   :  { %v1708_v10 = vpop.f32.mrb[9].mxu1  ;;  %v308_v11 = vsel %vm304_vm4, %v298_v9, -inf }
 0x371   :  { %309 = vmax.xlane.f32.xlu0 %v308_v11  ;;  %v301_v12 = vpop.f32.mrb[10].mxu1 }
 0x372   :  { %v1709_v13 = vpop.f32.mrb[11].mxu1 }
 0x37a   :  { %476 = vrot.lane.b32.xlu1 %v2089_v58, %s1939_s4 }
 0x3f6   :  { %v307_v14 = vpop.xlane.xlu1 %306 }
 0x3f7   :  { %v311_v15 = vsub.f32 %v249_v4, %v307_v14 }
 0x3f9   :  { %v313_v16 = vmul.f32 1.442695, %v311_v15 }
 0x3fa   :  { %v477_v26 = vpop.permute.xlu1 %476 }
 0x3fb   :  { %1867 = vpow2.f32 %v313_v16  ;;  %v482_v37 = vsel %vm208_vm3, %v477_v26, 0 }
 0x3fe   :  { %v310_v17 = vpop.xlane.xlu0 %309 }
 0x3ff   :  { %v312_v18 = vsub.f32 %v298_v9, %v310_v17 }
 0x401   :  { %v315_v19 = vmul.f32 1.442695, %v312_v18 }
 0x403   :  { %1869 = vpow2.f32 %v315_v19 }
 0x405   :  { %v1868_v20 = vpop.eup %1867 }
 0x406   :  { %v317_v21 = vsel %vm304_vm4, %v1868_v20, 0.0 }
 0x407   :  { %318 = vadd.xlane.f32.xlu0 %v317_v21 }
 0x40d   :  { %v1870_v23 = vpop.eup %1869 }
 0x40e   :  { %v320_v24 = vsel %vm304_vm4, %v1870_v23, 0.0 }
 0x40f   :  { %321 = vadd.xlane.f32.xlu1 %v320_v24 }
 0x41d   :  { %426 = vrot.lane.b32.xlu0 %v2085_v53, %s1939_s4 }
 0x420   :  { %424 = vrot.lane.b32.xlu1 %v2085_v53, %s1940_s30 }
 0x424   :  { %474 = vrot.lane.b32.xlu1 %v2089_v58, %s1940_s30 }
 0x494   :  { %v319_v25 = vpop.xlane.xlu0 %318 }
 0x495   :  { %1871 = vrcp.f32 %v319_v25 }
 0x498   :  { %v427_v30 = vpop.permute.xlu0 %426 }
 0x499   :  { %v432_v32 = vsel %vm208_vm3, %v427_v30, 0 }
 0x49c   :  { %v322_v27 = vpop.xlane.xlu1 %321 }
 0x49d   :  { %1873 = vrcp.f32 %v322_v27 }
 0x49f   :  { %v1872_v28 = vpop.eup %1871 }
 0x4a0   :  { %v325_v29 = vmul.f32 %v1872_v28, %v1868_v20  ;;  %v425_v36 = vpop.permute.xlu1 %424 }
 0x4a2   :  { %v327_v31 = vpack.c.bf16 %v325_v29, %v325_v29 }
 0x4a4   :  { %1713 = vmatmul.mubr.msk.bf16.vlgmr.msra.gmra.mrb[0].mxu0 %vm304_vm4, %v327_v31  ;;  %v475_v38 = vpop.permute.xlu1 %474 }
 0x4a5   :  { %1723 = vmatpush3.bf16.xpose.msra.mxu0 %v432_v32  ;;  %1724 = vmatprep.mubr.msk.bf16.mxu0 %vm1937_vm1, %v1936_v40 }
 0x4a6   :  { %1734 = vmatprep.subr.bf16.mxu0 %v1936_v40 }
 0x4a7   :  { %v1874_v33 = vpop.eup %1873 }
 0x4a8   :  { %v326_v34 = vmul.f32 %v1874_v33, %v1870_v23 }
 0x4aa   :  { %v328_v35 = vpack.c.bf16 %v326_v34, %v326_v34 }
 0x4ac   :  { %1719 = vmatmul.mubr.msk.bf16.vlgmr.msra.gmra.mrb[12].mxu1 %vm304_vm4, %v328_v35  ;;  %1725 = vmatmul.mubr.msk.bf16.vlgmr.msra.gmra.mrb[4].mxu0 %vm208_vm3, %v425_v36 }
 0x4ad   :  { %1729 = vmatpush3.bf16.xpose.msra.mxu1 %v482_v37  ;;  %1730 = vmatprep.mubr.msk.bf16.mxu1 %vm1937_vm1, %v1936_v40 }
 0x4ae   :  { %1740 = vmatprep.subr.bf16.mxu1 %v1936_v40  ;;  %1736 = vmatprep.mubr.msk.bf16.mxu0 %vm1937_vm1, %v1936_v40 }
 0x4b4   :  { %1731 = vmatmul.mubr.msk.bf16.vlgmr.msra.gmra.mrb[16].mxu1 %vm208_vm3, %v475_v38 }
 0x4b5   :  { %1742 = vmatprep.mubr.msk.bf16.mxu1 %vm1937_vm1, %v1936_v40 }
 0x577   :  { %v370_v39 = vpop.f32.mrb[0].mxu0 }
 0x578   :  { %v1714_v41 = vpop.f32.mrb[1].mxu0 }
 0x579   :  { %v373_v44 = vpop.f32.mrb[2].mxu0 }
 0x57a   :  { %v1715_v46 = vpop.f32.mrb[3].mxu0 }
 0x57f   :  { %v416_v47 = vpop.f32.mrb[12].mxu1  ;;  %v468_v48 = vpop.f32.mrb[4].mxu0 }
 0x580   :  { %v422_v49 = vpack.c.bf16 %v416_v47, %v370_v39  ;;  %v1720_v50 = vpop.f32.mrb[13].mxu1  ;;  %v1726_v51 = vpop.f32.mrb[5].mxu0  ;;  %v524_v52 = vsel %vm304_vm4, %v468_v48, -inf }
 0x581   :  { %525 = vmax.xlane.f32.xlu0 %v524_v52  ;;  %v419_v54 = vpop.f32.mrb[14].mxu1  ;;  %v471_v55 = vpop.f32.mrb[6].mxu0 }
 0x582   :  { %423 = vst.msk [vmem:[#allocation2] sm:$0xff] %vm208_vm3, %v422_v49  ;;  %v1721_v57 = vpop.f32.mrb[15].mxu1  ;;  %v1727_v59 = vpop.f32.mrb[7].mxu0 }
 0x587   :  { %v518_v60 = vpop.f32.mrb[16].mxu1 }
 0x588   :  { %v1732_v61 = vpop.f32.mrb[17].mxu1  ;;  %v527_v62 = vsel %vm304_vm4, %v518_v60, -inf }
 0x589   :  { %528 = vmax.xlane.f32.xlu1 %v527_v62  ;;  %v521_v63 = vpop.f32.mrb[18].mxu1 }
 0x58a   :  { %v1733_v3 = vpop.f32.mrb[19].mxu1 }
 0x59a   :  { %598 = vrot.lane.b32.xlu1 %v2104_v2, %s1940_s30 }
 0x59e   :  { %655 = vrot.lane.b32.xlu1 %v2085_v53, %s1941_s14 }
 0x5a2   :  { %705 = vrot.lane.b32.xlu1 %v2089_v58, %s1941_s14 }
 0x5a6   :  { %703 = vrot.lane.b32.xlu1 %v2089_v58, %s1942_s15 }
 0x60e   :  { %v526_v4 = vpop.xlane.xlu0 %525 }
 0x60f   :  { %v530_v5 = vsub.f32 %v468_v48, %v526_v4 }
 0x611   :  { %v532_v6 = vmul.f32 1.442695, %v530_v5 }
 0x613   :  { %1875 = vpow2.f32 %v532_v6 }
 0x616   :  { %v529_v7 = vpop.xlane.xlu1 %528 }
 0x617   :  { %v531_v8 = vsub.f32 %v518_v60, %v529_v7 }
 0x619   :  { %v534_v9 = vmul.f32 1.442695, %v531_v8 }
 0x61a   :  { %v599_v10 = vpop.permute.xlu1 %598 }
 0x61b   :  { %1877 = vpow2.f32 %v534_v9  ;;  %v604_v11 = vsel %vm332_vm2, %v599_v10, 0 }
 0x61c   :  { %1741 = vmatpush3.bf16.msra.mxu1 %v604_v11 }
 0x61d   :  { %v1876_v12 = vpop.eup %1875  ;;  %1752 = vmatprep.subr.bf16.mxu1 %v1936_v40 }
 0x61e   :  { %v536_v13 = vsel %vm304_vm4, %v1876_v12, 0.0  ;;  %v656_v24 = vpop.permute.xlu1 %655 }
 0x61f   :  { %537 = vadd.xlane.f32.xlu0 %v536_v13  ;;  %v661_v28 = vsel %vm208_vm3, %v656_v24, 0 }
 0x622   :  { %v706_v27 = vpop.permute.xlu1 %705 }
 0x623   :  { %v711_v30 = vsel %vm208_vm3, %v706_v27, 0 }
 0x625   :  { %v1878_v14 = vpop.eup %1877 }
 0x626   :  { %v539_v15 = vsel %vm304_vm4, %v1878_v14, 0.0  ;;  %v704_v32 = vpop.permute.xlu1 %703 }
 0x627   :  { %540 = vadd.xlane.f32.xlu0 %v539_v15 }
 0x63d   :  { %549 = vrot.lane.b32.xlu0 %v2087_v56, %s1940_s30 }
 0x641   :  { %653 = vrot.lane.b32.xlu0 %v2085_v53, %s1942_s15 }
 0x6ac   :  { %v538_v16 = vpop.xlane.xlu0 %537 }
 0x6ad   :  { %1879 = vrcp.f32 %v538_v16 }
 0x6b4   :  { %v541_v17 = vpop.xlane.xlu0 %540 }
 0x6b5   :  { %1881 = vrcp.f32 %v541_v17 }
 0x6b7   :  { %v1880_v18 = vpop.eup %1879 }
 0x6b8   :  { %v544_v19 = vmul.f32 %v1880_v18, %v1876_v12  ;;  %v550_v20 = vpop.permute.xlu0 %549 }
 0x6b9   :  { %v555_v21 = vsel %vm332_vm2, %v550_v20, 0 }
 0x6ba   :  { %1735 = vmatpush3.bf16.msra.mxu0 %v555_v21  ;;  %v546_v23 = vpack.c.bf16 %v544_v19, %v544_v19 }
 0x6bb   :  { %1746 = vmatprep.subr.bf16.mxu0 %v1936_v40 }
 0x6bc   :  { %v654_v31 = vpop.permute.xlu0 %653 }
 0x6bd   :  { %1737 = vmatmul.mubr.msk.bf16.vlgmr.msra.gmra.mrb[8].mxu0 %vm304_vm4, %v546_v23 }
 0x6be   :  { %1748 = vmatprep.mubr.msk.bf16.mxu0 %vm1937_vm1, %v1936_v40 }
 0x6bf   :  { %v1882_v25 = vpop.eup %1881 }
 0x6c0   :  { %v545_v26 = vmul.f32 %v1882_v25, %v1878_v14 }
 0x6c2   :  { %v547_v29 = vpack.c.bf16 %v545_v26, %v545_v26 }
 0x6c3   :  { %1747 = vmatpush3.bf16.xpose.msra.mxu0 %v661_v28 }
 0x6c4   :  { %1743 = vmatmul.mubr.msk.bf16.vlgmr.msra.gmra.mrb[20].mxu1 %vm304_vm4, %v547_v29  ;;  %1758 = vmatprep.subr.bf16.mxu0 %v1936_v40 }
 0x6c5   :  { %1753 = vmatpush3.bf16.xpose.msra.mxu1 %v711_v30  ;;  %1754 = vmatprep.mubr.msk.bf16.mxu1 %vm1937_vm1, %v1936_v40 }
 0x6c6   :  { %1764 = vmatprep.subr.bf16.mxu1 %v1936_v40 }
 0x6ca   :  { %1749 = vmatmul.mubr.msk.bf16.vlgmr.msra.gmra.mrb[12].mxu0 %vm208_vm3, %v654_v31 }
 0x6cb   :  { %1760 = vmatprep.mubr.msk.bf16.mxu0 %vm1937_vm1, %v1936_v40 }
 0x6cc   :  { %1755 = vmatmul.mubr.msk.bf16.vlgmr.msra.gmra.mrb[24].mxu1 %vm208_vm3, %v704_v32 }
 0x6cd   :  { %1766 = vmatprep.mubr.msk.bf16.mxu1 %vm1937_vm1, %v1936_v40 }
 0x790   :  { %v2178_v33 = vpop.f32.mrb[8].mxu0 }
 0x791   :  { %v1738_v34 = vpop.f32.mrb[9].mxu0 }
 0x792   :  { %v594_v35 = vpop.f32.mrb[10].mxu0 }
 0x793   :  { %v1739_v36 = vpop.f32.mrb[11].mxu0 }
 0x797   :  { %v2180_v37 = vpop.f32.mrb[20].mxu1 }
 0x798   :  { %v646_v38 = vpack.c.bf16 %v2180_v37, %v2178_v33  ;;  %v1744_v39 = vpop.f32.mrb[21].mxu1 }
 0x799   :  { %v643_v41 = vpop.f32.mrb[22].mxu1 }
 0x79a   :  { %v1745_v44 = vpop.f32.mrb[23].mxu1 }
 0x79d   :  { %v697_v46 = vpop.f32.mrb[12].mxu0 }
 0x79e   :  { %v1750_v47 = vpop.f32.mrb[13].mxu0  ;;  %v753_v48 = vsel %vm304_vm4, %v697_v46, -inf }
 0x79f   :  { %754 = vmax.xlane.f32.xlu0 %v753_v48  ;;  %v700_v49 = vpop.f32.mrb[14].mxu0  ;;  %v747_v50 = vpop.f32.mrb[24].mxu1 }
 0x7a0   :  { %v1751_v51 = vpop.f32.mrb[15].mxu0  ;;  %v1756_v52 = vpop.f32.mrb[25].mxu1  ;;  %v756_v54 = vsel %vm304_vm4, %v747_v50, -inf }
 0x7a1   :  { %757 = vmax.xlane.f32.xlu1 %v756_v54  ;;  %v750_v55 = vpop.f32.mrb[26].mxu1 }
 0x7a2   :  { %v1757_v57 = vpop.f32.mrb[27].mxu1 }
 0x7b2   :  { %825 = vrot.lane.b32.xlu1 %v2104_v2, %s1942_s15 }
 0x7b6   :  { %882 = vrot.lane.b32.xlu1 %v2085_v53, %s1943_s16 }
 0x7ba   :  { %932 = vrot.lane.b32.xlu1 %v2089_v58, %s1943_s16 }
 0x7be   :  { %930 = vrot.lane.b32.xlu1 %v2089_v58, %s1944_s17 }
 0x82c   :  { %v755_v59 = vpop.xlane.xlu0 %754 }
 0x82d   :  { %v759_v60 = vsub.f32 %v697_v46, %v755_v59 }
 0x82e   :  { %v758_v61 = vpop.xlane.xlu1 %757 }
 0x82f   :  { %v761_v62 = vmul.f32 1.442695, %v759_v60  ;;  %v760_v63 = vsub.f32 %v747_v50, %v758_v61 }
 0x831   :  { %1883 = vpow2.f32 %v761_v62  ;;  %v763_v3 = vmul.f32 1.442695, %v760_v63 }
 0x832   :  { %v826_v4 = vpop.permute.xlu1 %825 }
 0x833   :  { %1885 = vpow2.f32 %v763_v3  ;;  %v831_v5 = vsel %vm332_vm2, %v826_v4, 0 }
 0x834   :  { %1765 = vmatpush3.bf16.msra.mxu1 %v831_v5 }
 0x835   :  { %1776 = vmatprep.subr.bf16.mxu1 %v1936_v40 }
 0x836   :  { %v883_v14 = vpop.permute.xlu1 %882 }
 0x83a   :  { %v933_v19 = vpop.permute.xlu1 %932 }
 0x83b   :  { %v1884_v6 = vpop.eup %1883  ;;  %v938_v21 = vsel %vm208_vm3, %v933_v19, 0 }
 0x83c   :  { %v765_v7 = vsel %vm304_vm4, %v1884_v6, 0.0 }
 0x83d   :  { %v1886_v8 = vpop.eup %1885  ;;  %766 = vadd.xlane.f32.xlu0 %v765_v7 }
 0x83e   :  { %v768_v58 = vsel %vm304_vm4, %v1886_v8, 0.0  ;;  %v931_v24 = vpop.permute.xlu1 %930 }
 0x841   :  { %769 = vadd.xlane.f32.xlu0 %v768_v58 }
 0x857   :  { %777 = vrot.lane.b32.xlu0 %v2087_v56, %s1942_s15 }
 0x85b   :  { %880 = vrot.lane.b32.xlu0 %v2085_v53, %s1944_s17  ;;  %v888_v53 = vsel %vm208_vm3, %v883_v14, 0 }
 0x8ca   :  { %v767_v9 = vpop.xlane.xlu0 %766 }
 0x8cb   :  { %1887 = vrcp.f32 %v767_v9 }
 0x8ce   :  { %v770_v10 = vpop.xlane.xlu0 %769 }
 0x8cf   :  { %1889 = vrcp.f32 %v770_v10 }
 0x8d2   :  { %v778_v11 = vpop.permute.xlu0 %777 }
 0x8d3   :  { %v783_v12 = vsel %vm332_vm2, %v778_v11, 0  ;;  %v1831_v11 = vld [vmem:[%s2385_s5] sm:$0xff]  }
 0x8d4   :  { %1759 = vmatpush3.bf16.msra.mxu0 %v783_v12  ;;  %v1832_v12 = vld [vmem:[%s2385_s5 + $0x8] sm:$0xff]  }
 0x8d5   :  { %v1888_v13 = vpop.eup %1887  ;;  %1770 = vmatprep.subr.bf16.mxu0 %v1936_v40 }
 0x8d6   :  { %v773_v15 = vmul.f32 %v1888_v13, %v1884_v6  ;;  %v881_v23 = vpop.permute.xlu0 %880  ;;  %v1833_v13 = vld [vmem:[%s2385_s5 + $0x10] sm:$0xff]  }
 0x8d8   :  { %v775_v16 = vpack.c.bf16 %v773_v15, %v773_v15 }
 0x8d9   :  { %v1890_v17 = vpop.eup %1889 }
 0x8da   :  { %v774_v18 = vmul.f32 %v1890_v17, %v1886_v8  ;;  %1761 = vmatmul.mubr.msk.bf16.vlgmr.msra.gmra.mrb[16].mxu0 %vm304_vm4, %v775_v16 }
 0x8db   :  { %1772 = vmatprep.mubr.msk.bf16.mxu0 %vm1937_vm1, %v1936_v40 }
 0x8dc   :  { %v776_v20 = vpack.c.bf16 %v774_v18, %v774_v18 }
 0x8dd   :  { %1771 = vmatpush3.bf16.xpose.msra.mxu0 %v888_v53 }
 0x8de   :  { %1767 = vmatmul.mubr.msk.bf16.vlgmr.msra.gmra.mrb[28].mxu1 %vm304_vm4, %v776_v20  ;;  %1782 = vmatprep.subr.bf16.mxu0 %v1936_v40 }
 0x8df   :  { %1777 = vmatpush3.bf16.xpose.msra.mxu1 %v938_v21  ;;  %1778 = vmatprep.mubr.msk.bf16.mxu1 %vm1937_vm1, %v1936_v40 }
 0x8e0   :  { %1788 = vmatprep.subr.bf16.mxu1 %v1936_v40 }
 0x8e4   :  { %1773 = vmatmul.mubr.msk.bf16.vlgmr.msra.gmra.mrb[20].mxu0 %vm208_vm3, %v881_v23 }
 0x8e5   :  { %1784 = vmatprep.mubr.msk.bf16.mxu0 %vm1937_vm1, %v1936_v40 }
 0x8e6   :  { %1779 = vmatmul.mubr.msk.bf16.vlgmr.msra.gmra.mrb[32].mxu1 %vm208_vm3, %v931_v24 }
 0x8e7   :  { %1790 = vmatprep.mubr.msk.bf16.mxu1 %vm1937_vm1, %v1936_v40 }
 0x9ad   :  { %v819_v25 = vpop.f32.mrb[16].mxu0 }
 0x9ae   :  { %v1762_v26 = vpop.f32.mrb[17].mxu0 }
 0x9af   :  { %v822_v27 = vpop.f32.mrb[18].mxu0 }
 0x9b0   :  { %v1763_v28 = vpop.f32.mrb[19].mxu0 }
 0x9b1   :  { %v867_v29 = vpop.f32.mrb[28].mxu1 }
 0x9b2   :  { %v873_v30 = vpack.c.bf16 %v867_v29, %v819_v25  ;;  %v1768_v31 = vpop.f32.mrb[29].mxu1 }
 0x9b3   :  { %v870_v32 = vpop.f32.mrb[30].mxu1 }
 0x9b4   :  { %v1769_v34 = vpop.f32.mrb[31].mxu1 }
 0x9b7   :  { %v924_v35 = vpop.f32.mrb[20].mxu0 }
 0x9b8   :  { %v1774_v36 = vpop.f32.mrb[21].mxu0  ;;  %v980_v39 = vsel %vm304_vm4, %v924_v35, -inf }
 0x9b9   :  { %981 = vmax.xlane.f32.xlu0 %v980_v39  ;;  %v927_v41 = vpop.f32.mrb[22].mxu0  ;;  %v974_v44 = vpop.f32.mrb[32].mxu1 }
 0x9ba   :  { %v1775_v46 = vpop.f32.mrb[23].mxu0  ;;  %v1780_v47 = vpop.f32.mrb[33].mxu1  ;;  %v983_v48 = vsel %vm304_vm4, %v974_v44, -inf }
 0x9bb   :  { %984 = vmax.xlane.f32.xlu1 %v983_v48  ;;  %v977_v49 = vpop.f32.mrb[34].mxu1 }
 0x9bc   :  { %v1781_v50 = vpop.f32.mrb[35].mxu1 }
 0x9bd   :  { %v1837_v50 = vld [vmem:[%s2389_s9 + $0x4] ss:$8 sps:$4 sm:$0xff]  }
 0x9cc   :  { %1052 = vrot.lane.b32.xlu1 %v2104_v2, %s1944_s17 }
 0x9d0   :  { %648 = vrot.lane.b32.xlu1 %v646_v38, %s1943_s16 }
 0x9d4   :  { %875 = vrot.lane.b32.xlu1 %v873_v30, %s1941_s14 }
 0xa46   :  { %v982_v51 = vpop.xlane.xlu0 %981 }
 0xa47   :  { %v986_v52 = vsub.f32 %v924_v35, %v982_v51  ;;  %v1835_v51 = vld [vmem:[%s2389_s9] ss:$8 sps:$4 sm:$0xff]  }
 0xa48   :  { %v985_v54 = vpop.xlane.xlu1 %984 }
 0xa49   :  { %v988_v55 = vmul.f32 1.442695, %v986_v52  ;;  %v987_v57 = vsub.f32 %v974_v44, %v985_v54  ;;  %v1840_v52 = vld [vmem:[%s2389_s9 + $0x14] ss:$8 sps:$4 sm:$0xff]   ;;  %v1838_v54 = vld [vmem:[%s2389_s9 + $0x10] ss:$8 sps:$4 sm:$0xff]  }
 0xa4b   :  { %1891 = vpow2.f32 %v988_v55  ;;  %v990_v59 = vmul.f32 1.442695, %v987_v57  ;;  %v1843_v55 = vld [vmem:[%s2389_s9 + $0x24] ss:$8 sps:$4 sm:$0xff]   ;;  %v1841_v57 = vld [vmem:[%s2389_s9 + $0x20] ss:$8 sps:$4 sm:$0xff]  }
 0xa4c   :  { %v1053_v60 = vpop.permute.xlu1 %1052 }
 0xa4d   :  { %1893 = vpow2.f32 %v990_v59  ;;  %v1058_v61 = vsel %vm332_vm2, %v1053_v60, 0  ;;  %v1844_v59 = vld [vmem:[%s2389_s9 + $0x30] ss:$8 sps:$4 sm:$0xff]   ;;  %v1846_v60 = vld [vmem:[%s2389_s9 + $0x34] ss:$8 sps:$4 sm:$0xff]  }
 0xa4e   :  { %1789 = vmatpush3.bf16.msra.mxu1 %v1058_v61 }
 0xa4f   :  { %1301 = vmatprep.subr.bf16.mxu1 %v1837_v50 }
 0xa50   :  { %v649_v2 = vpop.permute.xlu1 %648 }
 0xa51   :  { %652 = vst.msk [vmem:[#allocation2] sm:$0xff] %vm651_vm5, %v649_v2 }
 0xa54   :  { %v876_v33 = vpop.permute.xlu1 %875 }
 0xa55   :  { %v1892_v37 = vpop.eup %1891  ;;  %879 = vst.msk [vmem:[#allocation2] sm:$0xff] %vm878_vm6, %v876_v33 }
 0xa56   :  { %v992_v38 = vsel %vm304_vm4, %v1892_v37, 0.0 }
 0xa57   :  { %v1894_v62 = vpop.eup %1893  ;;  %993 = vadd.xlane.f32.xlu0 %v992_v38 }
 0xa58   :  { %v995_v63 = vsel %vm304_vm4, %v1894_v62, 0.0 }
 0xa5b   :  { %996 = vadd.xlane.f32.xlu0 %v995_v63 }
 0xa71   :  { %1004 = vrot.lane.b32.xlu0 %v2087_v56, %s1944_s17 }
 0xae4   :  { %v994_v3 = vpop.xlane.xlu0 %993 }
 0xae5   :  { %1895 = vrcp.f32 %v994_v3 }
 0xae8   :  { %v997_v4 = vpop.xlane.xlu0 %996 }
 0xae9   :  { %1897 = vrcp.f32 %v997_v4  ;;  %v1611_v4 = vld [vmem:[%s2387_s7] ss:$0 sm:$0xff] }
 0xaec   :  { %v1005_v5 = vpop.permute.xlu0 %1004 }
 0xaed   :  { %v1010_v6 = vsel %vm332_vm2, %v1005_v5, 0 }
 0xaee   :  { %1783 = vmatpush3.bf16.msra.mxu0 %v1010_v6 }
 0xaef   :  { %v1896_v7 = vpop.eup %1895  ;;  %1794 = vmatprep.subr.bf16.mxu0 %v1936_v40 }
 0xaf0   :  { %v1000_v8 = vmul.f32 %v1896_v7, %v1892_v37 }
 0xaf2   :  { %v1002_v58 = vpack.c.bf16 %v1000_v8, %v1000_v8  ;;  %v1612_v8 = vld [vmem:[%s2388_s8] ss:$0 sm:$0xff] }
 0xaf3   :  { %v1898_v9 = vpop.eup %1897 }
 0xaf4   :  { %v1001_v10 = vmul.f32 %v1898_v9, %v1894_v62  ;;  %1785 = vmatmul.mubr.msk.bf16.vlgmr.msra.gmra.mrb[24].mxu0 %vm304_vm4, %v1002_v58 }
 0xaf5   :  { %1802 = vmatprep.mubr.msk.bf16.mxu0 %vm1937_vm1, %v1936_v40  ;;  %1795 = vmatpush3.bf16.msra.mxu0 %v1831_v11  ;;  %v1847_v11 = vld [vmem:[%s2391_s11 + $0x40] sm:$0xff]  }
 0xaf6   :  { %v1003_v56 = vpack.c.bf16 %v1001_v10, %v1001_v10  ;;  %1796 = vmatprep.subr.bf16.mxu0 %v1936_v40 }
 0xaf8   :  { %1791 = vmatmul.mubr.msk.bf16.vlgmr.msra.gmra.mrb[36].mxu1 %vm304_vm4, %v1003_v56 }
 0xaf9   :  { %1333 = vmatprep.mubr.bf16.mxu1 %v1935_v22  ;;  %1797 = vmatpush3.bf16.msra.mxu0 %v1832_v12  ;;  %v1834_v22 = vld [vmem:[%s2385_s5 + $0x18] sm:$0xff]   ;;  %v1848_v12 = vld [vmem:[%s2391_s11] sm:$0xff]  }
 0xafa   :  { %1798 = vmatprep.subr.bf16.mxu0 %v1936_v40  ;;  %1302 = vmatpush1.bf16.msra.mxu1 %v1835_v51 }
 0xafb   :  { %1303 = vmatprep.subr.bf16.mxu1 %v1840_v52 }
 0xafd   :  { %1799 = vmatpush3.bf16.msra.mxu0 %v1833_v13  ;;  %v1849_v13 = vld [vmem:[%s2391_s11 + $0x48] sm:$0xff]  }
 0xafe   :  { %1800 = vmatprep.subr.bf16.mxu0 %v1936_v40  ;;  %v1605_v40 = vld [vmem:[%s2386_s6] ss:$0 sm:$0xff]  ;;  %1304 = vmatpush1.bf16.msra.mxu1 %v1838_v54  ;;  %s1945_s6 = smov [#allocation3]  }
 0xaff   :  { %1305 = vmatprep.subr.bf16.mxu1 %v1843_v55  ;;  %s1567_s27 = sshll.u32 %s1945_s6, 4  ;;  %s1568_s27 = int_to_ptr.vmem [resolvable:$true] %s1567_s27 }
 0xb00   :  { %s1911_s28 = scalar_lea.vmem %s1568_s27, 256  ;;  %p1916_p1 = scmp.lt.s32.totalorder %s1568_s27, %s1568_s27 }
 0xb01   :  { %1801 = vmatpush3.bf16.msra.mxu0 %v1834_v22  ;;  %v1850_v22 = vld [vmem:[%s2391_s11 + $0x8] sm:$0xff]   ;;  %p1912_p0 = scmp.ne.s32.totalorder %s1568_s27, %s1911_s28  ;;  %p1917_p2 = scmp.lt.s32.totalorder %s1911_s28, %s1911_s28 }
 0xb02   :  { %1306 = vmatpush1.bf16.msra.mxu1 %v1841_v57  ;;  %1676 = vmatprep.subr.bf16.mxu0 %v1847_v11 }
 0xb03   :  { %1307 = vmatprep.subr.bf16.mxu1 %v1846_v60  ;;  %p1918_p3 = por %p1917_p2, %p1916_p1 }
 0xb05   :  { %p1919_p4 = pnand %p1918_p3, %p1912_p0 }
 0xb06   :  { %1308 = vmatpush1.bf16.msra.mxu1 %v1844_v59 }
 0xbc7   :  { %v1046_v14 = vpop.f32.mrb[24].mxu0 }
 0xbc8   :  { %v1786_v15 = vpop.f32.mrb[25].mxu0 }
 0xbc9   :  { %v1049_v16 = vpop.f32.mrb[26].mxu0  ;;  %v1852_v15 = vld [vmem:[%s2391_s11 + $0x10] sm:$0xff]  }
 0xbca   :  { %v1787_v17 = vpop.f32.mrb[27].mxu0  ;;  %v1853_v16 = vld [vmem:[%s2391_s11 + $0x58] sm:$0xff]  }
 0xbcb   :  { %v1094_v18 = vpop.f32.mrb[36].mxu1  ;;  %v1854_v17 = vld [vmem:[%s2391_s11 + $0x18] sm:$0xff]  }
 0xbcc   :  { %v1100_v19 = vpack.c.bf16 %v1094_v18, %v1046_v14  ;;  %v1792_v53 = vpop.f32.mrb[37].mxu1  ;;  %v1851_v14 = vld [vmem:[%s2391_s11 + $0x50] sm:$0xff]   ;;  %v1855_v18 = vld [vmem:[%s2391_s11 + $0x60] sm:$0xff]  }
 0xbcd   :  { %v1097_v20 = vpop.f32.mrb[38].mxu1  ;;  %v1857_v53 = vld [vmem:[%s2391_s11 + $0x68] sm:$0xff]  }
 0xbce   :  { %1102 = vrot.lane.b32.xlu0 %v1100_v19, %s1939_s4  ;;  %v1793_v21 = vpop.f32.mrb[39].mxu1  ;;  %v1856_v19 = vld [vmem:[%s2391_s11 + $0x20] sm:$0xff]   ;;  %v1858_v20 = vld [vmem:[%s2391_s11 + $0x28] sm:$0xff]  }
 0xbcf   :  { %v1859_v21 = vld [vmem:[%s2391_s11 + $0x70] sm:$0xff]  }
 0xc40   :  { %v1103_v23 = vpop.permute.xlu0 %1102 }
 0xc41   :  { %1106 = vst.msk [vmem:[#allocation2] sm:$0xff] %vm1105_vm7, %v1103_v23  ;;  %v1860_v23 = vld [vmem:[%s2391_s11 + $0x30] sm:$0xff]  }
 0xc48   :  { %v1107_v24 = vld [vmem:[#allocation2] sm:$0xff] }
 0xc49   :  { %1803 = vmatmul.mubr.msk.bf16.vlgmr.msra.gmra.mrb[28].mxu0 %vm50_vm0, %v1107_v24  ;;  %v1861_v24 = vld [vmem:[%s2391_s11 + $0x78] sm:$0xff]  }
 0xc4a   :  { %1677 = vmatpush3.bf16.msra.mxu0 %v1848_v12 }
 0xc4b   :  { %1678 = vmatprep.subr.bf16.mxu0 %v1849_v13 }
 0xc4e   :  { %1679 = vmatpush3.bf16.msra.mxu0 %v1850_v22 }
 0xc4f   :  { %1680 = vmatprep.subr.bf16.mxu0 %v1851_v14  ;;  %v1622_v14 = vld [vmem:[%s2392_s12] ss:$0 sm:$0xff] }
 0xc52   :  { %1681 = vmatpush3.bf16.msra.mxu0 %v1852_v15 }
 0xc53   :  { %1682 = vmatprep.subr.bf16.mxu0 %v1853_v16 }
 0xc56   :  { %1683 = vmatpush3.bf16.msra.mxu0 %v1854_v17 }
 0xc57   :  { %1684 = vmatprep.subr.bf16.mxu0 %v1855_v18 }
 0xc5a   :  { %1685 = vmatpush3.bf16.msra.mxu0 %v1856_v19 }
 0xc5b   :  { %1686 = vmatprep.subr.bf16.mxu0 %v1857_v53 }
 0xc5e   :  { %1687 = vmatpush3.bf16.msra.mxu0 %v1858_v20 }
 0xc5f   :  { %1688 = vmatprep.subr.bf16.mxu0 %v1859_v21 }
 0xc62   :  { %1689 = vmatpush3.bf16.msra.mxu0 %v1860_v23 }
 0xc63   :  { %1690 = vmatprep.subr.bf16.mxu0 %v1861_v24 }
 0xd1c   :  { %v1184_v25 = vpop.f32.mrb[28].mxu0 }
 0xd1d   :  { %v1185_v26 = vadd.f32 %v1605_v40, %v1184_v25  ;;  %v1804_v27 = vpop.f32.mrb[29].mxu0  ;;  %v1246_v25 = vld [vmem:[%s2390_s10] sm:$0x3] }
 0xd1e   :  { %v1187_v28 = vpop.f32.mrb[30].mxu0  ;;  %v1255_v27 = vrot.slane %v1246_v25, %v111_v45 }
 0xd1f   :  { %v2262_v29 = vadd.f32 %v1185_v26, %v2021_v0  ;;  %v1188_v30 = vadd.f32 %v1605_v40, %v1187_v28  ;;  %v1805_v31 = vpop.f32.mrb[31].mxu0  ;;  %v1862_v40 = vld [vmem:[%s2391_s11 + $0x38] sm:$0xff]   ;;  %v1251_v26 = vrot.slane %v1246_v25, %v107_v43 }
 0xd20   :  { %1691 = vmatpush3.bf16.msra.mxu0 %v1862_v40 }
 0xd21   :  { %v2265_v32 = vadd.f32 %v1188_v30, %v2026_v1  ;;  %v1195_v34 = vsel %vm50_vm0, %v2262_v29, 0.0 }
 0xd22   :  { %1196 = vadd.xlane.f32.xlu1 %v1195_v34 }
 0xd23   :  { %v1198_v35 = vsel %vm50_vm0, %v2265_v32, 0.0 }
 0xd24   :  { %1199 = vadd.xlane.f32.xlu0 %v1198_v35 }
 0xdaf   :  { %v1197_v36 = vpop.xlane.xlu1 %1196 }
 0xdb0   :  { %v1201_v39 = vmul.f32 0.015625, %v1197_v36 }
 0xdb1   :  { %v1200_v41 = vpop.xlane.xlu0 %1199 }
 0xdb2   :  { %v1203_v44 = vsub.f32 %v2262_v29, %v1201_v39  ;;  %v1202_v0 = vmul.f32 0.015625, %v1200_v41 }
 0xdb4   :  { %v1204_v46 = vsub.f32 %v2265_v32, %v1202_v0  ;;  %v1205_v47 = vmul.f32 %v1203_v44, %v1203_v44 }
 0xdb6   :  { %v1207_v1 = vsel %vm50_vm0, %v1205_v47, 0.0  ;;  %v1206_v48 = vmul.f32 %v1204_v46, %v1204_v46 }
 0xdb7   :  { %1208 = vadd.xlane.f32.xlu0 %v1207_v1 }
 0xdb8   :  { %v1210_v49 = vsel %vm50_vm0, %v1206_v48, 0.0 }
 0xdbb   :  { %1211 = vadd.xlane.f32.xlu0 %v1210_v49 }
 0xe44   :  { %v1209_v61 = vpop.xlane.xlu0 %1208 }
 0xe45   :  { %v1213_v2 = vmul.f32 0.015625, %v1209_v61 }
 0xe47   :  { %v1215_v33 = vadd.f32 1e-05, %v1213_v2 }
 0xe48   :  { %v1212_v37 = vpop.xlane.xlu0 %1211 }
 0xe49   :  { %1899 = vrsqrt.f32 %v1215_v33  ;;  %v1214_v38 = vmul.f32 0.015625, %v1212_v37 }
 0xe4b   :  { %v1216_v62 = vadd.f32 1e-05, %v1214_v38 }
 0xe4d   :  { %1901 = vrsqrt.f32 %v1216_v62 }
 0xe53   :  { %v1900_v63 = vpop.eup %1899 }
 0xe54   :  { %v1219_v3 = vmul.f32 %v1900_v63, %v1203_v44 }
 0xe56   :  { %v1227_v6 = vmul.f32 %v1611_v4, %v1219_v3 }
 0xe57   :  { %v1902_v5 = vpop.eup %1901 }
 0xe58   :  { %v1220_v7 = vmul.f32 %v1902_v5, %v1204_v46  ;;  %v1235_v9 = vadd.f32 %v1612_v8, %v1227_v6 }
 0xe5a   :  { %v1228_v58 = vmul.f32 %v1611_v4, %v1220_v7 }
 0xe5c   :  { %v1236_v10 = vadd.f32 %v1612_v8, %v1228_v58 }
 0xe5e   :  { %v1237_v56 = vpack.c.bf16 %v1236_v10, %v1235_v9 }
 0xe60   :  { %1621 = vmatmul.mubr.msk.bf16.vlgmr.msra.gmra.mrb[40].mxu1 %vm50_vm0, %v1237_v56 }
 0xf33   :  { %v1335_v28 = vpop.f32.mrb[40].mxu1 }
 0xf34   :  { %v1336_v30 = vadd.f32 %v1335_v28, %v1251_v26  ;;  %v1337_v31 = vpop.f32.mrb[41].mxu1 }
 0xf35   :  { %v1338_v34 = vadd.f32 %v1337_v31, %v1255_v27  ;;  %v1339_v35 = vpop.f32.mrb[42].mxu1 }
 0xf36   :  { %v1348_v36 = vmul.f32 0.044715, %v1336_v30  ;;  %v1340_v39 = vadd.f32 %v1339_v35, %v1251_v26  ;;  %v1341_v41 = vpop.f32.mrb[43].mxu1  ;;  %v1344_v4 = vmul.f32 0.5, %v1336_v30 }
 0xf37   :  { %v1349_v44 = vmul.f32 0.044715, %v1338_v34  ;;  %v1342_v0 = vadd.f32 %v1341_v41, %v1255_v27  ;;  %v1345_v7 = vmul.f32 0.5, %v1338_v34 }
 0xf38   :  { %v1352_v46 = vmul.f32 %v1348_v36, %v1336_v30  ;;  %v1350_v47 = vmul.f32 0.044715, %v1340_v39  ;;  %v1346_v5 = vmul.f32 0.5, %v1340_v39 }
 0xf39   :  { %v1353_v1 = vmul.f32 %v1349_v44, %v1338_v34  ;;  %v1351_v48 = vmul.f32 0.044715, %v1342_v0  ;;  %v1347_v8 = vmul.f32 0.5, %v1342_v0 }
 0xf3a   :  { %v1356_v49 = vmul.f32 %v1352_v46, %v1336_v30  ;;  %v1354_v50 = vmul.f32 %v1350_v47, %v1340_v39 }
 0xf3b   :  { %v1357_v43 = vmul.f32 %v1353_v1, %v1338_v34  ;;  %v1355_v51 = vmul.f32 %v1351_v48, %v1342_v0 }
 0xf3c   :  { %v1360_v42 = vadd.f32 %v1356_v49, %v1336_v30  ;;  %v1358_v45 = vmul.f32 %v1354_v50, %v1340_v39 }
 0xf3d   :  { %v1359_v52 = vmul.f32 %v1355_v51, %v1342_v0  ;;  %v1361_v54 = vadd.f32 %v1357_v43, %v1338_v34 }
 0xf3e   :  { %v1364_v55 = vmul.f32 0.7978846, %v1360_v42  ;;  %v1362_v57 = vadd.f32 %v1358_v45, %v1340_v39 }
 0xf3f   :  { %v1363_v59 = vadd.f32 %v1359_v52, %v1342_v0  ;;  %v1365_v60 = vmul.f32 0.7978846, %v1361_v54 }
 0xf40   :  { %1903 = vtanh.f32 %v1364_v55  ;;  %v1366_v61 = vmul.f32 0.7978846, %v1362_v57 }
 0xf41   :  { %v1367_v2 = vmul.f32 0.7978846, %v1363_v59  ;;  %1905 = vtanh.f32 %v1365_v60 }
 0xf42   :  { %1907 = vtanh.f32 %v1366_v61 }
 0xf43   :  { %1909 = vtanh.f32 %v1367_v2 }
 0xf4a   :  { %v1904_v33 = vpop.eup %1903 }
 0xf4b   :  { %v1906_v37 = vpop.eup %1905  ;;  %v1372_v38 = vadd.f32 1.0, %v1904_v33 }
 0xf4c   :  { %v1908_v62 = vpop.eup %1907  ;;  %v1373_v63 = vadd.f32 1.0, %v1906_v37 }
 0xf4d   :  { %v1910_v3 = vpop.eup %1909  ;;  %v1374_v6 = vadd.f32 1.0, %v1908_v62  ;;  %v1376_v9 = vmul.f32 %v1372_v38, %v1344_v4 }
 0xf4e   :  { %v1375_v58 = vadd.f32 1.0, %v1910_v3  ;;  %v1377_v56 = vmul.f32 %v1373_v63, %v1345_v7 }
 0xf4f   :  { %v1378_v10 = vmul.f32 %v1374_v6, %v1346_v5 }
 0xf50   :  { %v1379_v11 = vmul.f32 %v1375_v58, %v1347_v8 }
 0xf51   :  { %v1380_v12 = vpack.c.bf16 %v1378_v10, %v1376_v9 }
 0xf52   :  { %v1381_v13 = vpack.c.bf16 %v1379_v11, %v1377_v56 }
 0xf54   :  { %1549 = vmatprep.mubr.bf16.mxu0 %v1381_v13 }
 0xf55   :  { %1550 = vmatmul.mubr.bf16.vlgmr.msra.gmra.mrb[32].mxu0 %v1380_v12 }
0x1028   :  { %v1692_v22 = vpop.f32.mrb[32].mxu0 }
0x1029   :  { %v1693_v15 = vpop.f32.mrb[33].mxu0 }
0x102a   :  { %v1694_v16 = vadd.f32 %v1693_v15, %v1692_v22  ;;  %v1695_v17 = vpop.f32.mrb[34].mxu0 }
0x102b   :  { %v1696_v18 = vpop.f32.mrb[35].mxu0 }
0x102c   :  { %v1552_v19 = vadd.f32 %v1694_v16, %v1622_v14  ;;  %v1697_v53 = vadd.f32 %v1696_v18, %v1695_v17 }
0x102e   :  { %v1558_v20 = vadd.f32 %v1552_v19, %v2262_v29  ;;  %v1555_v21 = vadd.f32 %v1697_v53, %v1622_v14 }
0x1030   :  { %1560 = vst.msk [vmem:[#allocation3] sm:$0xff] %vm50_vm0, %v1558_v20  ;;  %v1559_v23 = vadd.f32 %v1555_v21, %v2265_v32 }
0x1032   :  { %1561 = vst.msk [vmem:[#allocation3 + $0x8] sm:$0xff] %vm50_vm0, %v1559_v23 }
0x1033   :  { %1922 = shalt.err (!%p1919_p4)
}
0x1034   :  { %s1923_s0 = scalar_lea.hbm %s2393_s13, 256 }
0x1035   :  { %p1924_p5 = scmp.ne.s32.totalorder %s2393_s13, %s1923_s0  ;;  %p1927_p6 = scmp.lt.u32.totalorder %s1923_s0, %s2393_s13 }
0x1037   :  { %p1929_p7 = pnand %p1927_p6, %p1924_p5 }
0x1039   :  { %1932 = shalt.err (!%p1929_p7)
}
0x103a   :  { %s1946_s30 = smov 128   ;;  %s1947_s14 = smov 8  }
0x103b   :  { %1573 = dma.vmem_to_hbm [thread:$0]  %s1568_s27, 256, %s2393_s13, [#allocation4], %s1946_s30, %s1946_s30, %s1947_s14  }
0x103c   :  { %1933 = dma.done.wait [#allocation4], 256  }
0x103d   :  { %1934 = vsyncadd [#allocation4], 4294967040 }
0x103e   :  { %1577 = vsyncpa [#allocation4], 1 }

// kernel: tpu_custom_call.1
= control target key start
LH: loop header
LB: loop body
LE: loop exit
PB: predicated region body
PF: predicated region fallthrough
CT: control target
= control target key end

     0   :  { %vm50_vm0 = vcmask 523264   ;;  %s2380_s0 = inlined_call_operand.vmem [shape: f32[2,8,64], index: 0, kind: input, shape index: {}]   ;;  %s2381_s1 = inlined_call_operand.vmem [shape: f32[1,64], index: 1, kind: input, shape index: {}]   ;;  %s2382_s2 = inlined_call_operand.vmem [shape: f32[1,64], index: 2, kind: input, shape index: {}]   ;;  %s2383_s3 = inlined_call_operand.vmem [shape: bf16[64,192], index: 3, kind: input, shape index: {}]   ;;  %s2384_s4 = inlined_call_operand.vmem [shape: f32[1,192], index: 4, kind: input, shape index: {}]   ;;  %s2385_s5 = inlined_call_operand.vmem [shape: bf16[64,64], index: 5, kind: input, shape index: {}]   ;;  %s2386_s6 = inlined_call_operand.vmem [shape: f32[1,64], index: 6, kind: input, shape index: {}]   ;;  %s2387_s7 = inlined_call_operand.vmem [shape: f32[1,64], index: 7, kind: input, shape index: {}]   ;;  %s2388_s8 = inlined_call_operand.vmem [shape: f32[1,64], index: 8, kind: input, shape index: {}]   ;;  %s2389_s9 = inlined_call_operand.vmem [shape: bf16[64,256], index: 9, kind: input, shape index: {}]   ;;  %s2390_s10 = inlined_call_operand.vmem [shape: f32[1,256], index: 10, kind: input, shape index: {}]   ;;  %s2391_s11 = inlined_call_operand.vmem [shape: bf16[256,64], index: 11, kind: input, shape index: {}]   ;;  %s2392_s12 = inlined_call_operand.vmem [shape: f32[1,64], index: 12, kind: input, shape index: {}]   ;;  %s2393_s13 = inlined_call_operand.hbm [shape: f32[2,8,64], index: 13, kind: output, shape index: {}]  }
   0x1   :  { %v2021_v0 = vld [vmem:[%s2380_s0] sm:$0xff]  ;;  %v2026_v1 = vld [vmem:[%s2380_s0 + $0x8] sm:$0xff] }
   0x2   :  { %v51_v2 = vsel %vm50_vm0, %v2021_v0, 0.0  ;;  %v54_v3 = vsel %vm50_vm0, %v2026_v1, 0.0 }
   0x3   :  { %52 = vadd.xlane.f32.xlu0 %v51_v2 }
   0x7   :  { %55 = vadd.xlane.f32.xlu0 %v54_v3 }
   0x8   :  { %18 = vsyncpa [#allocation4], 0  ;;  %v1819_v14 = vld [vmem:[%s2383_s3 + $0x4] ss:$8 sps:$4 sm:$0xff]   ;;  %v1821_v15 = vld [vmem:[%s2383_s3] ss:$8 sps:$4 sm:$0xff]   ;;  %v105_v41 = vlaneseq }
   0x9   :  { %158 = vmatprep.subr.bf16.mxu1 %v1819_v14  ;;  %v1822_v16 = vld [vmem:[%s2383_s3 + $0x14] ss:$8 sps:$4 sm:$0xff]   ;;  %v1824_v17 = vld [vmem:[%s2383_s3 + $0x10] ss:$8 sps:$4 sm:$0xff]   ;;  %v1825_v18 = vld [vmem:[%s2383_s3 + $0x24] ss:$8 sps:$4 sm:$0xff]  }
   0xa   :  { %159 = vmatpush1.bf16.msra.mxu1 %v1821_v15  ;;  %v1827_v19 = vld [vmem:[%s2383_s3 + $0x20] ss:$8 sps:$4 sm:$0xff]   ;;  %v1828_v20 = vld [vmem:[%s2383_s3 + $0x34] ss:$8 sps:$4 sm:$0xff]   ;;  %v1830_v21 = vld [vmem:[%s2383_s3 + $0x30] ss:$8 sps:$4 sm:$0xff]  }
   0xb   :  { %160 = vmatprep.subr.bf16.mxu1 %v1822_v16  ;;  %v1935_v22 = vmov 0   ;;  %v1578_v31 = vld [vmem:[%s2381_s1] ss:$0 sm:$0xff]  ;;  %v1936_v40 = vmov 0.0   ;;  %v2070_v42 = vshrl.u32 %v105_v41, 7  ;;  %vm1937_vm1 = vmmov 0  }
   0xc   :  { %190 = vmatprep.mubr.bf16.mxu1 %v1935_v22  ;;  %v1579_v35 = vld [vmem:[%s2382_s2] ss:$0 sm:$0xff]  ;;  %1710 = vmatprep.subr.bf16.mxu0 %v1936_v40  ;;  %vm332_vm2 = vcmask 1043456   ;;  %s1938_s2 = smov 64   ;;  %vm208_vm3 = vcmask 130048   ;;  %vm304_vm4 = vcmask 64512  }
   0xd   :  { %v107_v43 = vsub.s32 0, %v2070_v42  ;;  %v103_v44 = vld [vmem:[%s2384_s4] sm:$0x3]  ;;  %v111_v45 = vsub.s32 1, %v2070_v42  ;;  %1712 = vmatprep.mubr.msk.bf16.mxu0 %vm1937_vm1, %v1936_v40  ;;  %s1939_s4 = smov 48   ;;  %s1940_s30 = smov 112  }
   0xe   :  { %161 = vmatpush1.bf16.msra.mxu1 %v1824_v17  ;;  %s1941_s14 = smov 32   ;;  %s1942_s15 = smov 96   ;;  %vm651_vm5 = vcmask 261248   ;;  %vm878_vm6 = vcmask 392448   ;;  %vm1105_vm7 = vcmask 523648  }
   0xf   :  { %162 = vmatprep.subr.bf16.mxu1 %v1825_v18  ;;  %v108_v46 = vrot.slane %v103_v44, %v107_v43  ;;  %v112_v47 = vrot.slane %v103_v44, %v111_v45  ;;  %s1943_s16 = smov 16   ;;  %s1944_s17 = smov 80  }
  0x12   :  { %163 = vmatpush1.bf16.msra.mxu1 %v1827_v19 }
  0x13   :  { %164 = vmatprep.subr.bf16.mxu1 %v1828_v20 }
  0x16   :  { %165 = vmatpush1.bf16.msra.mxu1 %v1830_v21 }
  0x17   :  { %1698 = vmatprep.subr.bf16.mxu1 %v1936_v40 }
  0x90   :  { %v53_v4 = vpop.xlane.xlu0 %52 }
  0x91   :  { %v58_v5 = vmul.f32 0.015625, %v53_v4 }
  0x93   :  { %v60_v6 = vsub.f32 %v2021_v0, %v58_v5 }
  0x94   :  { %v56_v7 = vpop.xlane.xlu0 %55 }
  0x95   :  { %v59_v8 = vmul.f32 0.015625, %v56_v7  ;;  %v62_v9 = vmul.f32 %v60_v6, %v60_v6 }
  0x97   :  { %v61_v10 = vsub.f32 %v2026_v1, %v59_v8  ;;  %v64_v11 = vsel %vm50_vm0, %v62_v9, 0.0 }
  0x98   :  { %65 = vadd.xlane.f32.xlu1 %v64_v11 }
  0x99   :  { %v63_v12 = vmul.f32 %v61_v10, %v61_v10 }
  0x9b   :  { %v67_v13 = vsel %vm50_vm0, %v63_v12, 0.0 }
  0x9c   :  { %68 = vadd.xlane.f32.xlu1 %v67_v13 }
 0x125   :  { %v66_v23 = vpop.xlane.xlu1 %65 }
 0x126   :  { %v70_v24 = vmul.f32 0.015625, %v66_v23 }
 0x128   :  { %v72_v25 = vadd.f32 1e-05, %v70_v24 }
 0x129   :  { %v69_v26 = vpop.xlane.xlu1 %68 }
 0x12a   :  { %1863 = vrsqrt.f32 %v72_v25  ;;  %v71_v27 = vmul.f32 0.015625, %v69_v26 }
 0x12c   :  { %v73_v28 = vadd.f32 1e-05, %v71_v27 }
 0x12e   :  { %1865 = vrsqrt.f32 %v73_v28 }
 0x134   :  { %v1864_v29 = vpop.eup %1863 }
 0x135   :  { %v76_v30 = vmul.f32 %v1864_v29, %v60_v6 }
 0x137   :  { %v84_v34 = vmul.f32 %v1578_v31, %v76_v30 }
 0x138   :  { %v1866_v32 = vpop.eup %1865 }
 0x139   :  { %v77_v33 = vmul.f32 %v1866_v32, %v61_v10  ;;  %v92_v37 = vadd.f32 %v1579_v35, %v84_v34 }
 0x13b   :  { %v85_v36 = vmul.f32 %v1578_v31, %v77_v33 }
 0x13d   :  { %v93_v38 = vadd.f32 %v1579_v35, %v85_v36 }
 0x13f   :  { %v94_v39 = vpack.c.bf16 %v93_v38, %v92_v37 }
 0x141   :  { %1588 = vmatmul.mubr.msk.bf16.vlgmr.msra.gmra.mrb[0].mxu1 %vm50_vm0, %v94_v39 }
 0x142   :  { %1700 = vmatprep.mubr.msk.bf16.mxu1 %vm1937_vm1, %v1936_v40 }
 0x214   :  { %v192_v48 = vpop.f32.mrb[0].mxu1 }
 0x215   :  { %v193_v49 = vadd.f32 %v192_v48, %v108_v46  ;;  %v194_v50 = vpop.f32.mrb[1].mxu1 }
 0x216   :  { %v195_v51 = vadd.f32 %v194_v50, %v112_v47  ;;  %v196_v52 = vpop.f32.mrb[2].mxu1 }
 0x217   :  { %v2085_v53 = vpack.c.bf16 %v193_v49, %v193_v49  ;;  %v197_v54 = vadd.f32 %v196_v52, %v108_v46  ;;  %v198_v55 = vpop.f32.mrb[3].mxu1 }
 0x218   :  { %v2087_v56 = vpack.c.bf16 %v195_v51, %v195_v51  ;;  %v199_v57 = vadd.f32 %v198_v55, %v112_v47 }
 0x219   :  { %v2089_v58 = vpack.c.bf16 %v197_v54, %v197_v54  ;;  %206 = vrot.lane.b32.xlu0 %v2085_v53, %s1938_s2 }
 0x21a   :  { %v334_v59 = vsel %vm332_vm2, %v2087_v56, 0  ;;  %v2104_v2 = vpack.c.bf16 %v199_v57, %v199_v57 }
 0x21b   :  { %256 = vrot.lane.b32.xlu1 %v2089_v58, %s1938_s2  ;;  %1711 = vmatpush3.bf16.msra.mxu0 %v334_v59 }
 0x21c   :  { %1722 = vmatprep.subr.bf16.mxu0 %v1936_v40  ;;  %v380_v3 = vsel %vm332_vm2, %v2104_v2, 0 }
 0x28b   :  { %v207_v60 = vpop.permute.xlu0 %206 }
 0x28c   :  { %v213_v61 = vsel %vm208_vm3, %v207_v60, 0 }
 0x28d   :  { %1699 = vmatpush3.bf16.xpose.msra.mxu1 %v213_v61  ;;  %v257_v62 = vpop.permute.xlu1 %256 }
 0x28e   :  { %1704 = vmatprep.subr.bf16.mxu1 %v1936_v40  ;;  %v262_v63 = vsel %vm208_vm3, %v257_v62, 0 }
 0x294   :  { %1701 = vmatmul.mubr.msk.bf16.vlgmr.msra.gmra.mrb[4].mxu1 %vm208_vm3, %v2085_v53 }
 0x295   :  { %1705 = vmatpush3.bf16.xpose.msra.mxu1 %v262_v63  ;;  %1706 = vmatprep.mubr.msk.bf16.mxu1 %vm1937_vm1, %v1936_v40 }
 0x296   :  { %1716 = vmatprep.subr.bf16.mxu1 %v1936_v40 }
 0x29c   :  { %1707 = vmatmul.mubr.msk.bf16.vlgmr.msra.gmra.mrb[8].mxu1 %vm208_vm3, %v2089_v58 }
 0x29d   :  { %1717 = vmatpush3.bf16.msra.mxu1 %v380_v3  ;;  %1718 = vmatprep.mubr.msk.bf16.mxu1 %vm1937_vm1, %v1936_v40 }
 0x29e   :  { %1728 = vmatprep.subr.bf16.mxu1 %v1936_v40 }
 0x367   :  { %v249_v4 = vpop.f32.mrb[4].mxu1 }
 0x368   :  { %v1702_v5 = vpop.f32.mrb[5].mxu1  ;;  %v305_v6 = vsel %vm304_vm4, %v249_v4, -inf }
 0x369   :  { %306 = vmax.xlane.f32.xlu1 %v305_v6  ;;  %v252_v7 = vpop.f32.mrb[6].mxu1 }
 0x36a   :  { %v1703_v8 = vpop.f32.mrb[7].mxu1 }
 0x36f   :  { %v298_v9 = vpop.f32.mrb[8].mxu1 }
 0x370   :  { %v1708_v10 = vpop.f32.mrb[9].mxu1  ;;  %v308_v11 = vsel %vm304_vm4, %v298_v9, -inf }
 0x371   :  { %309 = vmax.xlane.f32.xlu0 %v308_v11  ;;  %v301_v12 = vpop.f32.mrb[10].mxu1 }
 0x372   :  { %v1709_v13 = vpop.f32.mrb[11].mxu1 }
 0x37a   :  { %476 = vrot.lane.b32.xlu1 %v2089_v58, %s1939_s4 }
 0x3f6   :  { %v307_v14 = vpop.xlane.xlu1 %306 }
 0x3f7   :  { %v311_v15 = vsub.f32 %v249_v4, %v307_v14 }
 0x3f9   :  { %v313_v16 = vmul.f32 1.442695, %v311_v15 }
 0x3fa   :  { %v477_v26 = vpop.permute.xlu1 %476 }
 0x3fb   :  { %1867 = vpow2.f32 %v313_v16  ;;  %v482_v37 = vsel %vm208_vm3, %v477_v26, 0 }
 0x3fe   :  { %v310_v17 = vpop.xlane.xlu0 %309 }
 0x3ff   :  { %v312_v18 = vsub.f32 %v298_v9, %v310_v17 }
 0x401   :  { %v315_v19 = vmul.f32 1.442695, %v312_v18 }
 0x403   :  { %1869 = vpow2.f32 %v315_v19 }
 0x405   :  { %v1868_v20 = vpop.eup %1867 }
 0x406   :  { %v317_v21 = vsel %vm304_vm4, %v1868_v20, 0.0 }
 0x407   :  { %318 = vadd.xlane.f32.xlu0 %v317_v21 }
 0x40d   :  { %v1870_v23 = vpop.eup %1869 }
 0x40e   :  { %v320_v24 = vsel %vm304_vm4, %v1870_v23, 0.0 }
 0x40f   :  { %321 = vadd.xlane.f32.xlu1 %v320_v24 }
 0x41d   :  { %426 = vrot.lane.b32.xlu0 %v2085_v53, %s1939_s4 }
 0x420   :  { %424 = vrot.lane.b32.xlu1 %v2085_v53, %s1940_s30 }
 0x424   :  { %474 = vrot.lane.b32.xlu1 %v2089_v58, %s1940_s30 }
 0x494   :  { %v319_v25 = vpop.xlane.xlu0 %318 }
 0x495   :  { %1871 = vrcp.f32 %v319_v25 }
 0x498   :  { %v427_v30 = vpop.permute.xlu0 %426 }
 0x499   :  { %v432_v32 = vsel %vm208_vm3, %v427_v30, 0 }
 0x49c   :  { %v322_v27 = vpop.xlane.xlu1 %321 }
 0x49d   :  { %1873 = vrcp.f32 %v322_v27 }
 0x49f   :  { %v1872_v28 = vpop.eup %1871 }
 0x4a0   :  { %v325_v29 = vmul.f32 %v1872_v28, %v1868_v20  ;;  %v425_v36 = vpop.permute.xlu1 %424 }
 0x4a2   :  { %v327_v31 = vpack.c.bf16 %v325_v29, %v325_v29 }
 0x4a4   :  { %1713 = vmatmul.mubr.msk.bf16.vlgmr.msra.gmra.mrb[0].mxu0 %vm304_vm4, %v327_v31  ;;  %v475_v38 = vpop.permute.xlu1 %474 }
 0x4a5   :  { %1723 = vmatpush3.bf16.xpose.msra.mxu0 %v432_v32  ;;  %1724 = vmatprep.mubr.msk.bf16.mxu0 %vm1937_vm1, %v1936_v40 }
 0x4a6   :  { %1734 = vmatprep.subr.bf16.mxu0 %v1936_v40 }
 0x4a7   :  { %v1874_v33 = vpop.eup %1873 }
 0x4a8   :  { %v326_v34 = vmul.f32 %v1874_v33, %v1870_v23 }
 0x4aa   :  { %v328_v35 = vpack.c.bf16 %v326_v34, %v326_v34 }
 0x4ac   :  { %1719 = vmatmul.mubr.msk.bf16.vlgmr.msra.gmra.mrb[12].mxu1 %vm304_vm4, %v328_v35  ;;  %1725 = vmatmul.mubr.msk.bf16.vlgmr.msra.gmra.mrb[4].mxu0 %vm208_vm3, %v425_v36 }
 0x4ad   :  { %1729 = vmatpush3.bf16.xpose.msra.mxu1 %v482_v37  ;;  %1730 = vmatprep.mubr.msk.bf16.mxu1 %vm1937_vm1, %v1936_v40 }
 0x4ae   :  { %1740 = vmatprep.subr.bf16.mxu1 %v1936_v40  ;;  %1736 = vmatprep.mubr.msk.bf16.mxu0 %vm1937_vm1, %v1936_v40 }
 0x4b4   :  { %1731 = vmatmul.mubr.msk.bf16.vlgmr.msra.gmra.mrb[16].mxu1 %vm208_vm3, %v475_v38 }
 0x4b5   :  { %1742 = vmatprep.mubr.msk.bf16.mxu1 %vm1937_vm1, %v1936_v40 }
 0x577   :  { %v370_v39 = vpop.f32.mrb[0].mxu0 }
 0x578   :  { %v1714_v41 = vpop.f32.mrb[1].mxu0 }
 0x579   :  { %v373_v44 = vpop.f32.mrb[2].mxu0 }
 0x57a   :  { %v1715_v46 = vpop.f32.mrb[3].mxu0 }
 0x57f   :  { %v416_v47 = vpop.f32.mrb[12].mxu1  ;;  %v468_v48 = vpop.f32.mrb[4].mxu0 }
 0x580   :  { %v422_v49 = vpack.c.bf16 %v416_v47, %v370_v39  ;;  %v1720_v50 = vpop.f32.mrb[13].mxu1  ;;  %v1726_v51 = vpop.f32.mrb[5].mxu0  ;;  %v524_v52 = vsel %vm304_vm4, %v468_v48, -inf }
 0x581   :  { %525 = vmax.xlane.f32.xlu0 %v524_v52  ;;  %v419_v54 = vpop.f32.mrb[14].mxu1  ;;  %v471_v55 = vpop.f32.mrb[6].mxu0 }
 0x582   :  { %423 = vst.msk [vmem:[#allocation2] sm:$0xff] %vm208_vm3, %v422_v49  ;;  %v1721_v57 = vpop.f32.mrb[15].mxu1  ;;  %v1727_v59 = vpop.f32.mrb[7].mxu0 }
 0x587   :  { %v518_v60 = vpop.f32.mrb[16].mxu1 }
 0x588   :  { %v1732_v61 = vpop.f32.mrb[17].mxu1  ;;  %v527_v62 = vsel %vm304_vm4, %v518_v60, -inf }
 0x589   :  { %528 = vmax.xlane.f32.xlu1 %v527_v62  ;;  %v521_v63 = vpop.f32.mrb[18].mxu1 }
 0x58a   :  { %v1733_v3 = vpop.f32.mrb[19].mxu1 }
 0x59a   :  { %598 = vrot.lane.b32.xlu1 %v2104_v2, %s1940_s30 }
 0x59e   :  { %655 = vrot.lane.b32.xlu1 %v2085_v53, %s1941_s14 }
 0x5a2   :  { %705 = vrot.lane.b32.xlu1 %v2089_v58, %s1941_s14 }
 0x5a6   :  { %703 = vrot.lane.b32.xlu1 %v2089_v58, %s1942_s15 }
 0x60e   :  { %v526_v4 = vpop.xlane.xlu0 %525 }
 0x60f   :  { %v530_v5 = vsub.f32 %v468_v48, %v526_v4 }
 0x611   :  { %v532_v6 = vmul.f32 1.442695, %v530_v5 }
 0x613   :  { %1875 = vpow2.f32 %v532_v6 }
 0x616   :  { %v529_v7 = vpop.xlane.xlu1 %528 }
 0x617   :  { %v531_v8 = vsub.f32 %v518_v60, %v529_v7 }
 0x619   :  { %v534_v9 = vmul.f32 1.442695, %v531_v8 }
 0x61a   :  { %v599_v10 = vpop.permute.xlu1 %598 }
 0x61b   :  { %1877 = vpow2.f32 %v534_v9  ;;  %v604_v11 = vsel %vm332_vm2, %v599_v10, 0 }
 0x61c   :  { %1741 = vmatpush3.bf16.msra.mxu1 %v604_v11 }
 0x61d   :  { %v1876_v12 = vpop.eup %1875  ;;  %1752 = vmatprep.subr.bf16.mxu1 %v1936_v40 }
 0x61e   :  { %v536_v13 = vsel %vm304_vm4, %v1876_v12, 0.0  ;;  %v656_v24 = vpop.permute.xlu1 %655 }
 0x61f   :  { %537 = vadd.xlane.f32.xlu0 %v536_v13  ;;  %v661_v28 = vsel %vm208_vm3, %v656_v24, 0 }
 0x622   :  { %v706_v27 = vpop.permute.xlu1 %705 }
 0x623   :  { %v711_v30 = vsel %vm208_vm3, %v706_v27, 0 }
 0x625   :  { %v1878_v14 = vpop.eup %1877 }
 0x626   :  { %v539_v15 = vsel %vm304_vm4, %v1878_v14, 0.0  ;;  %v704_v32 = vpop.permute.xlu1 %703 }
 0x627   :  { %540 = vadd.xlane.f32.xlu0 %v539_v15 }
 0x63d   :  { %549 = vrot.lane.b32.xlu0 %v2087_v56, %s1940_s30 }
 0x641   :  { %653 = vrot.lane.b32.xlu0 %v2085_v53, %s1942_s15 }
 0x6ac   :  { %v538_v16 = vpop.xlane.xlu0 %537 }
 0x6ad   :  { %1879 = vrcp.f32 %v538_v16 }
 0x6b4   :  { %v541_v17 = vpop.xlane.xlu0 %540 }
 0x6b5   :  { %1881 = vrcp.f32 %v541_v17 }
 0x6b7   :  { %v1880_v18 = vpop.eup %1879 }
 0x6b8   :  { %v544_v19 = vmul.f32 %v1880_v18, %v1876_v12  ;;  %v550_v20 = vpop.permute.xlu0 %549 }
 0x6b9   :  { %v555_v21 = vsel %vm332_vm2, %v550_v20, 0 }
 0x6ba   :  { %1735 = vmatpush3.bf16.msra.mxu0 %v555_v21  ;;  %v546_v23 = vpack.c.bf16 %v544_v19, %v544_v19 }
 0x6bb   :  { %1746 = vmatprep.subr.bf16.mxu0 %v1936_v40 }
 0x6bc   :  { %v654_v31 = vpop.permute.xlu0 %653 }
 0x6bd   :  { %1737 = vmatmul.mubr.msk.bf16.vlgmr.msra.gmra.mrb[8].mxu0 %vm304_vm4, %v546_v23 }
 0x6be   :  { %1748 = vmatprep.mubr.msk.bf16.mxu0 %vm1937_vm1, %v1936_v40 }
 0x6bf   :  { %v1882_v25 = vpop.eup %1881 }
 0x6c0   :  { %v545_v26 = vmul.f32 %v1882_v25, %v1878_v14 }
 0x6c2   :  { %v547_v29 = vpack.c.bf16 %v545_v26, %v545_v26 }
 0x6c3   :  { %1747 = vmatpush3.bf16.xpose.msra.mxu0 %v661_v28 }
 0x6c4   :  { %1743 = vmatmul.mubr.msk.bf16.vlgmr.msra.gmra.mrb[20].mxu1 %vm304_vm4, %v547_v29  ;;  %1758 = vmatprep.subr.bf16.mxu0 %v1936_v40 }
 0x6c5   :  { %1753 = vmatpush3.bf16.xpose.msra.mxu1 %v711_v30  ;;  %1754 = vmatprep.mubr.msk.bf16.mxu1 %vm1937_vm1, %v1936_v40 }
 0x6c6   :  { %1764 = vmatprep.subr.bf16.mxu1 %v1936_v40 }
 0x6ca   :  { %1749 = vmatmul.mubr.msk.bf16.vlgmr.msra.gmra.mrb[12].mxu0 %vm208_vm3, %v654_v31 }
 0x6cb   :  { %1760 = vmatprep.mubr.msk.bf16.mxu0 %vm1937_vm1, %v1936_v40 }
 0x6cc   :  { %1755 = vmatmul.mubr.msk.bf16.vlgmr.msra.gmra.mrb[24].mxu1 %vm208_vm3, %v704_v32 }
 0x6cd   :  { %1766 = vmatprep.mubr.msk.bf16.mxu1 %vm1937_vm1, %v1936_v40 }
 0x790   :  { %v2178_v33 = vpop.f32.mrb[8].mxu0 }
 0x791   :  { %v1738_v34 = vpop.f32.mrb[9].mxu0 }
 0x792   :  { %v594_v35 = vpop.f32.mrb[10].mxu0 }
 0x793   :  { %v1739_v36 = vpop.f32.mrb[11].mxu0 }
 0x797   :  { %v2180_v37 = vpop.f32.mrb[20].mxu1 }
 0x798   :  { %v646_v38 = vpack.c.bf16 %v2180_v37, %v2178_v33  ;;  %v1744_v39 = vpop.f32.mrb[21].mxu1 }
 0x799   :  { %v643_v41 = vpop.f32.mrb[22].mxu1 }
 0x79a   :  { %v1745_v44 = vpop.f32.mrb[23].mxu1 }
 0x79d   :  { %v697_v46 = vpop.f32.mrb[12].mxu0 }
 0x79e   :  { %v1750_v47 = vpop.f32.mrb[13].mxu0  ;;  %v753_v48 = vsel %vm304_vm4, %v697_v46, -inf }
 0x79f   :  { %754 = vmax.xlane.f32.xlu0 %v753_v48  ;;  %v700_v49 = vpop.f32.mrb[14].mxu0  ;;  %v747_v50 = vpop.f32.mrb[24].mxu1 }
 0x7a0   :  { %v1751_v51 = vpop.f32.mrb[15].mxu0  ;;  %v1756_v52 = vpop.f32.mrb[25].mxu1  ;;  %v756_v54 = vsel %vm304_vm4, %v747_v50, -inf }
 0x7a1   :  { %757 = vmax.xlane.f32.xlu1 %v756_v54  ;;  %v750_v55 = vpop.f32.mrb[26].mxu1 }
 0x7a2   :  { %v1757_v57 = vpop.f32.mrb[27].mxu1 }
 0x7b2   :  { %825 = vrot.lane.b32.xlu1 %v2104_v2, %s1942_s15 }
 0x7b6   :  { %882 = vrot.lane.b32.xlu1 %v2085_v53, %s1943_s16 }
 0x7ba   :  { %932 = vrot.lane.b32.xlu1 %v2089_v58, %s1943_s16 }
 0x7be   :  { %930 = vrot.lane.b32.xlu1 %v2089_v58, %s1944_s17 }
 0x82c   :  { %v755_v59 = vpop.xlane.xlu0 %754 }
 0x82d   :  { %v759_v60 = vsub.f32 %v697_v46, %v755_v59 }
 0x82e   :  { %v758_v61 = vpop.xlane.xlu1 %757 }
 0x82f   :  { %v761_v62 = vmul.f32 1.442695, %v759_v60  ;;  %v760_v63 = vsub.f32 %v747_v50, %v758_v61 }
 0x831   :  { %1883 = vpow2.f32 %v761_v62  ;;  %v763_v3 = vmul.f32 1.442695, %v760_v63 }
 0x832   :  { %v826_v4 = vpop.permute.xlu1 %825 }
 0x833   :  { %1885 = vpow2.f32 %v763_v3  ;;  %v831_v5 = vsel %vm332_vm2, %v826_v4, 0 }
 0x834   :  { %1765 = vmatpush3.bf16.msra.mxu1 %v831_v5 }
 0x835   :  { %1776 = vmatprep.subr.bf16.mxu1 %v1936_v40 }
 0x836   :  { %v883_v14 = vpop.permute.xlu1 %882 }
 0x83a   :  { %v933_v19 = vpop.permute.xlu1 %932 }
 0x83b   :  { %v1884_v6 = vpop.eup %1883  ;;  %v938_v21 = vsel %vm208_vm3, %v933_v19, 0 }
 0x83c   :  { %v765_v7 = vsel %vm304_vm4, %v1884_v6, 0.0 }
 0x83d   :  { %v1886_v8 = vpop.eup %1885  ;;  %766 = vadd.xlane.f32.xlu0 %v765_v7 }
 0x83e   :  { %v768_v58 = vsel %vm304_vm4, %v1886_v8, 0.0  ;;  %v931_v24 = vpop.permute.xlu1 %930 }
 0x841   :  { %769 = vadd.xlane.f32.xlu0 %v768_v58 }
 0x857   :  { %777 = vrot.lane.b32.xlu0 %v2087_v56, %s1942_s15 }
 0x85b   :  { %880 = vrot.lane.b32.xlu0 %v2085_v53, %s1944_s17  ;;  %v888_v53 = vsel %vm208_vm3, %v883_v14, 0 }
 0x8ca   :  { %v767_v9 = vpop.xlane.xlu0 %766 }
 0x8cb   :  { %1887 = vrcp.f32 %v767_v9 }
 0x8ce   :  { %v770_v10 = vpop.xlane.xlu0 %769 }
 0x8cf   :  { %1889 = vrcp.f32 %v770_v10 }
 0x8d2   :  { %v778_v11 = vpop.permute.xlu0 %777 }
 0x8d3   :  { %v783_v12 = vsel %vm332_vm2, %v778_v11, 0  ;;  %v1831_v11 = vld [vmem:[%s2385_s5] sm:$0xff]  }
 0x8d4   :  { %1759 = vmatpush3.bf16.msra.mxu0 %v783_v12  ;;  %v1832_v12 = vld [vmem:[%s2385_s5 + $0x8] sm:$0xff]  }
 0x8d5   :  { %v1888_v13 = vpop.eup %1887  ;;  %1770 = vmatprep.subr.bf16.mxu0 %v1936_v40 }
 0x8d6   :  { %v773_v15 = vmul.f32 %v1888_v13, %v1884_v6  ;;  %v881_v23 = vpop.permute.xlu0 %880  ;;  %v1833_v13 = vld [vmem:[%s2385_s5 + $0x10] sm:$0xff]  }
 0x8d8   :  { %v775_v16 = vpack.c.bf16 %v773_v15, %v773_v15 }
 0x8d9   :  { %v1890_v17 = vpop.eup %1889 }
 0x8da   :  { %v774_v18 = vmul.f32 %v1890_v17, %v1886_v8  ;;  %1761 = vmatmul.mubr.msk.bf16.vlgmr.msra.gmra.mrb[16].mxu0 %vm304_vm4, %v775_v16 }
 0x8db   :  { %1772 = vmatprep.mubr.msk.bf16.mxu0 %vm1937_vm1, %v1936_v40 }
 0x8dc   :  { %v776_v20 = vpack.c.bf16 %v774_v18, %v774_v18 }
 0x8dd   :  { %1771 = vmatpush3.bf16.xpose.msra.mxu0 %v888_v53 }
 0x8de   :  { %1767 = vmatmul.mubr.msk.bf16.vlgmr.msra.gmra.mrb[28].mxu1 %vm304_vm4, %v776_v20  ;;  %1782 = vmatprep.subr.bf16.mxu0 %v1936_v40 }
 0x8df   :  { %1777 = vmatpush3.bf16.xpose.msra.mxu1 %v938_v21  ;;  %1778 = vmatprep.mubr.msk.bf16.mxu1 %vm1937_vm1, %v1936_v40 }
 0x8e0   :  { %1788 = vmatprep.subr.bf16.mxu1 %v1936_v40 }
 0x8e4   :  { %1773 = vmatmul.mubr.msk.bf16.vlgmr.msra.gmra.mrb[20].mxu0 %vm208_vm3, %v881_v23 }
 0x8e5   :  { %1784 = vmatprep.mubr.msk.bf16.mxu0 %vm1937_vm1, %v1936_v40 }
 0x8e6   :  { %1779 = vmatmul.mubr.msk.bf16.vlgmr.msra.gmra.mrb[32].mxu1 %vm208_vm3, %v931_v24 }
 0x8e7   :  { %1790 = vmatprep.mubr.msk.bf16.mxu1 %vm1937_vm1, %v1936_v40 }
 0x9ad   :  { %v819_v25 = vpop.f32.mrb[16].mxu0 }
 0x9ae   :  { %v1762_v26 = vpop.f32.mrb[17].mxu0 }
 0x9af   :  { %v822_v27 = vpop.f32.mrb[18].mxu0 }
 0x9b0   :  { %v1763_v28 = vpop.f32.mrb[19].mxu0 }
 0x9b1   :  { %v867_v29 = vpop.f32.mrb[28].mxu1 }
 0x9b2   :  { %v873_v30 = vpack.c.bf16 %v867_v29, %v819_v25  ;;  %v1768_v31 = vpop.f32.mrb[29].mxu1 }
 0x9b3   :  { %v870_v32 = vpop.f32.mrb[30].mxu1 }
 0x9b4   :  { %v1769_v34 = vpop.f32.mrb[31].mxu1 }
 0x9b7   :  { %v924_v35 = vpop.f32.mrb[20].mxu0 }
 0x9b8   :  { %v1774_v36 = vpop.f32.mrb[21].mxu0  ;;  %v980_v39 = vsel %vm304_vm4, %v924_v35, -inf }
 0x9b9   :  { %981 = vmax.xlane.f32.xlu0 %v980_v39  ;;  %v927_v41 = vpop.f32.mrb[22].mxu0  ;;  %v974_v44 = vpop.f32.mrb[32].mxu1 }
 0x9ba   :  { %v1775_v46 = vpop.f32.mrb[23].mxu0  ;;  %v1780_v47 = vpop.f32.mrb[33].mxu1  ;;  %v983_v48 = vsel %vm304_vm4, %v974_v44, -inf }
 0x9bb   :  { %984 = vmax.xlane.f32.xlu1 %v983_v48  ;;  %v977_v49 = vpop.f32.mrb[34].mxu1 }
 0x9bc   :  { %v1781_v50 = vpop.f32.mrb[35].mxu1 }
 0x9bd   :  { %v1837_v50 = vld [vmem:[%s2389_s9 + $0x4] ss:$8 sps:$4 sm:$0xff]  }
 0x9cc   :  { %1052 = vrot.lane.b32.xlu1 %v2104_v2, %s1944_s17 }
 0x9d0   :  { %648 = vrot.lane.b32.xlu1 %v646_v38, %s1943_s16 }
 0x9d4   :  { %875 = vrot.lane.b32.xlu1 %v873_v30, %s1941_s14 }
 0xa46   :  { %v982_v51 = vpop.xlane.xlu0 %981 }
 0xa47   :  { %v986_v52 = vsub.f32 %v924_v35, %v982_v51  ;;  %v1835_v51 = vld [vmem:[%s2389_s9] ss:$8 sps:$4 sm:$0xff]  }
 0xa48   :  { %v985_v54 = vpop.xlane.xlu1 %984 }
 0xa49   :  { %v988_v55 = vmul.f32 1.442695, %v986_v52  ;;  %v987_v57 = vsub.f32 %v974_v44, %v985_v54  ;;  %v1840_v52 = vld [vmem:[%s2389_s9 + $0x14] ss:$8 sps:$4 sm:$0xff]   ;;  %v1838_v54 = vld [vmem:[%s2389_s9 + $0x10] ss:$8 sps:$4 sm:$0xff]  }
 0xa4b   :  { %1891 = vpow2.f32 %v988_v55  ;;  %v990_v59 = vmul.f32 1.442695, %v987_v57  ;;  %v1843_v55 = vld [vmem:[%s2389_s9 + $0x24] ss:$8 sps:$4 sm:$0xff]   ;;  %v1841_v57 = vld [vmem:[%s2389_s9 + $0x20] ss:$8 sps:$4 sm:$0xff]  }
 0xa4c   :  { %v1053_v60 = vpop.permute.xlu1 %1052 }
 0xa4d   :  { %1893 = vpow2.f32 %v990_v59  ;;  %v1058_v61 = vsel %vm332_vm2, %v1053_v60, 0  ;;  %v1844_v59 = vld [vmem:[%s2389_s9 + $0x30] ss:$8 sps:$4 sm:$0xff]   ;;  %v1846_v60 = vld [vmem:[%s2389_s9 + $0x34] ss:$8 sps:$4 sm:$0xff]  }
 0xa4e   :  { %1789 = vmatpush3.bf16.msra.mxu1 %v1058_v61 }
 0xa4f   :  { %1301 = vmatprep.subr.bf16.mxu1 %v1837_v50 }
 0xa50   :  { %v649_v2 = vpop.permute.xlu1 %648 }
 0xa51   :  { %652 = vst.msk [vmem:[#allocation2] sm:$0xff] %vm651_vm5, %v649_v2 }
 0xa54   :  { %v876_v33 = vpop.permute.xlu1 %875 }
 0xa55   :  { %v1892_v37 = vpop.eup %1891  ;;  %879 = vst.msk [vmem:[#allocation2] sm:$0xff] %vm878_vm6, %v876_v33 }
 0xa56   :  { %v992_v38 = vsel %vm304_vm4, %v1892_v37, 0.0 }
 0xa57   :  { %v1894_v62 = vpop.eup %1893  ;;  %993 = vadd.xlane.f32.xlu0 %v992_v38 }
 0xa58   :  { %v995_v63 = vsel %vm304_vm4, %v1894_v62, 0.0 }
 0xa5b   :  { %996 = vadd.xlane.f32.xlu0 %v995_v63 }
 0xa71   :  { %1004 = vrot.lane.b32.xlu0 %v2087_v56, %s1944_s17 }
 0xae4   :  { %v994_v3 = vpop.xlane.xlu0 %993 }
 0xae5   :  { %1895 = vrcp.f32 %v994_v3 }
 0xae8   :  { %v997_v4 = vpop.xlane.xlu0 %996 }
 0xae9   :  { %1897 = vrcp.f32 %v997_v4  ;;  %v1611_v4 = vld [vmem:[%s2387_s7] ss:$0 sm:$0xff] }
 0xaec   :  { %v1005_v5 = vpop.permute.xlu0 %1004 }
 0xaed   :  { %v1010_v6 = vsel %vm332_vm2, %v1005_v5, 0 }
 0xaee   :  { %1783 = vmatpush3.bf16.msra.mxu0 %v1010_v6 }
 0xaef   :  { %v1896_v7 = vpop.eup %1895  ;;  %1794 = vmatprep.subr.bf16.mxu0 %v1936_v40 }
 0xaf0   :  { %v1000_v8 = vmul.f32 %v1896_v7, %v1892_v37 }
 0xaf2   :  { %v1002_v58 = vpack.c.bf16 %v1000_v8, %v1000_v8  ;;  %v1612_v8 = vld [vmem:[%s2388_s8] ss:$0 sm:$0xff] }
 0xaf3   :  { %v1898_v9 = vpop.eup %1897 }
 0xaf4   :  { %v1001_v10 = vmul.f32 %v1898_v9, %v1894_v62  ;;  %1785 = vmatmul.mubr.msk.bf16.vlgmr.msra.gmra.mrb[24].mxu0 %vm304_vm4, %v1002_v58 }
 0xaf5   :  { %1802 = vmatprep.mubr.msk.bf16.mxu0 %vm1937_vm1, %v1936_v40  ;;  %1795 = vmatpush3.bf16.msra.mxu0 %v1831_v11  ;;  %v1847_v11 = vld [vmem:[%s2391_s11 + $0x40] sm:$0xff]  }
 0xaf6   :  { %v1003_v56 = vpack.c.bf16 %v1001_v10, %v1001_v10  ;;  %1796 = vmatprep.subr.bf16.mxu0 %v1936_v40 }
 0xaf8   :  { %1791 = vmatmul.mubr.msk.bf16.vlgmr.msra.gmra.mrb[36].mxu1 %vm304_vm4, %v1003_v56 }
 0xaf9   :  { %1333 = vmatprep.mubr.bf16.mxu1 %v1935_v22  ;;  %1797 = vmatpush3.bf16.msra.mxu0 %v1832_v12  ;;  %v1834_v22 = vld [vmem:[%s2385_s5 + $0x18] sm:$0xff]   ;;  %v1848_v12 = vld [vmem:[%s2391_s11] sm:$0xff]  }
 0xafa   :  { %1798 = vmatprep.subr.bf16.mxu0 %v1936_v40  ;;  %1302 = vmatpush1.bf16.msra.mxu1 %v1835_v51 }
 0xafb   :  { %1303 = vmatprep.subr.bf16.mxu1 %v1840_v52 }
 0xafd   :  { %1799 = vmatpush3.bf16.msra.mxu0 %v1833_v13  ;;  %v1849_v13 = vld [vmem:[%s2391_s11 + $0x48] sm:$0xff]  }
 0xafe   :  { %1800 = vmatprep.subr.bf16.mxu0 %v1936_v40  ;;  %v1605_v40 = vld [vmem:[%s2386_s6] ss:$0 sm:$0xff]  ;;  %1304 = vmatpush1.bf16.msra.mxu1 %v1838_v54  ;;  %s1945_s6 = smov [#allocation3]  }
 0xaff   :  { %1305 = vmatprep.subr.bf16.mxu1 %v1843_v55  ;;  %s1567_s27 = sshll.u32 %s1945_s6, 4  ;;  %s1568_s27 = int_to_ptr.vmem [resolvable:$true] %s1567_s27 }
 0xb00   :  { %s1911_s28 = scalar_lea.vmem %s1568_s27, 256  ;;  %p1916_p1 = scmp.lt.s32.totalorder %s1568_s27, %s1568_s27 }
 0xb01   :  { %1801 = vmatpush3.bf16.msra.mxu0 %v1834_v22  ;;  %v1850_v22 = vld [vmem:[%s2391_s11 + $0x8] sm:$0xff]   ;;  %p1912_p0 = scmp.ne.s32.totalorder %s1568_s27, %s1911_s28  ;;  %p1917_p2 = scmp.lt.s32.totalorder %s1911_s28, %s1911_s28 }
 0xb02   :  { %1306 = vmatpush1.bf16.msra.mxu1 %v1841_v57  ;;  %1676 = vmatprep.subr.bf16.mxu0 %v1847_v11 }
 0xb03   :  { %1307 = vmatprep.subr.bf16.mxu1 %v1846_v60  ;;  %p1918_p3 = por %p1917_p2, %p1916_p1 }
 0xb05   :  { %p1919_p4 = pnand %p1918_p3, %p1912_p0 }
 0xb06   :  { %1308 = vmatpush1.bf16.msra.mxu1 %v1844_v59 }
 0xbc7   :  { %v1046_v14 = vpop.f32.mrb[24].mxu0 }
 0xbc8   :  { %v1786_v15 = vpop.f32.mrb[25].mxu0 }
 0xbc9   :  { %v1049_v16 = vpop.f32.mrb[26].mxu0  ;;  %v1852_v15 = vld [vmem:[%s2391_s11 + $0x10] sm:$0xff]  }
 0xbca   :  { %v1787_v17 = vpop.f32.mrb[27].mxu0  ;;  %v1853_v16 = vld [vmem:[%s2391_s11 + $0x58] sm:$0xff]  }
 0xbcb   :  { %v1094_v18 = vpop.f32.mrb[36].mxu1  ;;  %v1854_v17 = vld [vmem:[%s2391_s11 + $0x18] sm:$0xff]  }
 0xbcc   :  { %v1100_v19 = vpack.c.bf16 %v1094_v18, %v1046_v14  ;;  %v1792_v53 = vpop.f32.mrb[37].mxu1  ;;  %v1851_v14 = vld [vmem:[%s2391_s11 + $0x50] sm:$0xff]   ;;  %v1855_v18 = vld [vmem:[%s2391_s11 + $0x60] sm:$0xff]  }
 0xbcd   :  { %v1097_v20 = vpop.f32.mrb[38].mxu1  ;;  %v1857_v53 = vld [vmem:[%s2391_s11 + $0x68] sm:$0xff]  }
 0xbce   :  { %1102 = vrot.lane.b32.xlu0 %v1100_v19, %s1939_s4  ;;  %v1793_v21 = vpop.f32.mrb[39].mxu1  ;;  %v1856_v19 = vld [vmem:[%s2391_s11 + $0x20] sm:$0xff]   ;;  %v1858_v20 = vld [vmem:[%s2391_s11 + $0x28] sm:$0xff]  }
 0xbcf   :  { %v1859_v21 = vld [vmem:[%s2391_s11 + $0x70] sm:$0xff]  }
 0xc40   :  { %v1103_v23 = vpop.permute.xlu0 %1102 }
 0xc41   :  { %1106 = vst.msk [vmem:[#allocation2] sm:$0xff] %vm1105_vm7, %v1103_v23  ;;  %v1860_v23 = vld [vmem:[%s2391_s11 + $0x30] sm:$0xff]  }
 0xc48   :  { %v1107_v24 = vld [vmem:[#allocation2] sm:$0xff] }
 0xc49   :  { %1803 = vmatmul.mubr.msk.bf16.vlgmr.msra.gmra.mrb[28].mxu0 %vm50_vm0, %v1107_v24  ;;  %v1861_v24 = vld [vmem:[%s2391_s11 + $0x78] sm:$0xff]  }
 0xc4a   :  { %1677 = vmatpush3.bf16.msra.mxu0 %v1848_v12 }
 0xc4b   :  { %1678 = vmatprep.subr.bf16.mxu0 %v1849_v13 }
 0xc4e   :  { %1679 = vmatpush3.bf16.msra.mxu0 %v1850_v22 }
 0xc4f   :  { %1680 = vmatprep.subr.bf16.mxu0 %v1851_v14  ;;  %v1622_v14 = vld [vmem:[%s2392_s12] ss:$0 sm:$0xff] }
 0xc52   :  { %1681 = vmatpush3.bf16.msra.mxu0 %v1852_v15 }
 0xc53   :  { %1682 = vmatprep.subr.bf16.mxu0 %v1853_v16 }
 0xc56   :  { %1683 = vmatpush3.bf16.msra.mxu0 %v1854_v17 }
 0xc57   :  { %1684 = vmatprep.subr.bf16.mxu0 %v1855_v18 }
 0xc5a   :  { %1685 = vmatpush3.bf16.msra.mxu0 %v1856_v19 }
 0xc5b   :  { %1686 = vmatprep.subr.bf16.mxu0 %v1857_v53 }
 0xc5e   :  { %1687 = vmatpush3.bf16.msra.mxu0 %v1858_v20 }
 0xc5f   :  { %1688 = vmatprep.subr.bf16.mxu0 %v1859_v21 }
 0xc62   :  { %1689 = vmatpush3.bf16.msra.mxu0 %v1860_v23 }
 0xc63   :  { %1690 = vmatprep.subr.bf16.mxu0 %v1861_v24 }
 0xd1c   :  { %v1184_v25 = vpop.f32.mrb[28].mxu0 }
 0xd1d   :  { %v1185_v26 = vadd.f32 %v1605_v40, %v1184_v25  ;;  %v1804_v27 = vpop.f32.mrb[29].mxu0  ;;  %v1246_v25 = vld [vmem:[%s2390_s10] sm:$0x3] }
 0xd1e   :  { %v1187_v28 = vpop.f32.mrb[30].mxu0  ;;  %v1255_v27 = vrot.slane %v1246_v25, %v111_v45 }
 0xd1f   :  { %v2262_v29 = vadd.f32 %v1185_v26, %v2021_v0  ;;  %v1188_v30 = vadd.f32 %v1605_v40, %v1187_v28  ;;  %v1805_v31 = vpop.f32.mrb[31].mxu0  ;;  %v1862_v40 = vld [vmem:[%s2391_s11 + $0x38] sm:$0xff]   ;;  %v1251_v26 = vrot.slane %v1246_v25, %v107_v43 }
 0xd20   :  { %1691 = vmatpush3.bf16.msra.mxu0 %v1862_v40 }
 0xd21   :  { %v2265_v32 = vadd.f32 %v1188_v30, %v2026_v1  ;;  %v1195_v34 = vsel %vm50_vm0, %v2262_v29, 0.0 }
 0xd22   :  { %1196 = vadd.xlane.f32.xlu1 %v1195_v34 }
 0xd23   :  { %v1198_v35 = vsel %vm50_vm0, %v2265_v32, 0.0 }
 0xd24   :  { %1199 = vadd.xlane.f32.xlu0 %v1198_v35 }
 0xdaf   :  { %v1197_v36 = vpop.xlane.xlu1 %1196 }
 0xdb0   :  { %v1201_v39 = vmul.f32 0.015625, %v1197_v36 }
 0xdb1   :  { %v1200_v41 = vpop.xlane.xlu0 %1199 }
 0xdb2   :  { %v1203_v44 = vsub.f32 %v2262_v29, %v1201_v39  ;;  %v1202_v0 = vmul.f32 0.015625, %v1200_v41 }
 0xdb4   :  { %v1204_v46 = vsub.f32 %v2265_v32, %v1202_v0  ;;  %v1205_v47 = vmul.f32 %v1203_v44, %v1203_v44 }
 0xdb6   :  { %v1207_v1 = vsel %vm50_vm0, %v1205_v47, 0.0  ;;  %v1206_v48 = vmul.f32 %v1204_v46, %v1204_v46 }
 0xdb7   :  { %1208 = vadd.xlane.f32.xlu0 %v1207_v1 }
 0xdb8   :  { %v1210_v49 = vsel %vm50_vm0, %v1206_v48, 0.0 }
 0xdbb   :  { %1211 = vadd.xlane.f32.xlu0 %v1210_v49 }
 0xe44   :  { %v1209_v61 = vpop.xlane.xlu0 %1208 }
 0xe45   :  { %v1213_v2 = vmul.f32 0.015625, %v1209_v61 }
 0xe47   :  { %v1215_v33 = vadd.f32 1e-05, %v1213_v2 }
 0xe48   :  { %v1212_v37 = vpop.xlane.xlu0 %1211 }
 0xe49   :  { %1899 = vrsqrt.f32 %v1215_v33  ;;  %v1214_v38 = vmul.f32 0.015625, %v1212_v37 }
 0xe4b   :  { %v1216_v62 = vadd.f32 1e-05, %v1214_v38 }
 0xe4d   :  { %1901 = vrsqrt.f32 %v1216_v62 }
 0xe53   :  { %v1900_v63 = vpop.eup %1899 }
 0xe54   :  { %v1219_v3 = vmul.f32 %v1900_v63, %v1203_v44 }
 0xe56   :  { %v1227_v6 = vmul.f32 %v1611_v4, %v1219_v3 }
 0xe57   :  { %v1902_v5 = vpop.eup %1901 }
 0xe58   :  { %v1220_v7 = vmul.f32 %v1902_v5, %v1204_v46  ;;  %v1235_v9 = vadd.f32 %v1612_v8, %v1227_v6 }
 0xe5a   :  { %v1228_v58 = vmul.f32 %v1611_v4, %v1220_v7 }
 0xe5c   :  { %v1236_v10 = vadd.f32 %v1612_v8, %v1228_v58 }
 0xe5e   :  { %v1237_v56 = vpack.c.bf16 %v1236_v10, %v1235_v9 }
 0xe60   :  { %1621 = vmatmul.mubr.msk.bf16.vlgmr.msra.gmra.mrb[40].mxu1 %vm50_vm0, %v1237_v56 }
 0xf33   :  { %v1335_v28 = vpop.f32.mrb[40].mxu1 }
 0xf34   :  { %v1336_v30 = vadd.f32 %v1335_v28, %v1251_v26  ;;  %v1337_v31 = vpop.f32.mrb[41].mxu1 }
 0xf35   :  { %v1338_v34 = vadd.f32 %v1337_v31, %v1255_v27  ;;  %v1339_v35 = vpop.f32.mrb[42].mxu1 }
 0xf36   :  { %v1348_v36 = vmul.f32 0.044715, %v1336_v30  ;;  %v1340_v39 = vadd.f32 %v1339_v35, %v1251_v26  ;;  %v1341_v41 = vpop.f32.mrb[43].mxu1  ;;  %v1344_v4 = vmul.f32 0.5, %v1336_v30 }
 0xf37   :  { %v1349_v44 = vmul.f32 0.044715, %v1338_v34  ;;  %v1342_v0 = vadd.f32 %v1341_v41, %v1255_v27  ;;  %v1345_v7 = vmul.f32 0.5, %v1338_v34 }
 0xf38   :  { %v1352_v46 = vmul.f32 %v1348_v36, %v1336_v30  ;;  %v1350_v47 = vmul.f32 0.044715, %v1340_v39  ;;  %v1346_v5 = vmul.f32 0.5, %v1340_v39 }
 0xf39   :  { %v1353_v1 = vmul.f32 %v1349_v44, %v1338_v34  ;;  %v1351_v48 = vmul.f32 0.044715, %v1342_v0  ;;  %v1347_v8 = vmul.f32 0.5, %v1342_v0 }
 0xf3a   :  { %v1356_v49 = vmul.f32 %v1352_v46, %v1336_v30  ;;  %v1354_v50 = vmul.f32 %v1350_v47, %v1340_v39 }
 0xf3b   :  { %v1357_v43 = vmul.f32 %v1353_v1, %v1338_v34  ;;  %v1355_v51 = vmul.f32 %v1351_v48, %v1342_v0 }
 0xf3c   :  { %v1360_v42 = vadd.f32 %v1356_v49, %v1336_v30  ;;  %v1358_v45 = vmul.f32 %v1354_v50, %v1340_v39 }
 0xf3d   :  { %v1359_v52 = vmul.f32 %v1355_v51, %v1342_v0  ;;  %v1361_v54 = vadd.f32 %v1357_v43, %v1338_v34 }
 0xf3e   :  { %v1364_v55 = vmul.f32 0.7978846, %v1360_v42  ;;  %v1362_v57 = vadd.f32 %v1358_v45, %v1340_v39 }
 0xf3f   :  { %v1363_v59 = vadd.f32 %v1359_v52, %v1342_v0  ;;  %v1365_v60 = vmul.f32 0.7978846, %v1361_v54 }
 0xf40   :  { %1903 = vtanh.f32 %v1364_v55  ;;  %v1366_v61 = vmul.f32 0.7978846, %v1362_v57 }
 0xf41   :  { %v1367_v2 = vmul.f32 0.7978846, %v1363_v59  ;;  %1905 = vtanh.f32 %v1365_v60 }
 0xf42   :  { %1907 = vtanh.f32 %v1366_v61 }
 0xf43   :  { %1909 = vtanh.f32 %v1367_v2 }
 0xf4a   :  { %v1904_v33 = vpop.eup %1903 }
 0xf4b   :  { %v1906_v37 = vpop.eup %1905  ;;  %v1372_v38 = vadd.f32 1.0, %v1904_v33 }
 0xf4c   :  { %v1908_v62 = vpop.eup %1907  ;;  %v1373_v63 = vadd.f32 1.0, %v1906_v37 }
 0xf4d   :  { %v1910_v3 = vpop.eup %1909  ;;  %v1374_v6 = vadd.f32 1.0, %v1908_v62  ;;  %v1376_v9 = vmul.f32 %v1372_v38, %v1344_v4 }
 0xf4e   :  { %v1375_v58 = vadd.f32 1.0, %v1910_v3  ;;  %v1377_v56 = vmul.f32 %v1373_v63, %v1345_v7 }
 0xf4f   :  { %v1378_v10 = vmul.f32 %v1374_v6, %v1346_v5 }
 0xf50   :  { %v1379_v11 = vmul.f32 %v1375_v58, %v1347_v8 }
 0xf51   :  { %v1380_v12 = vpack.c.bf16 %v1378_v10, %v1376_v9 }
 0xf52   :  { %v1381_v13 = vpack.c.bf16 %v1379_v11, %v1377_v56 }
 0xf54   :  { %1549 = vmatprep.mubr.bf16.mxu0 %v1381_v13 }
 0xf55   :  { %1550 = vmatmul.mubr.bf16.vlgmr.msra.gmra.mrb[32].mxu0 %v1380_v12 }
0x1028   :  { %v1692_v22 = vpop.f32.mrb[32].mxu0 }
0x1029   :  { %v1693_v15 = vpop.f32.mrb[33].mxu0 }
0x102a   :  { %v1694_v16 = vadd.f32 %v1693_v15, %v1692_v22  ;;  %v1695_v17 = vpop.f32.mrb[34].mxu0 }
0x102b   :  { %v1696_v18 = vpop.f32.mrb[35].mxu0 }
0x102c   :  { %v1552_v19 = vadd.f32 %v1694_v16, %v1622_v14  ;;  %v1697_v53 = vadd.f32 %v1696_v18, %v1695_v17 }
0x102e   :  { %v1558_v20 = vadd.f32 %v1552_v19, %v2262_v29  ;;  %v1555_v21 = vadd.f32 %v1697_v53, %v1622_v14 }
0x1030   :  { %1560 = vst.msk [vmem:[#allocation3] sm:$0xff] %vm50_vm0, %v1558_v20  ;;  %v1559_v23 = vadd.f32 %v1555_v21, %v2265_v32 }
0x1032   :  { %1561 = vst.msk [vmem:[#allocation3 + $0x8] sm:$0xff] %vm50_vm0, %v1559_v23 }
0x1033   :  { %1922 = shalt.err (!%p1919_p4)
}
0x1034   :  { %s1923_s0 = scalar_lea.hbm %s2393_s13, 256 }
0x1035   :  { %p1924_p5 = scmp.ne.s32.totalorder %s2393_s13, %s1923_s0  ;;  %p1927_p6 = scmp.lt.u32.totalorder %s1923_s0, %s2393_s13 }
0x1037   :  { %p1929_p7 = pnand %p1927_p6, %p1924_p5 }
0x1039   :  { %1932 = shalt.err (!%p1929_p7)
}
0x103a   :  { %s1946_s30 = smov 128   ;;  %s1947_s14 = smov 8  }
0x103b   :  { %1573 = dma.vmem_to_hbm [thread:$0]  %s1568_s27, 256, %s2393_s13, [#allocation4], %s1946_s30, %s1946_s30, %s1947_s14  }
0x103c   :  { %1933 = dma.done.wait [#allocation4], 256  }
0x103d   :  { %1934 = vsyncadd [#allocation4], 4294967040 }
0x103e   :  { %1577 = vsyncpa [#allocation4], 1 }

</bundles_post_ra>
